<compile_context>
chip_gen: v7x
topology: tpu7x:2x2x1
jax: 0.10.0
libtpu: 0.0.40
codegen_flags: <defaults>
</compile_context>

<pallas_src>
import functools

import jax
import jax.numpy as jnp
from jax.experimental import pallas as pl
from jax.experimental.pallas import tpu as pltpu


LANE = 128          # TPU lane width; all padded feature widths are multiples of this
ATT_PAD = 128       # lane-aligned width reserved for the attention-logit columns
OUT_PAD = 128       # lane-dense output slab width
NEG = -1e9          # additive mask value (representable in bf16, underflows in exp)
TD = 64             # dst-tile rows   (divisible by 8)
TS = 128            # src-tile cols   (divisible by 128)


def _round_up(x, m):
    return (x + m - 1) // m * m


def _pad_to(a, rows, cols):
    pr, pc = rows - a.shape[0], cols - a.shape[1]
    assert pr >= 0 and pc >= 0, (a.shape, rows, cols)
    if pr == 0 and pc == 0:
        return a
    return jnp.pad(a, ((0, pr), (0, pc)))


# ---------------------------------------------------------------------------
# Fused per-layer Pallas kernel (flash-style online edge-softmax)
# ---------------------------------------------------------------------------

def _gat_layer_kernel(adj_ref, hs_ref, hd_ref, wfe_ref, wer_ref, o_ref,
                      m_sc, l_sc, acc_sc, *,
                      n_heads, f_out, hf_pad, negative_slope, final):
    j = pl.program_id(1)
    nj = pl.num_programs(1)

    # ---- fresh online-softmax state for every dst tile ----------------------
    @pl.when(j == 0)
    def _init():
        m_sc[...] = jnp.full_like(m_sc, -jnp.inf)
        l_sc[...] = jnp.zeros_like(l_sc)
        acc_sc[...] = jnp.zeros_like(acc_sc)

    # ---- fused projection of the streamed src tile:  [feat_src | el] --------
    hs = hs_ref[...]                                            # (Ts, Din_pad) bf16
    proj = jnp.dot(hs, wfe_ref[...],
                   preferred_element_type=jnp.float32)          # (Ts, hf_pad+ATT) f32
    feat = proj[:, :hf_pad].astype(jnp.bfloat16)                # cast once (hoisted)
    el_t = jnp.transpose(proj[:, hf_pad:hf_pad + n_heads])      # (H, Ts) f32

    # er for the resident dst tile.  Tiny matmul (Td x Din x 128); recomputed
    # per src step but hidden under the otherwise-idle MXU slots.
    er = jnp.dot(hd_ref[...], wer_ref[...],
                 preferred_element_type=jnp.float32)            # (Td, ATT) f32

    bias = adj_ref[...].astype(jnp.float32)                     # 0 = edge, -1e9 = none

    for hd in range(n_heads):
        e = er[:, hd:hd + 1] + el_t[hd:hd + 1, :]               # (Td, Ts) outer sum
        e = jnp.maximum(e, negative_slope * e)                  # leaky_relu, 1 VPU op
        e = e + bias                                            # additive edge mask

        m_prev = m_sc[hd]                                       # (Td, 1)
        m_new = jnp.maximum(m_prev, jnp.max(e, axis=-1, keepdims=True))
        scale = jnp.exp(m_prev - m_new)
        p = jnp.exp(e - m_new)                                  # masked entries -> 0
        l_sc[hd] = scale * l_sc[hd] + jnp.sum(p, axis=-1, keepdims=True)

        feat_h = feat[:, hd * f_out:(hd + 1) * f_out]           # (Ts, F) bf16
        acc_sc[hd] = scale * acc_sc[hd] + jnp.dot(
            p.astype(jnp.bfloat16), feat_h, preferred_element_type=jnp.float32)
        m_sc[hd] = m_new

    # ---- finalize on the last src tile: one lane-dense 128-wide store -------
    @pl.when(j == nj - 1)
    def _finalize():
        td = o_ref.shape[0]
        out_pad = o_ref.shape[1]
        if final:
            # mean over heads, then log_softmax over the real classes
            s = jnp.zeros((td, f_out), jnp.float32)
            for hd in range(n_heads):
                inv_l = pl.reciprocal(jnp.maximum(l_sc[hd], 1e-30), approx=True)
                s = s + acc_sc[hd] * inv_l
            m = s * jnp.float32(1.0 / n_heads)
            m = m - jnp.max(m, axis=-1, keepdims=True)
            logp = m - jnp.log(jnp.sum(jnp.exp(m), axis=-1, keepdims=True))
            slab = jnp.concatenate(
                [logp, jnp.zeros((td, out_pad - f_out), jnp.float32)], axis=-1)
            o_ref[...] = slab.astype(o_ref.dtype)
        else:
            pieces = []
            for hd in range(n_heads):
                inv_l = pl.reciprocal(jnp.maximum(l_sc[hd], 1e-30), approx=True)
                oh = acc_sc[hd] * inv_l
                # overflow-safe ELU
                oh = jnp.where(oh > 0, oh, jnp.exp(jnp.minimum(oh, 0.0)) - 1.0)
                pieces.append(oh)
            pad_cols = out_pad - n_heads * f_out
            if pad_cols:
                pieces.append(jnp.zeros((td, pad_cols), jnp.float32))
            o_ref[...] = jnp.concatenate(pieces, axis=-1).astype(o_ref.dtype)


def gat_layer(w_fe, w_er, adj_bias, h, *, n_heads, f_out, negative_slope,
              final, td=TD, ts=TS):
    """One fused GATConv layer over a padded block graph.

    adj_bias: (Nd_pad, Ns_pad) bf16 additive mask (0 edge / -1e9 no edge).
    h:        (Ns_pad, Din_pad) bf16 padded src features (dst = prefix of src).
    w_fe:     (Din_pad, hf_pad + ATT_PAD) bf16  [feat proj | attn_l folded].
    w_er:     (Din_pad, ATT_PAD) bf16           [attn_r folded into fc_dst].
    Returns (Nd_pad, OUT_PAD):  bf16 ELU'd hidden features, or f32 log-probs.
    """
    nd_pad, ns_pad = adj_bias.shape
    din_pad = h.shape[1]
    hf_pad = w_fe.shape[1] - ATT_PAD
    assert nd_pad % td == 0 and ns_pad % ts == 0
    assert h.shape[0] == ns_pad and nd_pad <= ns_pad
    assert w_fe.shape[0] == din_pad and w_er.shape == (din_pad, ATT_PAD)

    out_dtype = jnp.float32 if final else jnp.bfloat16
    kernel = functools.partial(
        _gat_layer_kernel, n_heads=n_heads, f_out=f_out, hf_pad=hf_pad,
        negative_slope=negative_slope, final=final)

    grid = (nd_pad // td, ns_pad // ts)
    return pl.pallas_call(
        kernel,
        out_shape=jax.ShapeDtypeStruct((nd_pad, OUT_PAD), out_dtype),
        grid_spec=pltpu.PrefetchScalarGridSpec(
            num_scalar_prefetch=0,
            grid=grid,
            in_specs=[
                pl.BlockSpec((td, ts), lambda i, j: (i, j)),           # adj bias stream
                pl.BlockSpec((ts, din_pad), lambda i, j: (j, 0)),      # h_src stream
                pl.BlockSpec((td, din_pad), lambda i, j: (i, 0)),      # h_dst (per-i resident)
                pl.BlockSpec((din_pad, hf_pad + ATT_PAD),
                             lambda i, j: (0, 0)),                     # W [feat|el] resident
                pl.BlockSpec((din_pad, ATT_PAD), lambda i, j: (0, 0)), # W er     resident
            ],
            out_specs=pl.BlockSpec((td, OUT_PAD), lambda i, j: (i, 0)),
            scratch_shapes=[
                pltpu.VMEM((n_heads, td, 1), jnp.float32),      # running max  m
                pltpu.VMEM((n_heads, td, 1), jnp.float32),      # running sum  l
                pltpu.VMEM((n_heads, td, f_out), jnp.float32),  # running acc
            ],
        ),
        compiler_params=pltpu.CompilerParams(
            dimension_semantics=("parallel", "arbitrary"),
            vmem_limit_bytes=32 * 1024 * 1024,
        ),
    )(adj_bias, h, h, w_fe, w_er)


# ---------------------------------------------------------------------------
# GAT model
# ---------------------------------------------------------------------------

def init_gat_params(key, in_feats, n_hidden, n_classes, n_layers, n_heads):
    """Deterministic synthetic weights (DGL GATConv shapes), pre-fused and
    lane-aligned.  Returns (kernel_params, reference_params)."""
    params, params_ref = [], []
    dims = [in_feats] + [n_hidden * n_heads] * (n_layers - 1)
    fouts = [n_hidden] * (n_layers - 1) + [n_classes]
    for layer in range(n_layers):
        d_in, f_out = dims[layer], fouts[layer]
        key, k1, k2, k3, k4 = jax.random.split(key, 5)
        scale = 1.0 / jnp.sqrt(jnp.float32(d_in))
        w_src = jax.random.normal(k1, (d_in, n_heads * f_out), jnp.float32) * scale
        w_dst = jax.random.normal(k2, (d_in, n_heads * f_out), jnp.float32) * scale
        attn_l = jax.random.normal(k3, (n_heads, f_out), jnp.float32) * 0.1
        attn_r = jax.random.normal(k4, (n_heads, f_out), jnp.float32) * 0.1
        # fold attention vectors into extra projection columns (el / er for free)
        w_el = jnp.einsum("dhf,hf->dh", w_src.reshape(d_in, n_heads, f_out), attn_l)
        w_er = jnp.einsum("dhf,hf->dh", w_dst.reshape(d_in, n_heads, f_out), attn_r)

        w_feat_bf = w_src.astype(jnp.bfloat16)
        w_el_bf = w_el.astype(jnp.bfloat16)
        w_er_bf = w_er.astype(jnp.bfloat16)

        d_in_pad = _round_up(d_in, LANE)
        hf_pad = _round_up(n_heads * f_out, LANE)
        # lane-aligned fused weight: feat segment [0:hf_pad), el segment starts
        # at the 128-lane boundary hf_pad.
        w_fe = jnp.zeros((d_in_pad, hf_pad + ATT_PAD), jnp.bfloat16)
        w_fe = w_fe.at[:d_in, :n_heads * f_out].set(w_feat_bf)
        w_fe = w_fe.at[:d_in, hf_pad:hf_pad + n_heads].set(w_el_bf)
        w_er_p = jnp.zeros((d_in_pad, ATT_PAD), jnp.bfloat16)
        w_er_p = w_er_p.at[:d_in, :n_heads].set(w_er_bf)

        params.append({"w_fe": w_fe, "w_er": w_er_p})
        params_ref.append({"w_feat": w_feat_bf.astype(jnp.float32),
                           "w_el": w_el_bf.astype(jnp.float32),
                           "w_er": w_er_bf.astype(jnp.float32)})
    return params, params_ref


def build_adj_bias(adj_mask, td=TD, ts=TS):
    """Dense 0/1 adjacency (Nd, Ns) -> padded additive bf16 bias (Nd_pad, Ns_pad)."""
    nd, ns = adj_mask.shape
    nd_pad, ns_pad = _round_up(nd, td), _round_up(ns, ts)
    bias = jnp.where(adj_mask, 0.0, NEG).astype(jnp.bfloat16)
    return jnp.pad(bias, ((0, nd_pad - nd), (0, ns_pad - ns)), constant_values=NEG)


def gat_forward(params, adj_biases, x, *, n_heads, f_outs, negative_slope=0.2,
                td=TD, ts=TS):
    """adj_biases[i]: padded (Nd_pad, Ns_pad) bf16 additive masks.
    x: (N_src_0, in_feats) float32.  Returns padded (Nd_pad_last, OUT_PAD) log-probs."""
    n_layers = len(params)
    h = x.astype(jnp.bfloat16)
    for i, (p, bias) in enumerate(zip(params, adj_biases)):
        final = i == n_layers - 1
        nd_pad, ns_pad = bias.shape
        din_pad = p["w_fe"].shape[0]
        h = _pad_to(h, ns_pad, din_pad)          # zero rows/cols are masked downstream
        h = gat_layer(p["w_fe"], p["w_er"], bias, h,
                      n_heads=n_heads, f_out=f_outs[i],
                      negative_slope=negative_slope, final=final, td=td, ts=ts)
        # TODO(synk): inter-layer F.dropout(p=0.5) skipped (eval mode -> identity)
        # TODO(synk): residual connection assumed False (matches example config)
    return h


# ---------------------------------------------------------------------------
# Pure-JAX f32 reference (same bf16-rounded weights, dense math)
# ---------------------------------------------------------------------------

def gat_reference(params_ref, adjs, x, *, n_heads, f_outs, negative_slope=0.2):
    h = x
    n_layers = len(params_ref)
    for i, (p, adj) in enumerate(zip(params_ref, adjs)):
        final = i == n_layers - 1
        f_out = f_outs[i]
        nd, ns = adj.shape
        feat_src = (h @ p["w_feat"]).reshape(ns, n_heads, f_out)
        el = h @ p["w_el"]                                   # (ns, H)
        er = h[:nd] @ p["w_er"]                              # (nd, H)
        e = er[:, None, :] + el[None, :, :]                  # (nd, ns, H)
        e = jnp.where(e > 0, e, negative_slope * e)
        mask = adj[:, :, None]
        e = jnp.where(mask, e, -1e30)
        e = e - jnp.max(e, axis=1, keepdims=True)
        pw = jnp.where(mask, jnp.exp(e), 0.0)
        alpha = pw / jnp.maximum(jnp.sum(pw, axis=1, keepdims=True), 1e-30)
        out = jnp.einsum("dsh,shf->dhf", alpha, feat_src)    # (nd, H, F)
        if final:
            m = out.mean(axis=1)
            h = jax.nn.log_softmax(m, axis=-1)
        else:
            out = jnp.where(out > 0, out, jnp.exp(jnp.minimum(out, 0.0)) - 1.0)
            h = out.reshape(nd, n_heads * f_out)
    return h


# ---------------------------------------------------------------------------
# Driver
# ---------------------------------------------------------------------------

if __name__ == "__main__":
    key = jax.random.PRNGKey(0)

    # small config consistent with the module's __init__
    in_feats, n_hidden, n_classes = 16, 8, 4
    n_layers, n_heads = 2, 2
    negative_slope = 0.2

    # synthetic sampled blocks: dst nodes are a prefix of src nodes
    n_src0, n_dst0 = 300, 160      # block 0
    n_src1, n_dst1 = 160, 96       # block 1   (n_src1 == n_dst0)

    key, kx, ka0, ka1, kp = jax.random.split(key, 5)
    x = jax.random.normal(kx, (n_src0, in_feats), jnp.float32)

    def make_adj(k, nd, ns, p=0.05):
        a = jax.random.bernoulli(k, p, (nd, ns))
        idx = jnp.arange(nd)
        a = a.at[idx, idx].set(True)   # self edge: dst j is src j -> rows non-empty
        return a                       # bool 0/1 mask

    adjs = [make_adj(ka0, n_dst0, n_src0), make_adj(ka1, n_dst1, n_src1)]
    adj_biases = [build_adj_bias(a) for a in adjs]   # padded additive bf16 masks

    params, params_ref = init_gat_params(kp, in_feats, n_hidden, n_classes,
                                         n_layers, n_heads)

    f_outs = (n_hidden,) * (n_layers - 1) + (n_classes,)
    fwd = jax.jit(functools.partial(gat_forward, n_heads=n_heads, f_outs=f_outs,
                                    negative_slope=negative_slope))
    out_pad = fwd(params, adj_biases, x)
    out_pad = jax.block_until_ready(out_pad)
    out = out_pad[:n_dst1, :n_classes]               # strip lane/tile padding

    ref = gat_reference(params_ref, adjs, x, n_heads=n_heads, f_outs=f_outs,
                        negative_slope=negative_slope)

    assert out.shape == (n_dst1, n_classes), out.shape
    assert bool(jnp.all(jnp.isfinite(out)))
    # rows of log_softmax must (log-)sum to ~0
    assert bool(jnp.allclose(jnp.sum(jnp.exp(out), axis=-1), 1.0, atol=1e-3))
    # matches the dense f32 reference up to bf16 activation/accumulation noise
    err = float(jnp.max(jnp.abs(out - ref)))
    assert err < 0.25, f"max abs diff vs reference: {err}"
    print("KERNEL_OK")
</pallas_src>

<mosaic_0001>
module attributes {stable_mosaic.version = 11 : i64} {
  func.func @_gat_layer_kernel(%arg0: i32, %arg1: i32, %arg2: memref<64x128xbf16, #tpu.memory_space<vmem>>, %arg3: memref<128x128xbf16, #tpu.memory_space<vmem>>, %arg4: memref<64x128xbf16, #tpu.memory_space<vmem>>, %arg5: memref<128x256xbf16, #tpu.memory_space<vmem>>, %arg6: memref<128x128xbf16, #tpu.memory_space<vmem>>, %arg7: memref<64x128xbf16, #tpu.memory_space<vmem>>, %arg8: memref<2x64x1xf32, #tpu.memory_space<vmem>>, %arg9: memref<2x64x1xf32, #tpu.memory_space<vmem>>, %arg10: memref<2x64x8xf32, #tpu.memory_space<vmem>>) attributes {dimension_semantics = [#tpu.dimension_semantics<parallel>, #tpu.dimension_semantics<arbitrary>], iteration_bounds = array<i64: 3, 3>, scalar_prefetch = 0 : i64, scratch_operands = 3 : i64, tpu.core_type = #tpu.core_type<tc>, window_params = [{transform_indices = @transform_0, window_bounds = array<i64: 64, 128>}, {transform_indices = @transform_1, window_bounds = array<i64: 128, 128>}, {transform_indices = @transform_2, window_bounds = array<i64: 64, 128>}, {pipeline_mode = #tpu.pipeline_mode<synchronous>, transform_indices = @transform_3, window_bounds = array<i64: 128, 256>}, {pipeline_mode = #tpu.pipeline_mode<synchronous>, transform_indices = @transform_4, window_bounds = array<i64: 128, 128>}, {transform_indices = @transform_5, window_bounds = array<i64: 64, 128>}]} {
    %c0_i32 = arith.constant 0 : i32
    %0 = arith.cmpi eq, %arg1, %c0_i32 : i32
    %1 = arith.extui %0 : i1 to i32
    %c0_i32_0 = arith.constant 0 : i32
    %2 = arith.cmpi ne, %1, %c0_i32_0 : i32
    scf.if %2 {
      %cst_55 = arith.constant 0xFF800000 : f32
      %102 = vector.broadcast %cst_55 : f32 to vector<2x64x1xf32>
      %c0_56 = arith.constant 0 : index
      %c0_57 = arith.constant 0 : index
      %c0_58 = arith.constant 0 : index
      %103 = vector.load %arg8[%c0_56, %c0_57, %c0_58] : memref<2x64x1xf32, #tpu.memory_space<vmem>>, vector<2x64x1xf32>
      tpu.vector_store %arg8[%c0_56, %c0_57, %c0_58], %102 {strides = array<i32>} : memref<2x64x1xf32, #tpu.memory_space<vmem>>, vector<2x64x1xf32>,
      %cst_59 = arith.constant 0.000000e+00 : f32
      %104 = vector.broadcast %cst_59 : f32 to vector<2x64x1xf32>
      %c0_60 = arith.constant 0 : index
      %c0_61 = arith.constant 0 : index
      %c0_62 = arith.constant 0 : index
      %105 = vector.load %arg9[%c0_60, %c0_61, %c0_62] : memref<2x64x1xf32, #tpu.memory_space<vmem>>, vector<2x64x1xf32>
      tpu.vector_store %arg9[%c0_60, %c0_61, %c0_62], %104 {strides = array<i32>} : memref<2x64x1xf32, #tpu.memory_space<vmem>>, vector<2x64x1xf32>,
      %cst_63 = arith.constant 0.000000e+00 : f32
      %106 = vector.broadcast %cst_63 : f32 to vector<2x64x8xf32>
      %c0_64 = arith.constant 0 : index
      %c0_65 = arith.constant 0 : index
      %c0_66 = arith.constant 0 : index
      %107 = vector.load %arg10[%c0_64, %c0_65, %c0_66] : memref<2x64x8xf32, #tpu.memory_space<vmem>>, vector<2x64x8xf32>
      tpu.vector_store %arg10[%c0_64, %c0_65, %c0_66], %106 {strides = array<i32>} : memref<2x64x8xf32, #tpu.memory_space<vmem>>, vector<2x64x8xf32>,
    } else {
    }
    %c0 = arith.constant 0 : index
    %c0_1 = arith.constant 0 : index
    %3 = vector.load %arg3[%c0, %c0_1] : memref<128x128xbf16, #tpu.memory_space<vmem>>, vector<128x128xbf16>
    %c0_2 = arith.constant 0 : index
    %c0_3 = arith.constant 0 : index
    %4 = vector.load %arg5[%c0_2, %c0_3] : memref<128x256xbf16, #tpu.memory_space<vmem>>, vector<128x256xbf16>
    %cst = arith.constant dense<0.000000e+00> : vector<128x256xf32>
    %5 = tpu.matmul %3, %4, %cst {dimension_numbers = #tpu.dot_dimension_numbers<[1], [0], [0], [1], [0, 0, 1, 1], [], []>} : vector<128x128xbf16>, vector<128x256xbf16>, vector<128x256xf32> -> vector<128x256xf32>
    %6 = vector.extract_strided_slice %5 {offsets = [0, 0], sizes = [128, 128], strides = [1, 1]} : vector<128x256xf32> to vector<128x128xf32>
    %7 = arith.truncf %6 : vector<128x128xf32> to vector<128x128xbf16>
    %8 = vector.extract_strided_slice %5 {offsets = [0, 128], sizes = [128, 2], strides = [1, 1]} : vector<128x256xf32> to vector<128x2xf32>
    %9 = tpu.transpose %8, [1, 0] : vector<128x2xf32> -> vector<2x128xf32>
    %c0_4 = arith.constant 0 : index
    %c0_5 = arith.constant 0 : index
    %10 = vector.load %arg4[%c0_4, %c0_5] : memref<64x128xbf16, #tpu.memory_space<vmem>>, vector<64x128xbf16>
    %c0_6 = arith.constant 0 : index
    %c0_7 = arith.constant 0 : index
    %11 = vector.load %arg6[%c0_6, %c0_7] : memref<128x128xbf16, #tpu.memory_space<vmem>>, vector<128x128xbf16>
    %cst_8 = arith.constant dense<0.000000e+00> : vector<64x128xf32>
    %12 = tpu.matmul %10, %11, %cst_8 {dimension_numbers = #tpu.dot_dimension_numbers<[1], [0], [0], [1], [0, 0, 1, 1], [], []>} : vector<64x128xbf16>, vector<128x128xbf16>, vector<64x128xf32> -> vector<64x128xf32>
    %c0_9 = arith.constant 0 : index
    %c0_10 = arith.constant 0 : index
    %13 = vector.load %arg2[%c0_9, %c0_10] : memref<64x128xbf16, #tpu.memory_space<vmem>>, vector<64x128xbf16>
    %14 = arith.extf %13 : vector<64x128xbf16> to vector<64x128xf32>
    %15 = vector.extract_strided_slice %12 {offsets = [0, 0], sizes = [64, 1], strides = [1, 1]} : vector<64x128xf32> to vector<64x1xf32>
    %16 = vector.extract_strided_slice %9 {offsets = [0, 0], sizes = [1, 128], strides = [1, 1]} : vector<2x128xf32> to vector<1x128xf32>
    %17 = vector.broadcast %15 : vector<64x1xf32> to vector<64x128xf32>
    %18 = vector.broadcast %16 : vector<1x128xf32> to vector<64x128xf32>
    %19 = arith.addf %17, %18 : vector<64x128xf32>
    %cst_11 = arith.constant 2.000000e-01 : f32
    %20 = vector.broadcast %cst_11 : f32 to vector<64x128xf32>
    %21 = arith.mulf %20, %19 : vector<64x128xf32>
    %22 = arith.maximumf %19, %21 : vector<64x128xf32>
    %23 = arith.addf %22, %14 : vector<64x128xf32>
    %c0_12 = arith.constant 0 : index
    %c0_13 = arith.constant 0 : index
    %c0_14 = arith.constant 0 : index
    %24 = vector.load %arg8[%c0_12, %c0_13, %c0_14] : memref<2x64x1xf32, #tpu.memory_space<vmem>>, vector<1x64x1xf32>
    %25 = vector.shape_cast %24 : vector<1x64x1xf32> to vector<64x1xf32>
    %cst_15 = arith.constant dense<0xFF800000> : vector<64xf32>
    %26 = vector.multi_reduction <maximumf>, %23, %cst_15 [1] : vector<64x128xf32> to vector<64xf32>
    %27 = vector.shape_cast %26 : vector<64xf32> to vector<64x1xf32>
    %28 = arith.maximumf %25, %27 : vector<64x1xf32>
    %29 = arith.subf %25, %28 : vector<64x1xf32>
    %30 = math.exp %29 : vector<64x1xf32>
    %31 = vector.broadcast %28 : vector<64x1xf32> to vector<64x128xf32>
    %32 = arith.subf %23, %31 : vector<64x128xf32>
    %33 = math.exp %32 : vector<64x128xf32>
    %c0_16 = arith.constant 0 : index
    %c0_17 = arith.constant 0 : index
    %c0_18 = arith.constant 0 : index
    %34 = vector.load %arg9[%c0_16, %c0_17, %c0_18] : memref<2x64x1xf32, #tpu.memory_space<vmem>>, vector<1x64x1xf32>
    %35 = vector.shape_cast %34 : vector<1x64x1xf32> to vector<64x1xf32>
    %36 = arith.mulf %30, %35 : vector<64x1xf32>
    %cst_19 = arith.constant dense<0.000000e+00> : vector<64xf32>
    %37 = vector.multi_reduction <add>, %33, %cst_19 [1] : vector<64x128xf32> to vector<64xf32>
    %38 = vector.shape_cast %37 : vector<64xf32> to vector<64x1xf32>
    %39 = arith.addf %36, %38 : vector<64x1xf32>
    %c0_20 = arith.constant 0 : index
    %c0_21 = arith.constant 0 : index
    %c0_22 = arith.constant 0 : index
    %40 = vector.load %arg9[%c0_20, %c0_21, %c0_22] : memref<2x64x1xf32, #tpu.memory_space<vmem>>, vector<1x64x1xf32>
    %41 = vector.shape_cast %40 : vector<1x64x1xf32> to vector<64x1xf32>
    %42 = vector.shape_cast %39 : vector<64x1xf32> to vector<1x64x1xf32>
    tpu.vector_store %arg9[%c0_20, %c0_21, %c0_22], %42 {strides = array<i32>} : memref<2x64x1xf32, #tpu.memory_space<vmem>>, vector<1x64x1xf32>,
    %43 = vector.extract_strided_slice %7 {offsets = [0, 0], sizes = [128, 8], strides = [1, 1]} : vector<128x128xbf16> to vector<128x8xbf16>
    %c0_23 = arith.constant 0 : index
    %c0_24 = arith.constant 0 : index
    %c0_25 = arith.constant 0 : index
    %44 = vector.load %arg10[%c0_23, %c0_24, %c0_25] : memref<2x64x8xf32, #tpu.memory_space<vmem>>, vector<1x64x8xf32>
    %45 = vector.shape_cast %44 : vector<1x64x8xf32> to vector<64x8xf32>
    %46 = vector.broadcast %30 : vector<64x1xf32> to vector<64x8xf32>
    %47 = arith.mulf %46, %45 : vector<64x8xf32>
    %48 = arith.truncf %33 : vector<64x128xf32> to vector<64x128xbf16>
    %cst_26 = arith.constant dense<0.000000e+00> : vector<64x8xf32>
    %49 = tpu.matmul %48, %43, %cst_26 {dimension_numbers = #tpu.dot_dimension_numbers<[1], [0], [0], [1], [0, 0, 1, 1], [], []>} : vector<64x128xbf16>, vector<128x8xbf16>, vector<64x8xf32> -> vector<64x8xf32>
    %50 = arith.addf %47, %49 : vector<64x8xf32>
    %c0_27 = arith.constant 0 : index
    %c0_28 = arith.constant 0 : index
    %c0_29 = arith.constant 0 : index
    %51 = vector.load %arg10[%c0_27, %c0_28, %c0_29] : memref<2x64x8xf32, #tpu.memory_space<vmem>>, vector<1x64x8xf32>
    %52 = vector.shape_cast %51 : vector<1x64x8xf32> to vector<64x8xf32>
    %53 = vector.shape_cast %50 : vector<64x8xf32> to vector<1x64x8xf32>
    tpu.vector_store %arg10[%c0_27, %c0_28, %c0_29], %53 {strides = array<i32>} : memref<2x64x8xf32, #tpu.memory_space<vmem>>, vector<1x64x8xf32>,
    %c0_30 = arith.constant 0 : index
    %c0_31 = arith.constant 0 : index
    %c0_32 = arith.constant 0 : index
    %54 = vector.load %arg8[%c0_30, %c0_31, %c0_32] : memref<2x64x1xf32, #tpu.memory_space<vmem>>, vector<1x64x1xf32>
    %55 = vector.shape_cast %54 : vector<1x64x1xf32> to vector<64x1xf32>
    %56 = vector.shape_cast %28 : vector<64x1xf32> to vector<1x64x1xf32>
    tpu.vector_store %arg8[%c0_30, %c0_31, %c0_32], %56 {strides = array<i32>} : memref<2x64x1xf32, #tpu.memory_space<vmem>>, vector<1x64x1xf32>,
    %57 = vector.extract_strided_slice %12 {offsets = [0, 1], sizes = [64, 1], strides = [1, 1]} : vector<64x128xf32> to vector<64x1xf32>
    %58 = vector.extract_strided_slice %9 {offsets = [1, 0], sizes = [1, 128], strides = [1, 1]} : vector<2x128xf32> to vector<1x128xf32>
    %59 = vector.broadcast %57 : vector<64x1xf32> to vector<64x128xf32>
    %60 = vector.broadcast %58 : vector<1x128xf32> to vector<64x128xf32>
    %61 = arith.addf %59, %60 : vector<64x128xf32>
    %cst_33 = arith.constant 2.000000e-01 : f32
    %62 = vector.broadcast %cst_33 : f32 to vector<64x128xf32>
    %63 = arith.mulf %62, %61 : vector<64x128xf32>
    %64 = arith.maximumf %61, %63 : vector<64x128xf32>
    %65 = arith.addf %64, %14 : vector<64x128xf32>
    %c1 = arith.constant 1 : index
    %c0_34 = arith.constant 0 : index
    %c0_35 = arith.constant 0 : index
    %66 = vector.load %arg8[%c1, %c0_34, %c0_35] : memref<2x64x1xf32, #tpu.memory_space<vmem>>, vector<1x64x1xf32>
    %67 = vector.shape_cast %66 : vector<1x64x1xf32> to vector<64x1xf32>
    %cst_36 = arith.constant dense<0xFF800000> : vector<64xf32>
    %68 = vector.multi_reduction <maximumf>, %65, %cst_36 [1] : vector<64x128xf32> to vector<64xf32>
    %69 = vector.shape_cast %68 : vector<64xf32> to vector<64x1xf32>
    %70 = arith.maximumf %67, %69 : vector<64x1xf32>
    %71 = arith.subf %67, %70 : vector<64x1xf32>
    %72 = math.exp %71 : vector<64x1xf32>
    %73 = vector.broadcast %70 : vector<64x1xf32> to vector<64x128xf32>
    %74 = arith.subf %65, %73 : vector<64x128xf32>
    %75 = math.exp %74 : vector<64x128xf32>
    %c1_37 = arith.constant 1 : index
    %c0_38 = arith.constant 0 : index
    %c0_39 = arith.constant 0 : index
    %76 = vector.load %arg9[%c1_37, %c0_38, %c0_39] : memref<2x64x1xf32, #tpu.memory_space<vmem>>, vector<1x64x1xf32>
    %77 = vector.shape_cast %76 : vector<1x64x1xf32> to vector<64x1xf32>
    %78 = arith.mulf %72, %77 : vector<64x1xf32>
    %cst_40 = arith.constant dense<0.000000e+00> : vector<64xf32>
    %79 = vector.multi_reduction <add>, %75, %cst_40 [1] : vector<64x128xf32> to vector<64xf32>
    %80 = vector.shape_cast %79 : vector<64xf32> to vector<64x1xf32>
    %81 = arith.addf %78, %80 : vector<64x1xf32>
    %c1_41 = arith.constant 1 : index
    %c0_42 = arith.constant 0 : index
    %c0_43 = arith.constant 0 : index
    %82 = vector.load %arg9[%c1_41, %c0_42, %c0_43] : memref<2x64x1xf32, #tpu.memory_space<vmem>>, vector<1x64x1xf32>
    %83 = vector.shape_cast %82 : vector<1x64x1xf32> to vector<64x1xf32>
    %84 = vector.shape_cast %81 : vector<64x1xf32> to vector<1x64x1xf32>
    tpu.vector_store %arg9[%c1_41, %c0_42, %c0_43], %84 {strides = array<i32>} : memref<2x64x1xf32, #tpu.memory_space<vmem>>, vector<1x64x1xf32>,
    %85 = vector.extract_strided_slice %7 {offsets = [0, 8], sizes = [128, 8], strides = [1, 1]} : vector<128x128xbf16> to vector<128x8xbf16>
    %c1_44 = arith.constant 1 : index
    %c0_45 = arith.constant 0 : index
    %c0_46 = arith.constant 0 : index
    %86 = vector.load %arg10[%c1_44, %c0_45, %c0_46] : memref<2x64x8xf32, #tpu.memory_space<vmem>>, vector<1x64x8xf32>
    %87 = vector.shape_cast %86 : vector<1x64x8xf32> to vector<64x8xf32>
    %88 = vector.broadcast %72 : vector<64x1xf32> to vector<64x8xf32>
    %89 = arith.mulf %88, %87 : vector<64x8xf32>
    %90 = arith.truncf %75 : vector<64x128xf32> to vector<64x128xbf16>
    %cst_47 = arith.constant dense<0.000000e+00> : vector<64x8xf32>
    %91 = tpu.matmul %90, %85, %cst_47 {dimension_numbers = #tpu.dot_dimension_numbers<[1], [0], [0], [1], [0, 0, 1, 1], [], []>} : vector<64x128xbf16>, vector<128x8xbf16>, vector<64x8xf32> -> vector<64x8xf32>
    %92 = arith.addf %89, %91 : vector<64x8xf32>
    %c1_48 = arith.constant 1 : index
    %c0_49 = arith.constant 0 : index
    %c0_50 = arith.constant 0 : index
    %93 = vector.load %arg10[%c1_48, %c0_49, %c0_50] : memref<2x64x8xf32, #tpu.memory_space<vmem>>, vector<1x64x8xf32>
    %94 = vector.shape_cast %93 : vector<1x64x8xf32> to vector<64x8xf32>
    %95 = vector.shape_cast %92 : vector<64x8xf32> to vector<1x64x8xf32>
    tpu.vector_store %arg10[%c1_48, %c0_49, %c0_50], %95 {strides = array<i32>} : memref<2x64x8xf32, #tpu.memory_space<vmem>>, vector<1x64x8xf32>,
    %c1_51 = arith.constant 1 : index
    %c0_52 = arith.constant 0 : index
    %c0_53 = arith.constant 0 : index
    %96 = vector.load %arg8[%c1_51, %c0_52, %c0_53] : memref<2x64x1xf32, #tpu.memory_space<vmem>>, vector<1x64x1xf32>
    %97 = vector.shape_cast %96 : vector<1x64x1xf32> to vector<64x1xf32>
    %98 = vector.shape_cast %70 : vector<64x1xf32> to vector<1x64x1xf32>
    tpu.vector_store %arg8[%c1_51, %c0_52, %c0_53], %98 {strides = array<i32>} : memref<2x64x1xf32, #tpu.memory_space<vmem>>, vector<1x64x1xf32>,
    %c2_i32 = arith.constant 2 : i32
    %99 = arith.cmpi eq, %arg1, %c2_i32 : i32
    %100 = arith.extui %99 : i1 to i32
    %c0_i32_54 = arith.constant 0 : i32
    %101 = arith.cmpi ne, %100, %c0_i32_54 : i32
    scf.if %101 {
      %c0_55 = arith.constant 0 : index
      %c0_56 = arith.constant 0 : index
      %c0_57 = arith.constant 0 : index
      %102 = vector.load %arg9[%c0_55, %c0_56, %c0_57] : memref<2x64x1xf32, #tpu.memory_space<vmem>>, vector<1x64x1xf32>
      %103 = vector.shape_cast %102 : vector<1x64x1xf32> to vector<64x1xf32>
      %cst_58 = arith.constant 1.000000e-30 : f32
      %104 = vector.broadcast %cst_58 : f32 to vector<64x1xf32>
      %105 = arith.maximumf %103, %104 : vector<64x1xf32>
      %106 = tpu.reciprocal %105 {approx = true} : vector<64x1xf32> -> vector<64x1xf32>
      %c0_59 = arith.constant 0 : index
      %c0_60 = arith.constant 0 : index
      %c0_61 = arith.constant 0 : index
      %107 = vector.load %arg10[%c0_59, %c0_60, %c0_61] : memref<2x64x8xf32, #tpu.memory_space<vmem>>, vector<1x64x8xf32>
      %108 = vector.shape_cast %107 : vector<1x64x8xf32> to vector<64x8xf32>
      %109 = vector.broadcast %106 : vector<64x1xf32> to vector<64x8xf32>
      %110 = arith.mulf %108, %109 : vector<64x8xf32>
      %cst_62 = arith.constant 0.000000e+00 : f32
      %111 = vector.broadcast %cst_62 : f32 to vector<64x8xf32>
      %112 = arith.cmpf ogt, %110, %111 : vector<64x8xf32>
      %cst_63 = arith.constant 0.000000e+00 : f32
      %113 = vector.broadcast %cst_63 : f32 to vector<64x8xf32>
      %114 = arith.minimumf %110, %113 : vector<64x8xf32>
      %115 = math.exp %114 : vector<64x8xf32>
      %cst_64 = arith.constant 1.000000e+00 : f32
      %116 = vector.broadcast %cst_64 : f32 to vector<64x8xf32>
      %117 = arith.subf %115, %116 : vector<64x8xf32>
      %118 = arith.select %112, %110, %117 : vector<64x8xi1>, vector<64x8xf32>
      %c1_65 = arith.constant 1 : index
      %c0_66 = arith.constant 0 : index
      %c0_67 = arith.constant 0 : index
      %119 = vector.load %arg9[%c1_65, %c0_66, %c0_67] : memref<2x64x1xf32, #tpu.memory_space<vmem>>, vector<1x64x1xf32>
      %120 = vector.shape_cast %119 : vector<1x64x1xf32> to vector<64x1xf32>
      %cst_68 = arith.constant 1.000000e-30 : f32
      %121 = vector.broadcast %cst_68 : f32 to vector<64x1xf32>
      %122 = arith.maximumf %120, %121 : vector<64x1xf32>
      %123 = tpu.reciprocal %122 {approx = true} : vector<64x1xf32> -> vector<64x1xf32>
      %c1_69 = arith.constant 1 : index
      %c0_70 = arith.constant 0 : index
      %c0_71 = arith.constant 0 : index
      %124 = vector.load %arg10[%c1_69, %c0_70, %c0_71] : memref<2x64x8xf32, #tpu.memory_space<vmem>>, vector<1x64x8xf32>
      %125 = vector.shape_cast %124 : vector<1x64x8xf32> to vector<64x8xf32>
      %126 = vector.broadcast %123 : vector<64x1xf32> to vector<64x8xf32>
      %127 = arith.mulf %125, %126 : vector<64x8xf32>
      %cst_72 = arith.constant 0.000000e+00 : f32
      %128 = vector.broadcast %cst_72 : f32 to vector<64x8xf32>
      %129 = arith.cmpf ogt, %127, %128 : vector<64x8xf32>
      %cst_73 = arith.constant 0.000000e+00 : f32
      %130 = vector.broadcast %cst_73 : f32 to vector<64x8xf32>
      %131 = arith.minimumf %127, %130 : vector<64x8xf32>
      %132 = math.exp %131 : vector<64x8xf32>
      %cst_74 = arith.constant 1.000000e+00 : f32
      %133 = vector.broadcast %cst_74 : f32 to vector<64x8xf32>
      %134 = arith.subf %132, %133 : vector<64x8xf32>
      %135 = arith.select %129, %127, %134 : vector<64x8xi1>, vector<64x8xf32>
      %cst_75 = arith.constant 0.000000e+00 : f32
      %136 = vector.broadcast %cst_75 : f32 to vector<64x112xf32>
      %137 = tpu.concatenate %118, %135, %136 in 1 : vector<64x8xf32>, vector<64x8xf32>, vector<64x112xf32> -> vector<64x128xf32>
      %138 = arith.truncf %137 : vector<64x128xf32> to vector<64x128xbf16>
      %c0_76 = arith.constant 0 : index
      %c0_77 = arith.constant 0 : index
      %139 = vector.load %arg7[%c0_76, %c0_77] : memref<64x128xbf16, #tpu.memory_space<vmem>>, vector<64x128xbf16>
      tpu.vector_store %arg7[%c0_76, %c0_77], %138 {strides = array<i32>} : memref<64x128xbf16, #tpu.memory_space<vmem>>, vector<64x128xbf16>,
    } else {
    }
    return
  }
  func.func @transform_0(%arg0: i32, %arg1: i32) -> (i32, i32) {
    %c0_i32 = arith.constant 0 : i32
    return %arg0, %arg1 : i32, i32
  }
  func.func @transform_1(%arg0: i32, %arg1: i32) -> (i32, i32) {
    %c0_i32 = arith.constant 0 : i32
    %c0_i32_0 = arith.constant 0 : i32
    return %arg1, %c0_i32 : i32, i32
  }
  func.func @transform_2(%arg0: i32, %arg1: i32) -> (i32, i32) {
    %c0_i32 = arith.constant 0 : i32
    %c0_i32_0 = arith.constant 0 : i32
    return %arg0, %c0_i32 : i32, i32
  }
  func.func @transform_3(%arg0: i32, %arg1: i32) -> (i32, i32) {
    %c0_i32 = arith.constant 0 : i32
    %c0_i32_0 = arith.constant 0 : i32
    %c0_i32_1 = arith.constant 0 : i32
    return %c0_i32, %c0_i32_0 : i32, i32
  }
  func.func @transform_4(%arg0: i32, %arg1: i32) -> (i32, i32) {
    %c0_i32 = arith.constant 0 : i32
    %c0_i32_0 = arith.constant 0 : i32
    %c0_i32_1 = arith.constant 0 : i32
    return %c0_i32, %c0_i32_0 : i32, i32
  }
  func.func @transform_5(%arg0: i32, %arg1: i32) -> (i32, i32) {
    %c0_i32 = arith.constant 0 : i32
    %c0_i32_0 = arith.constant 0 : i32
    return %arg0, %c0_i32 : i32, i32
  }
}

module attributes {stable_mosaic.version = 11 : i64} {
  func.func @_gat_layer_kernel(%arg0: i32, %arg1: i32, %arg2: memref<64x128xbf16, #tpu.memory_space<vmem>>, %arg3: memref<128x128xbf16, #tpu.memory_space<vmem>>, %arg4: memref<64x128xbf16, #tpu.memory_space<vmem>>, %arg5: memref<128x256xbf16, #tpu.memory_space<vmem>>, %arg6: memref<128x128xbf16, #tpu.memory_space<vmem>>, %arg7: memref<64x128xf32, #tpu.memory_space<vmem>>, %arg8: memref<2x64x1xf32, #tpu.memory_space<vmem>>, %arg9: memref<2x64x1xf32, #tpu.memory_space<vmem>>, %arg10: memref<2x64x4xf32, #tpu.memory_space<vmem>>) attributes {dimension_semantics = [#tpu.dimension_semantics<parallel>, #tpu.dimension_semantics<arbitrary>], iteration_bounds = array<i64: 2, 2>, scalar_prefetch = 0 : i64, scratch_operands = 3 : i64, tpu.core_type = #tpu.core_type<tc>, window_params = [{transform_indices = @transform_0, window_bounds = array<i64: 64, 128>}, {transform_indices = @transform_1, window_bounds = array<i64: 128, 128>}, {transform_indices = @transform_2, window_bounds = array<i64: 64, 128>}, {pipeline_mode = #tpu.pipeline_mode<synchronous>, transform_indices = @transform_3, window_bounds = array<i64: 128, 256>}, {pipeline_mode = #tpu.pipeline_mode<synchronous>, transform_indices = @transform_4, window_bounds = array<i64: 128, 128>}, {transform_indices = @transform_5, window_bounds = array<i64: 64, 128>}]} {
    %c0_i32 = arith.constant 0 : i32
    %0 = arith.cmpi eq, %arg1, %c0_i32 : i32
    %1 = arith.extui %0 : i1 to i32
    %c0_i32_0 = arith.constant 0 : i32
    %2 = arith.cmpi ne, %1, %c0_i32_0 : i32
    scf.if %2 {
      %cst_55 = arith.constant 0xFF800000 : f32
      %102 = vector.broadcast %cst_55 : f32 to vector<2x64x1xf32>
      %c0_56 = arith.constant 0 : index
      %c0_57 = arith.constant 0 : index
      %c0_58 = arith.constant 0 : index
      %103 = vector.load %arg8[%c0_56, %c0_57, %c0_58] : memref<2x64x1xf32, #tpu.memory_space<vmem>>, vector<2x64x1xf32>
      tpu.vector_store %arg8[%c0_56, %c0_57, %c0_58], %102 {strides = array<i32>} : memref<2x64x1xf32, #tpu.memory_space<vmem>>, vector<2x64x1xf32>,
      %cst_59 = arith.constant 0.000000e+00 : f32
      %104 = vector.broadcast %cst_59 : f32 to vector<2x64x1xf32>
      %c0_60 = arith.constant 0 : index
      %c0_61 = arith.constant 0 : index
      %c0_62 = arith.constant 0 : index
      %105 = vector.load %arg9[%c0_60, %c0_61, %c0_62] : memref<2x64x1xf32, #tpu.memory_space<vmem>>, vector<2x64x1xf32>
      tpu.vector_store %arg9[%c0_60, %c0_61, %c0_62], %104 {strides = array<i32>} : memref<2x64x1xf32, #tpu.memory_space<vmem>>, vector<2x64x1xf32>,
      %cst_63 = arith.constant 0.000000e+00 : f32
      %106 = vector.broadcast %cst_63 : f32 to vector<2x64x4xf32>
      %c0_64 = arith.constant 0 : index
      %c0_65 = arith.constant 0 : index
      %c0_66 = arith.constant 0 : index
      %107 = vector.load %arg10[%c0_64, %c0_65, %c0_66] : memref<2x64x4xf32, #tpu.memory_space<vmem>>, vector<2x64x4xf32>
      tpu.vector_store %arg10[%c0_64, %c0_65, %c0_66], %106 {strides = array<i32>} : memref<2x64x4xf32, #tpu.memory_space<vmem>>, vector<2x64x4xf32>,
    } else {
    }
    %c0 = arith.constant 0 : index
    %c0_1 = arith.constant 0 : index
    %3 = vector.load %arg3[%c0, %c0_1] : memref<128x128xbf16, #tpu.memory_space<vmem>>, vector<128x128xbf16>
    %c0_2 = arith.constant 0 : index
    %c0_3 = arith.constant 0 : index
    %4 = vector.load %arg5[%c0_2, %c0_3] : memref<128x256xbf16, #tpu.memory_space<vmem>>, vector<128x256xbf16>
    %cst = arith.constant dense<0.000000e+00> : vector<128x256xf32>
    %5 = tpu.matmul %3, %4, %cst {dimension_numbers = #tpu.dot_dimension_numbers<[1], [0], [0], [1], [0, 0, 1, 1], [], []>} : vector<128x128xbf16>, vector<128x256xbf16>, vector<128x256xf32> -> vector<128x256xf32>
    %6 = vector.extract_strided_slice %5 {offsets = [0, 0], sizes = [128, 128], strides = [1, 1]} : vector<128x256xf32> to vector<128x128xf32>
    %7 = arith.truncf %6 : vector<128x128xf32> to vector<128x128xbf16>
    %8 = vector.extract_strided_slice %5 {offsets = [0, 128], sizes = [128, 2], strides = [1, 1]} : vector<128x256xf32> to vector<128x2xf32>
    %9 = tpu.transpose %8, [1, 0] : vector<128x2xf32> -> vector<2x128xf32>
    %c0_4 = arith.constant 0 : index
    %c0_5 = arith.constant 0 : index
    %10 = vector.load %arg4[%c0_4, %c0_5] : memref<64x128xbf16, #tpu.memory_space<vmem>>, vector<64x128xbf16>
    %c0_6 = arith.constant 0 : index
    %c0_7 = arith.constant 0 : index
    %11 = vector.load %arg6[%c0_6, %c0_7] : memref<128x128xbf16, #tpu.memory_space<vmem>>, vector<128x128xbf16>
    %cst_8 = arith.constant dense<0.000000e+00> : vector<64x128xf32>
    %12 = tpu.matmul %10, %11, %cst_8 {dimension_numbers = #tpu.dot_dimension_numbers<[1], [0], [0], [1], [0, 0, 1, 1], [], []>} : vector<64x128xbf16>, vector<128x128xbf16>, vector<64x128xf32> -> vector<64x128xf32>
    %c0_9 = arith.constant 0 : index
    %c0_10 = arith.constant 0 : index
    %13 = vector.load %arg2[%c0_9, %c0_10] : memref<64x128xbf16, #tpu.memory_space<vmem>>, vector<64x128xbf16>
    %14 = arith.extf %13 : vector<64x128xbf16> to vector<64x128xf32>
    %15 = vector.extract_strided_slice %12 {offsets = [0, 0], sizes = [64, 1], strides = [1, 1]} : vector<64x128xf32> to vector<64x1xf32>
    %16 = vector.extract_strided_slice %9 {offsets = [0, 0], sizes = [1, 128], strides = [1, 1]} : vector<2x128xf32> to vector<1x128xf32>
    %17 = vector.broadcast %15 : vector<64x1xf32> to vector<64x128xf32>
    %18 = vector.broadcast %16 : vector<1x128xf32> to vector<64x128xf32>
    %19 = arith.addf %17, %18 : vector<64x128xf32>
    %cst_11 = arith.constant 2.000000e-01 : f32
    %20 = vector.broadcast %cst_11 : f32 to vector<64x128xf32>
    %21 = arith.mulf %20, %19 : vector<64x128xf32>
    %22 = arith.maximumf %19, %21 : vector<64x128xf32>
    %23 = arith.addf %22, %14 : vector<64x128xf32>
    %c0_12 = arith.constant 0 : index
    %c0_13 = arith.constant 0 : index
    %c0_14 = arith.constant 0 : index
    %24 = vector.load %arg8[%c0_12, %c0_13, %c0_14] : memref<2x64x1xf32, #tpu.memory_space<vmem>>, vector<1x64x1xf32>
    %25 = vector.shape_cast %24 : vector<1x64x1xf32> to vector<64x1xf32>
    %cst_15 = arith.constant dense<0xFF800000> : vector<64xf32>
    %26 = vector.multi_reduction <maximumf>, %23, %cst_15 [1] : vector<64x128xf32> to vector<64xf32>
    %27 = vector.shape_cast %26 : vector<64xf32> to vector<64x1xf32>
    %28 = arith.maximumf %25, %27 : vector<64x1xf32>
    %29 = arith.subf %25, %28 : vector<64x1xf32>
    %30 = math.exp %29 : vector<64x1xf32>
    %31 = vector.broadcast %28 : vector<64x1xf32> to vector<64x128xf32>
    %32 = arith.subf %23, %31 : vector<64x128xf32>
    %33 = math.exp %32 : vector<64x128xf32>
    %c0_16 = arith.constant 0 : index
    %c0_17 = arith.constant 0 : index
    %c0_18 = arith.constant 0 : index
    %34 = vector.load %arg9[%c0_16, %c0_17, %c0_18] : memref<2x64x1xf32, #tpu.memory_space<vmem>>, vector<1x64x1xf32>
    %35 = vector.shape_cast %34 : vector<1x64x1xf32> to vector<64x1xf32>
    %36 = arith.mulf %30, %35 : vector<64x1xf32>
    %cst_19 = arith.constant dense<0.000000e+00> : vector<64xf32>
    %37 = vector.multi_reduction <add>, %33, %cst_19 [1] : vector<64x128xf32> to vector<64xf32>
    %38 = vector.shape_cast %37 : vector<64xf32> to vector<64x1xf32>
    %39 = arith.addf %36, %38 : vector<64x1xf32>
    %c0_20 = arith.constant 0 : index
    %c0_21 = arith.constant 0 : index
    %c0_22 = arith.constant 0 : index
    %40 = vector.load %arg9[%c0_20, %c0_21, %c0_22] : memref<2x64x1xf32, #tpu.memory_space<vmem>>, vector<1x64x1xf32>
    %41 = vector.shape_cast %40 : vector<1x64x1xf32> to vector<64x1xf32>
    %42 = vector.shape_cast %39 : vector<64x1xf32> to vector<1x64x1xf32>
    tpu.vector_store %arg9[%c0_20, %c0_21, %c0_22], %42 {strides = array<i32>} : memref<2x64x1xf32, #tpu.memory_space<vmem>>, vector<1x64x1xf32>,
    %43 = vector.extract_strided_slice %7 {offsets = [0, 0], sizes = [128, 4], strides = [1, 1]} : vector<128x128xbf16> to vector<128x4xbf16>
    %c0_23 = arith.constant 0 : index
    %c0_24 = arith.constant 0 : index
    %c0_25 = arith.constant 0 : index
    %44 = vector.load %arg10[%c0_23, %c0_24, %c0_25] : memref<2x64x4xf32, #tpu.memory_space<vmem>>, vector<1x64x4xf32>
    %45 = vector.shape_cast %44 : vector<1x64x4xf32> to vector<64x4xf32>
    %46 = vector.broadcast %30 : vector<64x1xf32> to vector<64x4xf32>
    %47 = arith.mulf %46, %45 : vector<64x4xf32>
    %48 = arith.truncf %33 : vector<64x128xf32> to vector<64x128xbf16>
    %cst_26 = arith.constant dense<0.000000e+00> : vector<64x4xf32>
    %49 = tpu.matmul %48, %43, %cst_26 {dimension_numbers = #tpu.dot_dimension_numbers<[1], [0], [0], [1], [0, 0, 1, 1], [], []>} : vector<64x128xbf16>, vector<128x4xbf16>, vector<64x4xf32> -> vector<64x4xf32>
    %50 = arith.addf %47, %49 : vector<64x4xf32>
    %c0_27 = arith.constant 0 : index
    %c0_28 = arith.constant 0 : index
    %c0_29 = arith.constant 0 : index
    %51 = vector.load %arg10[%c0_27, %c0_28, %c0_29] : memref<2x64x4xf32, #tpu.memory_space<vmem>>, vector<1x64x4xf32>
    %52 = vector.shape_cast %51 : vector<1x64x4xf32> to vector<64x4xf32>
    %53 = vector.shape_cast %50 : vector<64x4xf32> to vector<1x64x4xf32>
    tpu.vector_store %arg10[%c0_27, %c0_28, %c0_29], %53 {strides = array<i32>} : memref<2x64x4xf32, #tpu.memory_space<vmem>>, vector<1x64x4xf32>,
    %c0_30 = arith.constant 0 : index
    %c0_31 = arith.constant 0 : index
    %c0_32 = arith.constant 0 : index
    %54 = vector.load %arg8[%c0_30, %c0_31, %c0_32] : memref<2x64x1xf32, #tpu.memory_space<vmem>>, vector<1x64x1xf32>
    %55 = vector.shape_cast %54 : vector<1x64x1xf32> to vector<64x1xf32>
    %56 = vector.shape_cast %28 : vector<64x1xf32> to vector<1x64x1xf32>
    tpu.vector_store %arg8[%c0_30, %c0_31, %c0_32], %56 {strides = array<i32>} : memref<2x64x1xf32, #tpu.memory_space<vmem>>, vector<1x64x1xf32>,
    %57 = vector.extract_strided_slice %12 {offsets = [0, 1], sizes = [64, 1], strides = [1, 1]} : vector<64x128xf32> to vector<64x1xf32>
    %58 = vector.extract_strided_slice %9 {offsets = [1, 0], sizes = [1, 128], strides = [1, 1]} : vector<2x128xf32> to vector<1x128xf32>
    %59 = vector.broadcast %57 : vector<64x1xf32> to vector<64x128xf32>
    %60 = vector.broadcast %58 : vector<1x128xf32> to vector<64x128xf32>
    %61 = arith.addf %59, %60 : vector<64x128xf32>
    %cst_33 = arith.constant 2.000000e-01 : f32
    %62 = vector.broadcast %cst_33 : f32 to vector<64x128xf32>
    %63 = arith.mulf %62, %61 : vector<64x128xf32>
    %64 = arith.maximumf %61, %63 : vector<64x128xf32>
    %65 = arith.addf %64, %14 : vector<64x128xf32>
    %c1 = arith.constant 1 : index
    %c0_34 = arith.constant 0 : index
    %c0_35 = arith.constant 0 : index
    %66 = vector.load %arg8[%c1, %c0_34, %c0_35] : memref<2x64x1xf32, #tpu.memory_space<vmem>>, vector<1x64x1xf32>
    %67 = vector.shape_cast %66 : vector<1x64x1xf32> to vector<64x1xf32>
    %cst_36 = arith.constant dense<0xFF800000> : vector<64xf32>
    %68 = vector.multi_reduction <maximumf>, %65, %cst_36 [1] : vector<64x128xf32> to vector<64xf32>
    %69 = vector.shape_cast %68 : vector<64xf32> to vector<64x1xf32>
    %70 = arith.maximumf %67, %69 : vector<64x1xf32>
    %71 = arith.subf %67, %70 : vector<64x1xf32>
    %72 = math.exp %71 : vector<64x1xf32>
    %73 = vector.broadcast %70 : vector<64x1xf32> to vector<64x128xf32>
    %74 = arith.subf %65, %73 : vector<64x128xf32>
    %75 = math.exp %74 : vector<64x128xf32>
    %c1_37 = arith.constant 1 : index
    %c0_38 = arith.constant 0 : index
    %c0_39 = arith.constant 0 : index
    %76 = vector.load %arg9[%c1_37, %c0_38, %c0_39] : memref<2x64x1xf32, #tpu.memory_space<vmem>>, vector<1x64x1xf32>
    %77 = vector.shape_cast %76 : vector<1x64x1xf32> to vector<64x1xf32>
    %78 = arith.mulf %72, %77 : vector<64x1xf32>
    %cst_40 = arith.constant dense<0.000000e+00> : vector<64xf32>
    %79 = vector.multi_reduction <add>, %75, %cst_40 [1] : vector<64x128xf32> to vector<64xf32>
    %80 = vector.shape_cast %79 : vector<64xf32> to vector<64x1xf32>
    %81 = arith.addf %78, %80 : vector<64x1xf32>
    %c1_41 = arith.constant 1 : index
    %c0_42 = arith.constant 0 : index
    %c0_43 = arith.constant 0 : index
    %82 = vector.load %arg9[%c1_41, %c0_42, %c0_43] : memref<2x64x1xf32, #tpu.memory_space<vmem>>, vector<1x64x1xf32>
    %83 = vector.shape_cast %82 : vector<1x64x1xf32> to vector<64x1xf32>
    %84 = vector.shape_cast %81 : vector<64x1xf32> to vector<1x64x1xf32>
    tpu.vector_store %arg9[%c1_41, %c0_42, %c0_43], %84 {strides = array<i32>} : memref<2x64x1xf32, #tpu.memory_space<vmem>>, vector<1x64x1xf32>,
    %85 = vector.extract_strided_slice %7 {offsets = [0, 4], sizes = [128, 4], strides = [1, 1]} : vector<128x128xbf16> to vector<128x4xbf16>
    %c1_44 = arith.constant 1 : index
    %c0_45 = arith.constant 0 : index
    %c0_46 = arith.constant 0 : index
    %86 = vector.load %arg10[%c1_44, %c0_45, %c0_46] : memref<2x64x4xf32, #tpu.memory_space<vmem>>, vector<1x64x4xf32>
    %87 = vector.shape_cast %86 : vector<1x64x4xf32> to vector<64x4xf32>
    %88 = vector.broadcast %72 : vector<64x1xf32> to vector<64x4xf32>
    %89 = arith.mulf %88, %87 : vector<64x4xf32>
    %90 = arith.truncf %75 : vector<64x128xf32> to vector<64x128xbf16>
    %cst_47 = arith.constant dense<0.000000e+00> : vector<64x4xf32>
    %91 = tpu.matmul %90, %85, %cst_47 {dimension_numbers = #tpu.dot_dimension_numbers<[1], [0], [0], [1], [0, 0, 1, 1], [], []>} : vector<64x128xbf16>, vector<128x4xbf16>, vector<64x4xf32> -> vector<64x4xf32>
    %92 = arith.addf %89, %91 : vector<64x4xf32>
    %c1_48 = arith.constant 1 : index
    %c0_49 = arith.constant 0 : index
    %c0_50 = arith.constant 0 : index
    %93 = vector.load %arg10[%c1_48, %c0_49, %c0_50] : memref<2x64x4xf32, #tpu.memory_space<vmem>>, vector<1x64x4xf32>
    %94 = vector.shape_cast %93 : vector<1x64x4xf32> to vector<64x4xf32>
    %95 = vector.shape_cast %92 : vector<64x4xf32> to vector<1x64x4xf32>
    tpu.vector_store %arg10[%c1_48, %c0_49, %c0_50], %95 {strides = array<i32>} : memref<2x64x4xf32, #tpu.memory_space<vmem>>, vector<1x64x4xf32>,
    %c1_51 = arith.constant 1 : index
    %c0_52 = arith.constant 0 : index
    %c0_53 = arith.constant 0 : index
    %96 = vector.load %arg8[%c1_51, %c0_52, %c0_53] : memref<2x64x1xf32, #tpu.memory_space<vmem>>, vector<1x64x1xf32>
    %97 = vector.shape_cast %96 : vector<1x64x1xf32> to vector<64x1xf32>
    %98 = vector.shape_cast %70 : vector<64x1xf32> to vector<1x64x1xf32>
    tpu.vector_store %arg8[%c1_51, %c0_52, %c0_53], %98 {strides = array<i32>} : memref<2x64x1xf32, #tpu.memory_space<vmem>>, vector<1x64x1xf32>,
    %c1_i32 = arith.constant 1 : i32
    %99 = arith.cmpi eq, %arg1, %c1_i32 : i32
    %100 = arith.extui %99 : i1 to i32
    %c0_i32_54 = arith.constant 0 : i32
    %101 = arith.cmpi ne, %100, %c0_i32_54 : i32
    scf.if %101 {
      %cst_55 = arith.constant 0.000000e+00 : f32
      %102 = vector.broadcast %cst_55 : f32 to vector<64x4xf32>
      %c0_56 = arith.constant 0 : index
      %c0_57 = arith.constant 0 : index
      %c0_58 = arith.constant 0 : index
      %103 = vector.load %arg9[%c0_56, %c0_57, %c0_58] : memref<2x64x1xf32, #tpu.memory_space<vmem>>, vector<1x64x1xf32>
      %104 = vector.shape_cast %103 : vector<1x64x1xf32> to vector<64x1xf32>
      %cst_59 = arith.constant 1.000000e-30 : f32
      %105 = vector.broadcast %cst_59 : f32 to vector<64x1xf32>
      %106 = arith.maximumf %104, %105 : vector<64x1xf32>
      %107 = tpu.reciprocal %106 {approx = true} : vector<64x1xf32> -> vector<64x1xf32>
      %c0_60 = arith.constant 0 : index
      %c0_61 = arith.constant 0 : index
      %c0_62 = arith.constant 0 : index
      %108 = vector.load %arg10[%c0_60, %c0_61, %c0_62] : memref<2x64x4xf32, #tpu.memory_space<vmem>>, vector<1x64x4xf32>
      %109 = vector.shape_cast %108 : vector<1x64x4xf32> to vector<64x4xf32>
      %110 = vector.broadcast %107 : vector<64x1xf32> to vector<64x4xf32>
      %111 = arith.mulf %109, %110 : vector<64x4xf32>
      %112 = arith.addf %102, %111 : vector<64x4xf32>
      %c1_63 = arith.constant 1 : index
      %c0_64 = arith.constant 0 : index
      %c0_65 = arith.constant 0 : index
      %113 = vector.load %arg9[%c1_63, %c0_64, %c0_65] : memref<2x64x1xf32, #tpu.memory_space<vmem>>, vector<1x64x1xf32>
      %114 = vector.shape_cast %113 : vector<1x64x1xf32> to vector<64x1xf32>
      %cst_66 = arith.constant 1.000000e-30 : f32
      %115 = vector.broadcast %cst_66 : f32 to vector<64x1xf32>
      %116 = arith.maximumf %114, %115 : vector<64x1xf32>
      %117 = tpu.reciprocal %116 {approx = true} : vector<64x1xf32> -> vector<64x1xf32>
      %c1_67 = arith.constant 1 : index
      %c0_68 = arith.constant 0 : index
      %c0_69 = arith.constant 0 : index
      %118 = vector.load %arg10[%c1_67, %c0_68, %c0_69] : memref<2x64x4xf32, #tpu.memory_space<vmem>>, vector<1x64x4xf32>
      %119 = vector.shape_cast %118 : vector<1x64x4xf32> to vector<64x4xf32>
      %120 = vector.broadcast %117 : vector<64x1xf32> to vector<64x4xf32>
      %121 = arith.mulf %119, %120 : vector<64x4xf32>
      %122 = arith.addf %112, %121 : vector<64x4xf32>
      %cst_70 = arith.constant 5.000000e-01 : f32
      %123 = vector.broadcast %cst_70 : f32 to vector<64x4xf32>
      %124 = arith.mulf %122, %123 : vector<64x4xf32>
      %cst_71 = arith.constant dense<0xFF800000> : vector<64xf32>
      %125 = vector.multi_reduction <maximumf>, %124, %cst_71 [1] : vector<64x4xf32> to vector<64xf32>
      %126 = vector.shape_cast %125 : vector<64xf32> to vector<64x1xf32>
      %127 = vector.broadcast %126 : vector<64x1xf32> to vector<64x4xf32>
      %128 = arith.subf %124, %127 : vector<64x4xf32>
      %129 = math.exp %128 : vector<64x4xf32>
      %cst_72 = arith.constant dense<0.000000e+00> : vector<64xf32>
      %130 = vector.multi_reduction <add>, %129, %cst_72 [1] : vector<64x4xf32> to vector<64xf32>
      %131 = vector.shape_cast %130 : vector<64xf32> to vector<64x1xf32>
      %132 = math.log %131 : vector<64x1xf32>
      %133 = vector.broadcast %132 : vector<64x1xf32> to vector<64x4xf32>
      %134 = arith.subf %128, %133 : vector<64x4xf32>
      %cst_73 = arith.constant 0.000000e+00 : f32
      %135 = vector.broadcast %cst_73 : f32 to vector<64x124xf32>
      %136 = tpu.concatenate %134, %135 in 1 : vector<64x4xf32>, vector<64x124xf32> -> vector<64x128xf32>
      %c0_74 = arith.constant 0 : index
      %c0_75 = arith.constant 0 : index
      %137 = vector.load %arg7[%c0_74, %c0_75] : memref<64x128xf32, #tpu.memory_space<vmem>>, vector<64x128xf32>
      tpu.vector_store %arg7[%c0_74, %c0_75], %136 {strides = array<i32>} : memref<64x128xf32, #tpu.memory_space<vmem>>, vector<64x128xf32>,
    } else {
    }
    return
  }
  func.func @transform_0(%arg0: i32, %arg1: i32) -> (i32, i32) {
    %c0_i32 = arith.constant 0 : i32
    return %arg0, %arg1 : i32, i32
  }
  func.func @transform_1(%arg0: i32, %arg1: i32) -> (i32, i32) {
    %c0_i32 = arith.constant 0 : i32
    %c0_i32_0 = arith.constant 0 : i32
    return %arg1, %c0_i32 : i32, i32
  }
  func.func @transform_2(%arg0: i32, %arg1: i32) -> (i32, i32) {
    %c0_i32 = arith.constant 0 : i32
    %c0_i32_0 = arith.constant 0 : i32
    return %arg0, %c0_i32 : i32, i32
  }
  func.func @transform_3(%arg0: i32, %arg1: i32) -> (i32, i32) {
    %c0_i32 = arith.constant 0 : i32
    %c0_i32_0 = arith.constant 0 : i32
    %c0_i32_1 = arith.constant 0 : i32
    return %c0_i32, %c0_i32_0 : i32, i32
  }
  func.func @transform_4(%arg0: i32, %arg1: i32) -> (i32, i32) {
    %c0_i32 = arith.constant 0 : i32
    %c0_i32_0 = arith.constant 0 : i32
    %c0_i32_1 = arith.constant 0 : i32
    return %c0_i32, %c0_i32_0 : i32, i32
  }
  func.func @transform_5(%arg0: i32, %arg1: i32) -> (i32, i32) {
    %c0_i32 = arith.constant 0 : i32
    %c0_i32_0 = arith.constant 0 : i32
    return %arg0, %c0_i32 : i32, i32
  }
}

</mosaic_0001>

<bundles_post_ra>
// kernel: gat_forward.3
= control target key start
LH: loop header
LB: loop body
LE: loop exit
PB: predicated region body
PF: predicated region fallthrough
CT: control target
= control target key end

     0   :  { %s3598_s0 = inlined_call_operand.vmem [shape: bf16[128,256], index: 0, kind: input, shape index: {}]   ;;  %s3599_s1 = inlined_call_operand.vmem [shape: bf16[256,128], index: 1, kind: input, shape index: {}, may-alias: {1,2}]   ;;  %s3600_s2 = inlined_call_operand.vmem [shape: bf16[256,128], index: 2, kind: input, shape index: {}, may-alias: {1,2}]   ;;  %s3601_s3 = inlined_call_operand.vmem [shape: bf16[128,256], index: 3, kind: input, shape index: {}]   ;;  %s3602_s4 = inlined_call_operand.vmem [shape: bf16[128,128], index: 4, kind: input, shape index: {}]   ;;  %s3603_s5 = inlined_call_operand.hbm [shape: f32[128,128], index: 5, kind: output, shape index: {}]  }
   0x1   :  { %3608 = sst [smem:[#allocation12_spill]] %s3598_s0 }
   0x2   :  { %10 = vsyncpa [#allocation7], 0 }
   0x3   :  { %12 = vsyncpa [#allocation7 + $0x1], 0  ;;  %s2761_s18 = smov 0   ;;  %s2763_s19 = smov 0  }
   0x4   :  { %s2765_s20 = smov 0   ;;  %s2767_s21 = smov 0  }
   0x5   :  { %s2769_s22 = smov 0   ;;  %s2771_s23 = smov 0  }
   0x6   :  { %s2773_s24 = smov 0   ;;  %s2775_s25 = smov 0  }
   0x7   :  { %s2777_s26 = smov 0   ;;  %s2779_s27 = smov 0  }
   0x8 LB: > { %3609 = sst [smem:[#allocation9_spill]] %s2716_s26  ;;  %s2134_s28 = sadd.s32 4294967295, %s2720_s27   ;;  %s2720_s27 = sphi %s2779_s27, %s18_s27   ;;  %s2716_s26 = sphi %s2777_s26, %s3619_s26   ;;  %s2712_s25 = sphi %s2775_s25, %s3626_s25   ;;  %s2708_s24 = sphi %s2773_s24, %s3617_s24   ;;  %s2704_s23 = sphi %s2771_s23, %s3625_s23   ;;  %s2700_s22 = sphi %s2769_s22, %s3624_s22   ;;  %s2696_s21 = sphi %s2767_s21, %s3623_s21   ;;  %s2692_s20 = sphi %s2765_s20, %s3622_s20   ;;  %s2688_s19 = sphi %s2763_s19, %s3621_s19   ;;  %s2684_s18 = sphi %s2761_s18, %s3620_s18  }
   0x9   : > { %s2135_s29 = sadd.s32 4294967294, %s2720_s27   ;;  %s27_s30 = sadd.s32 1, %s2712_s25 }
   0xa   : > { %s30_s6 = sadd.s32 1, %s2716_s26  ;;  %p28_p0 = scmp.ge.s32.totalorder %s27_s30, 2 }
   0xb   : > { %s39_s7 = sadd.s32 1, %s2700_s22  ;;  %p46_p1 = scmp.ne.s32.totalorder %s2700_s22, %s2696_s21 }
   0xc   : > { %p47_p2 = scmp.eq.s32.totalorder %s2720_s27, 0  ;;  %s3628_s30 = smov (%p28_p0, %s27_s30), 0 }
   0xd   : > { %3610 = sst [smem:[#allocation10_spill]] %s3628_s30  ;;  %s3630_s6 = smov (!%p28_p0, %s30_s6), %s2716_s26 }
   0xe   : > { %s35_s8 = ssub.s32 %s2712_s25, %s3628_s30  ;;  %p2824_p3 = por %p47_p2, %p46_p1 }
   0xf   : > { %p32_p4 = scmp.ge.s32.totalorder %s3630_s6, 2  ;;  %s159_s10 = sadd.s32 1, %s2692_s20 }
  0x10   : > { %p169_p5 = scmp.ne.s32.totalorder %s2692_s20, %s2688_s19  ;;  %p170_p6 = scmp.eq.s32.totalorder %s2134_s28, 3 }
  0x11   : > { %s3632_s6 = smov (%p32_p4, %s3630_s6), 0  ;;  %p175_p8 = scmp.ne.s32.totalorder %s2688_s19, %s2684_s18 }
  0x12   : > { %3612 = sst [smem:[#allocation11_spill]] %s3632_s6  ;;  %p2833_p7 = por %p170_p6, %p169_p5 }
  0x13   : > { %s34_s12 = ssub.s32 %s2716_s26, %s3632_s6  ;;  %p176_p9 = scmp.eq.s32.totalorder %s2135_s29, 3 }
  0x14   : > { %s36_s13 = sor.u32 %s35_s8, %s34_s12  ;;  %p157_p10 = scmp.eq.s32.totalorder %s34_s12, 0 }
  0x15   : > { %p37_p11 = scmp.eq.s32.totalorder %s36_s13, 0  ;;  %p2841_p12 = por %p176_p9, %p175_p8 }
  0x16   : > { %s2846_s15 = scalar_select %p157_p10, %s2692_s20, %s159_s10  }
  0x17   : > { %s2849_s16 = scalar_select %p37_p11, %s2700_s22, %s39_s7  }
  0x18   : > { %p2137_p13 = scmp.ge.s32.totalorder %s2720_s27, 4 }
  0x1a   : > { %198 = sbr.rel (%p2137_p13) target bundleno = 48 (0x30), region = 24 }
  0x21   : > { %201 = sbr.rel (!%p2824_p3) target bundleno = 48 (0x30), region = 28  ;;  %s203_s17 = sand.u32 (%p2824_p3), 1, %s2700_s22  }
  0x22   : > { %s2192_s28 = sshll.u32 (%p2824_p3), %s2716_s26, 4  ;;  %s2138_s29 = sshll.u32 (%p2824_p3), %s203_s17, 5 }
  0x23   : > { %s208_s8 = sadd.s32 (%p2824_p3), %s2712_s25, %s2192_s28  ;;  %s3615_s0 = sld [smem:[#allocation12_spill]] (%p2824_p3) }
  0x24   : > { %s2141_s12 = sshll.u32 (%p2824_p3), %s208_s8, 2  ;;  %s205_s7 = scalar_lea.vmem (%p2824_p3), [#allocation5], %s2138_s29 }
  0x29   : > { %s210_s10 = scalar_lea.vmem %s3615_s0, %s2141_s12 }
  0x2a   : > { %v226_v0 = vld [vmem:[%s210_s10] sm:$0xf]  ;;  %v228_v1 = vld [vmem:[%s210_s10 + $0x8] sm:$0xf]  ;;  %v230_v2 = vld [vmem:[%s210_s10 + $0x10] sm:$0xf] }
  0x2b   : > { %227 = vst [vmem:[%s205_s7] sm:$0xf] %v226_v0  ;;  %229 = vst [vmem:[%s205_s7 + $0x4] sm:$0xf] %v228_v1  ;;  %v232_v3 = vld [vmem:[%s210_s10 + $0x18] sm:$0xf] }
  0x2c   : > { %231 = vst [vmem:[%s205_s7 + $0x8] sm:$0xf] %v230_v2  ;;  %v234_v4 = vld [vmem:[%s210_s10 + $0x20] sm:$0xf]  ;;  %v236_v5 = vld [vmem:[%s210_s10 + $0x28] sm:$0xf] }
  0x2d   : > { %233 = vst [vmem:[%s205_s7 + $0xc] sm:$0xf] %v232_v3  ;;  %235 = vst [vmem:[%s205_s7 + $0x10] sm:$0xf] %v234_v4  ;;  %v238_v6 = vld [vmem:[%s210_s10 + $0x30] sm:$0xf] }
  0x2e   : > { %237 = vst [vmem:[%s205_s7 + $0x14] sm:$0xf] %v236_v5  ;;  %v240_v7 = vld [vmem:[%s210_s10 + $0x38] sm:$0xf]  ;;  %239 = vst [vmem:[%s205_s7 + $0x18] sm:$0xf] %v238_v6 }
  0x2f   : > { %241 = vst [vmem:[%s205_s7 + $0x1c] sm:$0xf] %v240_v7 }
  0x30 PF: > { %p2142_p0 = scmp.ge.s32.totalorder %s2720_s27, 1  ;;  %p297_p1 = scmp.lt.s32.totalorder %s2720_s27, 5 }
  0x32   : > { %p298_p2 = pnand %p2142_p0, %p297_p1 }
  0x33   : > { %s304_s6 = sand.u32 (!%p298_p2), 1, %s2696_s21   ;;  %s3607_s9 = sand.u32 (!%p298_p2), 1, %s2688_s19  }
  0x34   : > { %301 = sbr.rel (%p298_p2) target bundleno = 1580 (0x62c), region = 77  ;;  %s2143_s17 = sshll.u32 (!%p298_p2), %s304_s6, 5 }
  0x35   : > { %s2144_s28 = sshll.u32 (!%p298_p2), %s3607_s9, 6  ;;  %s2145_s29 = sshll.u32 (!%p298_p2), %s2704_s23, 4 }
  0x36   : > { %s2147_s8 = sshll.u32 (!%p298_p2), %s2708_s24, 3  ;;  %p343_p3 = scmp.lt.s32.totalorder (!%p298_p2), %s2145_s29, 31 }
  0x37   : > { %p349_p4 = scmp.lt.s32.totalorder (!%p298_p2), %s2147_s8, 31  ;;  %s2878_s6 = scalar_lea.vmem (!%p298_p2), [#allocation5], %s2143_s17 }
  0x38   : > { %s2880_s9 = scalar_lea.vmem (!%p298_p2), [#allocation6], %s2144_s28  ;;  %p2149_p5 = scmp.ne.s32.totalorder (!%p298_p2), %s2704_s23, 0 }
  0x3b   : > { %s3634_s29 = smov (!%p343_p3, %s2145_s29), 31  ;;  %s3636_s8 = smov (!%p349_p4, %s2147_s8), 31 }
  0x3c   : > { %s2146_s12 = sshll.u32 %s3634_s29, 2  ;;  %s2148_s0 = sshll.u32 %s3636_s8, 2  ;;  %vm360_vm0 = vcmask (!%p2149_p5), 7168   ;;  %vm393_vm1 = vcmask (!%p2149_p5), 31744   ;;  %v2722_v8 = vmov (!%p2149_p5), -inf   ;;  %v2723_v9 = vmov (!%p2149_p5), 0.0  }
  0x3d   : > { %s2871_s7 = scalar_lea.vmem %s3599_s1, %s2146_s12  ;;  %s2876_s21 = scalar_lea.vmem %s3600_s2, %s2148_s0  ;;  %361 = vst.msk [vmem:[#allocation2] sm:$0xff] (!%p2149_p5), %vm360_vm0, %v2722_v8  ;;  %362 = vst.msk [vmem:[#allocation2 + $0x8] sm:$0xff] (!%p2149_p5), %vm360_vm0, %v2722_v8 }
  0x3e   : > { %359 = sbr.rel (%p2149_p5) target bundleno = 85 (0x55), region = 85  ;;  %363 = vst.msk [vmem:[#allocation2 + $0x10] sm:$0xff] (!%p2149_p5), %vm360_vm0, %v2722_v8  ;;  %364 = vst.msk [vmem:[#allocation2 + $0x18] sm:$0xff] (!%p2149_p5), %vm360_vm0, %v2722_v8 }
  0x3f   : > { %365 = vst.msk [vmem:[#allocation2 + $0x20] sm:$0xff] (!%p2149_p5), %vm360_vm0, %v2722_v8  ;;  %366 = vst.msk [vmem:[#allocation2 + $0x28] sm:$0xff] (!%p2149_p5), %vm360_vm0, %v2722_v8 }
  0x40   : > { %367 = vst.msk [vmem:[#allocation2 + $0x30] sm:$0xff] (!%p2149_p5), %vm360_vm0, %v2722_v8  ;;  %368 = vst.msk [vmem:[#allocation2 + $0x38] sm:$0xff] (!%p2149_p5), %vm360_vm0, %v2722_v8 }
  0x41   : > { %369 = vst.msk [vmem:[#allocation2 + $0x40] sm:$0xff] (!%p2149_p5), %vm360_vm0, %v2722_v8  ;;  %370 = vst.msk [vmem:[#allocation2 + $0x48] sm:$0xff] (!%p2149_p5), %vm360_vm0, %v2722_v8 }
  0x42   : > { %371 = vst.msk [vmem:[#allocation2 + $0x50] sm:$0xff] (!%p2149_p5), %vm360_vm0, %v2722_v8  ;;  %372 = vst.msk [vmem:[#allocation2 + $0x58] sm:$0xff] (!%p2149_p5), %vm360_vm0, %v2722_v8 }
  0x43   : > { %373 = vst.msk [vmem:[#allocation2 + $0x60] sm:$0xff] (!%p2149_p5), %vm360_vm0, %v2722_v8  ;;  %374 = vst.msk [vmem:[#allocation2 + $0x68] sm:$0xff] (!%p2149_p5), %vm360_vm0, %v2722_v8 }
  0x44   : > { %375 = vst.msk [vmem:[#allocation2 + $0x70] sm:$0xff] (!%p2149_p5), %vm360_vm0, %v2722_v8  ;;  %376 = vst.msk [vmem:[#allocation2 + $0x78] sm:$0xff] (!%p2149_p5), %vm360_vm0, %v2722_v8 }
  0x45   : > { %377 = vst.msk [vmem:[#allocation3] sm:$0xff] %vm360_vm0, %v2723_v9  ;;  %378 = vst.msk [vmem:[#allocation3 + $0x8] sm:$0xff] %vm360_vm0, %v2723_v9 }
  0x46   : > { %379 = vst.msk [vmem:[#allocation3 + $0x10] sm:$0xff] %vm360_vm0, %v2723_v9  ;;  %380 = vst.msk [vmem:[#allocation3 + $0x18] sm:$0xff] %vm360_vm0, %v2723_v9 }
  0x47   : > { %381 = vst.msk [vmem:[#allocation3 + $0x20] sm:$0xff] %vm360_vm0, %v2723_v9  ;;  %382 = vst.msk [vmem:[#allocation3 + $0x28] sm:$0xff] %vm360_vm0, %v2723_v9 }
  0x48   : > { %383 = vst.msk [vmem:[#allocation3 + $0x30] sm:$0xff] %vm360_vm0, %v2723_v9  ;;  %384 = vst.msk [vmem:[#allocation3 + $0x38] sm:$0xff] %vm360_vm0, %v2723_v9 }
  0x49   : > { %385 = vst.msk [vmem:[#allocation3 + $0x40] sm:$0xff] %vm360_vm0, %v2723_v9  ;;  %386 = vst.msk [vmem:[#allocation3 + $0x48] sm:$0xff] %vm360_vm0, %v2723_v9 }
  0x4a   : > { %387 = vst.msk [vmem:[#allocation3 + $0x50] sm:$0xff] %vm360_vm0, %v2723_v9  ;;  %388 = vst.msk [vmem:[#allocation3 + $0x58] sm:$0xff] %vm360_vm0, %v2723_v9 }
  0x4b   : > { %389 = vst.msk [vmem:[#allocation3 + $0x60] sm:$0xff] %vm360_vm0, %v2723_v9  ;;  %390 = vst.msk [vmem:[#allocation3 + $0x68] sm:$0xff] %vm360_vm0, %v2723_v9 }
  0x4c   : > { %391 = vst.msk [vmem:[#allocation3 + $0x70] sm:$0xff] %vm360_vm0, %v2723_v9  ;;  %392 = vst.msk [vmem:[#allocation3 + $0x78] sm:$0xff] %vm360_vm0, %v2723_v9 }
  0x4d   : > { %394 = vst.msk [vmem:[#allocation4] sm:$0xff] %vm393_vm1, %v2723_v9  ;;  %395 = vst.msk [vmem:[#allocation4 + $0x8] sm:$0xff] %vm393_vm1, %v2723_v9 }
  0x4e   : > { %396 = vst.msk [vmem:[#allocation4 + $0x10] sm:$0xff] %vm393_vm1, %v2723_v9  ;;  %397 = vst.msk [vmem:[#allocation4 + $0x18] sm:$0xff] %vm393_vm1, %v2723_v9 }
  0x4f   : > { %398 = vst.msk [vmem:[#allocation4 + $0x20] sm:$0xff] %vm393_vm1, %v2723_v9  ;;  %399 = vst.msk [vmem:[#allocation4 + $0x28] sm:$0xff] %vm393_vm1, %v2723_v9 }
  0x50   : > { %400 = vst.msk [vmem:[#allocation4 + $0x30] sm:$0xff] %vm393_vm1, %v2723_v9  ;;  %401 = vst.msk [vmem:[#allocation4 + $0x38] sm:$0xff] %vm393_vm1, %v2723_v9 }
  0x51   : > { %402 = vst.msk [vmem:[#allocation4 + $0x40] sm:$0xff] %vm393_vm1, %v2723_v9  ;;  %403 = vst.msk [vmem:[#allocation4 + $0x48] sm:$0xff] %vm393_vm1, %v2723_v9 }
  0x52   : > { %404 = vst.msk [vmem:[#allocation4 + $0x50] sm:$0xff] %vm393_vm1, %v2723_v9  ;;  %405 = vst.msk [vmem:[#allocation4 + $0x58] sm:$0xff] %vm393_vm1, %v2723_v9 }
  0x53   : > { %406 = vst.msk [vmem:[#allocation4 + $0x60] sm:$0xff] %vm393_vm1, %v2723_v9  ;;  %407 = vst.msk [vmem:[#allocation4 + $0x68] sm:$0xff] %vm393_vm1, %v2723_v9 }
  0x54   : > { %408 = vst.msk [vmem:[#allocation4 + $0x70] sm:$0xff] %vm393_vm1, %v2723_v9  ;;  %409 = vst.msk [vmem:[#allocation4 + $0x78] sm:$0xff] %vm393_vm1, %v2723_v9 }
  0x55 PF: > { %v2436_v10 = vld [vmem:[%s3602_s4] sm:$0xff]   ;;  %v2437_v11 = vld [vmem:[%s3602_s4 + $0x8] sm:$0xff]   ;;  %v2724_v12 = vmov 0   ;;  %v2438_v13 = vld [vmem:[%s3602_s4 + $0x10] sm:$0xff]   ;;  %v2725_v60 = vmov 1   ;;  %vm1136_vm2 = vcmask 7168  }
  0x56   : > { %602 = vmatprep.mubr.bf16.mxu0 %v2724_v12  ;;  %2432 = vset.pattern.permute.xlu1 %v2724_v12  ;;  %v2439_v14 = vld [vmem:[%s3602_s4 + $0x18] sm:$0xff]   ;;  %v2444_v15 = vld [vmem:[%s2876_s21] sm:$0xff]   ;;  %v2441_v22 = vld [vmem:[%s3602_s4 + $0x28] sm:$0xff]   ;;  %vm1278_vm3 = vcmask 31744   ;;  %p2186_p6 = scmp.ne.s32.totalorder %s2704_s23, 1 }
  0x57   : > { %2249 = vmatprep.subr.bf16.mxu1 %v2436_v10  ;;  %2433 = vset.pattern.permute.xlu0 %v2724_v12  ;;  %v2446_v16 = vld [vmem:[%s3601_s3 + $0x4] ss:$8 sps:$4 sm:$0xff]   ;;  %v2449_v18 = vld [vmem:[%s3601_s3] ss:$8 sps:$4 sm:$0xff]   ;;  %v2451_v19 = vld [vmem:[%s3601_s3 + $0x14] ss:$8 sps:$4 sm:$0xff]  }
  0x58   : > { %2250 = vmatpush3.bf16.msra.mxu1 %v2436_v10  ;;  %2265 = vmatprep.mubr.bf16.mxu1 %v2444_v15  ;;  %v2440_v17 = vld [vmem:[%s3602_s4 + $0x20] sm:$0xff]   ;;  %v2453_v20 = vld [vmem:[%s3601_s3 + $0x10] ss:$8 sps:$4 sm:$0xff]   ;;  %v2457_v24 = vld [vmem:[%s3601_s3 + $0x34] ss:$8 sps:$4 sm:$0xff]  }
  0x59   : > { %2251 = vmatprep.subr.bf16.mxu1 %v2437_v11  ;;  %570 = vmatprep.subr.bf16.mxu0 %v2446_v16  ;;  %v2454_v21 = vld [vmem:[%s3601_s3 + $0x24] ss:$8 sps:$4 sm:$0xff]   ;;  %v2456_v23 = vld [vmem:[%s3601_s3 + $0x20] ss:$8 sps:$4 sm:$0xff]   ;;  %v2442_v25 = vld [vmem:[%s3602_s4 + $0x30] sm:$0xff]  }
  0x5a   : > { %571 = vmatpush1.bf16.msra.mxu0 %v2449_v18  ;;  %v2459_v26 = vld [vmem:[%s3601_s3 + $0x30] ss:$8 sps:$4 sm:$0xff]   ;;  %v2460_v27 = vld [vmem:[%s3601_s3 + $0x44] ss:$8 sps:$4 sm:$0xff]   ;;  %v2462_v29 = vld [vmem:[%s3601_s3 + $0x40] ss:$8 sps:$4 sm:$0xff]  }
  0x5b   : > { %572 = vmatprep.subr.bf16.mxu0 %v2451_v19  ;;  %v2443_v28 = vld [vmem:[%s3602_s4 + $0x38] sm:$0xff]   ;;  %v2445_v31 = vld [vmem:[%s2876_s21 + $0x8] sm:$0xff]   ;;  %v2448_v33 = vld [vmem:[%s2876_s21 + $0x10] sm:$0xff]  }
  0x5c   : > { %2252 = vmatpush3.bf16.msra.mxu1 %v2437_v11  ;;  %v2463_v30 = vld [vmem:[%s3601_s3 + $0x54] ss:$8 sps:$4 sm:$0xff]   ;;  %v2465_v32 = vld [vmem:[%s3601_s3 + $0x50] ss:$8 sps:$4 sm:$0xff]   ;;  %v2466_v34 = vld [vmem:[%s3601_s3 + $0x64] ss:$8 sps:$4 sm:$0xff]  }
  0x5d   : > { %2253 = vmatprep.subr.bf16.mxu1 %v2438_v13  ;;  %v2468_v35 = vld [vmem:[%s3601_s3 + $0x60] ss:$8 sps:$4 sm:$0xff]   ;;  %v2469_v36 = vld [vmem:[%s3601_s3 + $0x74] ss:$8 sps:$4 sm:$0xff]   ;;  %v2471_v38 = vld [vmem:[%s3601_s3 + $0x70] ss:$8 sps:$4 sm:$0xff]  }
  0x5e   : > { %573 = vmatpush1.bf16.msra.mxu0 %v2453_v20  ;;  %v2450_v37 = vld [vmem:[%s2876_s21 + $0x18] sm:$0xff]   ;;  %v2472_v39 = vld [vmem:[%s2871_s7] sm:$0xff]   ;;  %v2473_v40 = vld [vmem:[%s2871_s7 + $0x8] sm:$0xff]  }
  0x5f   : > { %574 = vmatprep.subr.bf16.mxu0 %v2454_v21  ;;  %v2474_v41 = vld [vmem:[%s2871_s7 + $0x10] sm:$0xff]   ;;  %v2475_v42 = vld [vmem:[%s2871_s7 + $0x18] sm:$0xff]   ;;  %v2476_v43 = vld [vmem:[%s2871_s7 + $0x20] sm:$0xff]  }
  0x60   : > { %2254 = vmatpush3.bf16.msra.mxu1 %v2438_v13  ;;  %v2477_v44 = vld [vmem:[%s2871_s7 + $0x28] sm:$0xff]   ;;  %v2478_v45 = vld [vmem:[%s2871_s7 + $0x30] sm:$0xff]   ;;  %v2479_v46 = vld [vmem:[%s2871_s7 + $0x38] sm:$0xff]   ;;  %s2726_s7 = smov 124  }
  0x61   : > { %2255 = vmatprep.subr.bf16.mxu1 %v2439_v14 }
  0x62   : > { %575 = vmatpush1.bf16.msra.mxu0 %v2456_v23 }
  0x63   : > { %576 = vmatprep.subr.bf16.mxu0 %v2457_v24 }
  0x64   : > { %2256 = vmatpush3.bf16.msra.mxu1 %v2439_v14 }
  0x65   : > { %2257 = vmatprep.subr.bf16.mxu1 %v2440_v17 }
  0x66   : > { %577 = vmatpush1.bf16.msra.mxu0 %v2459_v26 }
  0x67   : > { %578 = vmatprep.subr.bf16.mxu0 %v2460_v27 }
  0x68   : > { %2258 = vmatpush3.bf16.msra.mxu1 %v2440_v17 }
  0x69   : > { %2259 = vmatprep.subr.bf16.mxu1 %v2441_v22 }
  0x6a   : > { %579 = vmatpush1.bf16.msra.mxu0 %v2462_v29 }
  0x6b   : > { %580 = vmatprep.subr.bf16.mxu0 %v2463_v30 }
  0x6c   : > { %2260 = vmatpush3.bf16.msra.mxu1 %v2441_v22 }
  0x6d   : > { %2261 = vmatprep.subr.bf16.mxu1 %v2442_v25 }
  0x6e   : > { %581 = vmatpush1.bf16.msra.mxu0 %v2465_v32 }
  0x6f   : > { %582 = vmatprep.subr.bf16.mxu0 %v2466_v34 }
  0x70   : > { %2262 = vmatpush3.bf16.msra.mxu1 %v2442_v25 }
  0x71   : > { %2263 = vmatprep.subr.bf16.mxu1 %v2443_v28 }
  0x72   : > { %583 = vmatpush1.bf16.msra.mxu0 %v2468_v35 }
  0x73   : > { %584 = vmatprep.subr.bf16.mxu0 %v2469_v36  ;;  %v940_v36 = vlaneseq }
  0x74   : > { %2264 = vmatpush3.bf16.msra.mxu1 %v2443_v28 }
  0x76   : > { %585 = vmatpush1.bf16.msra.mxu0 %v2471_v38 }
  0x77   : > { %2266 = vmatmul.mubr.bf16.vlgmr.msra.gmra.mrb[0].mxu1 %v2445_v31 }
  0x78   : > { %2269 = vmatprep.mubr.bf16.mxu1 %v2448_v33 }
  0x79   : > { %603 = vmatmul.mubr.bf16.vlgmr.msra.gmra.mrb[0].mxu0 %v2472_v39  ;;  %v941_v39 = vshrl.u32 %v940_v36, 7 }
  0x7a   : > { %612 = vmatprep.mubr.bf16.mxu0 %v2724_v12 }
  0x7f   : > { %2270 = vmatmul.mubr.bf16.gmra.mrb[4].mxu1 %v2450_v37 }
  0x81   : > { %613 = vmatmul.mubr.bf16.gmra.mrb[4].mxu0 %v2473_v40 }
  0x82   : > { %622 = vmatprep.mubr.bf16.mxu0 %v2724_v12 }
  0x89   : > { %623 = vmatmul.mubr.bf16.gmra.mrb[8].mxu0 %v2474_v41  ;;  %v942_v41 = vsub.s32 0, %v941_v39 }
  0x8a   : > { %632 = vmatprep.mubr.bf16.mxu0 %v2724_v12 }
  0x91   : > { %633 = vmatmul.mubr.bf16.gmra.mrb[12].mxu0 %v2475_v42 }
  0x92   : > { %642 = vmatprep.mubr.bf16.mxu0 %v2724_v12 }
  0x99   : > { %643 = vmatmul.mubr.bf16.gmra.mrb[16].mxu0 %v2476_v43 }
  0x9a   : > { %652 = vmatprep.mubr.bf16.mxu0 %v2724_v12 }
  0xa1   : > { %653 = vmatmul.mubr.bf16.gmra.mrb[20].mxu0 %v2477_v44 }
  0xa2   : > { %662 = vmatprep.mubr.bf16.mxu0 %v2724_v12 }
  0xa9   : > { %663 = vmatmul.mubr.bf16.gmra.mrb[24].mxu0 %v2478_v45  ;;  %v3063_v45 = vld [vmem:[%s2878_s6 + $0x18] sm:$0xff]  }
  0xaa   : > { %672 = vmatprep.mubr.bf16.mxu0 %v2724_v12 }
  0xb1   : > { %673 = vmatmul.mubr.bf16.gmra.mrb[28].mxu0 %v2479_v46  ;;  %v3066_v46 = vld [vmem:[%s2878_s6] sm:$0xff]  }
 0x14a   : > { %v2267_v47 = vpop.f32.mrb[0].mxu1 }
 0x14b   : > { %v853_v48 = vpop.f32.mrb[1].mxu1  ;;  %912 = vperm.xlu1 %2432, %v2267_v47  }
 0x14c   : > { %v2268_v49 = vpop.f32.mrb[2].mxu1  ;;  %902 = vperm.xlu0 %2433, %v853_v48   ;;  %v604_v55 = vpop.f32.mrb[0].mxu0 }
 0x14d   : > { %v856_v50 = vpop.f32.mrb[3].mxu1  ;;  %v606_v56 = vpop.f32.mrb[1].mxu0 }
 0x14e   : > { %v608_v57 = vpop.f32.mrb[2].mxu0 }
 0x14f   : > { %917 = vperm.xlu1 %2432, %v2268_v49   ;;  %v3025_v58 = vpack.c.bf16 %v608_v57, %v604_v55  ;;  %v610_v59 = vpop.f32.mrb[3].mxu0 }
 0x150   : > { %907 = vperm.xlu0 %2433, %v856_v50  }
 0x151   : > { %2273 = vmatprep.subr.bf16.mxu1 %v3025_v58 }
 0x152   : > { %v2271_v51 = vpop.f32.mrb[4].mxu1  ;;  %2274 = vmatpush3.bf16.msra.mxu1 %v3025_v58 }
 0x153   : > { %v869_v52 = vpop.f32.mrb[5].mxu1 }
 0x154   : > { %v2272_v53 = vpop.f32.mrb[6].mxu1  ;;  %932 = vperm.xlu0 %2433, %v2271_v51   ;;  %v614_v61 = vpop.f32.mrb[4].mxu0 }
 0x155   : > { %v872_v54 = vpop.f32.mrb[7].mxu1  ;;  %937 = vperm.xlu1 %2432, %v2272_v53   ;;  %v616_v62 = vpop.f32.mrb[5].mxu0 }
 0x156   : > { %v618_v63 = vpop.f32.mrb[6].mxu0 }
 0x157   : > { %v3029_v0 = vpack.c.bf16 %v618_v63, %v614_v61  ;;  %v620_v1 = vpop.f32.mrb[7].mxu0 }
 0x158   : > { %922 = vperm.xlu0 %2433, %v869_v52  }
 0x159   : > { %927 = vperm.xlu1 %2432, %v872_v54   ;;  %2275 = vmatprep.subr.bf16.mxu1 %v3029_v0 }
 0x15a   : > { %2276 = vmatpush3.bf16.msra.mxu1 %v3029_v0 }
 0x15c   : > { %v624_v2 = vpop.f32.mrb[8].mxu0 }
 0x15d   : > { %2434 = vset.pattern.permute.xlu1 %v2725_v60  ;;  %v626_v3 = vpop.f32.mrb[9].mxu0  ;;  %v2197_v60 = vunpack.c.h.bf16 %v3066_v46 }
 0x15e   : > { %1296 = vperm.xlu1 %2434, %v853_v48   ;;  %v628_v4 = vpop.f32.mrb[10].mxu0 }
 0x15f   : > { %v3033_v5 = vpack.c.bf16 %v628_v4, %v624_v2  ;;  %v630_v6 = vpop.f32.mrb[11].mxu0  ;;  %v3083_v2 = vld [vmem:[%s2878_s6 + $0x8] sm:$0xff]  }
 0x161   : > { %2277 = vmatprep.subr.bf16.mxu1 %v3033_v5 }
 0x162   : > { %1300 = vperm.xlu1 %2434, %v856_v50   ;;  %2278 = vmatpush3.bf16.msra.mxu1 %v3033_v5 }
 0x164   : > { %v634_v7 = vpop.f32.mrb[12].mxu0 }
 0x165   : > { %v636_v8 = vpop.f32.mrb[13].mxu0 }
 0x166   : > { %1312 = vperm.xlu1 %2434, %v869_v52   ;;  %v638_v9 = vpop.f32.mrb[14].mxu0  ;;  %v2196_v52 = vunpack.c.l.bf16 %v3066_v46 }
 0x167   : > { %v3037_v10 = vpack.c.bf16 %v638_v9, %v634_v7  ;;  %v640_v11 = vpop.f32.mrb[15].mxu0  ;;  %v2200_v7 = vunpack.c.l.bf16 %v3083_v2 }
 0x169   : > { %2279 = vmatprep.subr.bf16.mxu1 %v3037_v10 }
 0x16a   : > { %1316 = vperm.xlu1 %2434, %v872_v54   ;;  %2280 = vmatpush3.bf16.msra.mxu1 %v3037_v10 }
 0x16c   : > { %v644_v13 = vpop.f32.mrb[16].mxu0 }
 0x16d   : > { %v646_v14 = vpop.f32.mrb[17].mxu0 }
 0x16e   : > { %1304 = vperm.xlu1 %2434, %v2267_v47   ;;  %v648_v15 = vpop.f32.mrb[18].mxu0 }
 0x16f   : > { %v3041_v16 = vpack.c.bf16 %v648_v15, %v644_v13  ;;  %v650_v17 = vpop.f32.mrb[19].mxu0 }
 0x171   : > { %2281 = vmatprep.subr.bf16.mxu1 %v3041_v16 }
 0x172   : > { %1308 = vperm.xlu1 %2434, %v2268_v49   ;;  %2282 = vmatpush3.bf16.msra.mxu1 %v3041_v16 }
 0x174   : > { %v654_v18 = vpop.f32.mrb[20].mxu0 }
 0x175   : > { %v656_v19 = vpop.f32.mrb[21].mxu0 }
 0x176   : > { %1320 = vperm.xlu1 %2434, %v2271_v51   ;;  %691 = vxpose.xlu0.b32.start [1/16] (narrow) %v606_v56, 8  ;;  %v658_v20 = vpop.f32.mrb[22].mxu0  ;;  %v2209_v51 = vunpack.c.h.bf16 %v3063_v45 }
 0x177   : > { %v3046_v21 = vpack.c.bf16 %v658_v20, %v654_v18  ;;  %v660_v22 = vpop.f32.mrb[23].mxu0 }
 0x179   : > { %2283 = vmatprep.subr.bf16.mxu1 %v3046_v21 }
 0x17a   : > { %1324 = vperm.xlu1 %2434, %v2272_v53   ;;  %692 = vxpose.xlu0.b32.cont [2/16] (narrow) %v610_v59, 8 }
 0x17b   : > { %2284 = vmatpush3.bf16.msra.mxu1 %v3046_v21 }
 0x17c   : > { %v664_v23 = vpop.f32.mrb[24].mxu0 }
 0x17d   : > { %v666_v24 = vpop.f32.mrb[25].mxu0 }
 0x17e   : > { %693 = vxpose.xlu0.b32.cont [3/16] (narrow) %v616_v62, 8  ;;  %2435 = vset.pattern.permute.xlu1 %v2724_v12  ;;  %v668_v25 = vpop.f32.mrb[26].mxu0 }
 0x17f   : > { %v3050_v26 = vpack.c.bf16 %v668_v25, %v664_v23  ;;  %v670_v27 = vpop.f32.mrb[27].mxu0  ;;  %v2208_v23 = vunpack.c.l.bf16 %v3063_v45 }
 0x181   : > { %2285 = vmatprep.subr.bf16.mxu1 %v3050_v26 }
 0x182   : > { %694 = vxpose.xlu0.b32.cont [4/16] (narrow) %v620_v1, 8  ;;  %2286 = vmatpush3.bf16.msra.mxu1 %v3050_v26 }
 0x184   : > { %v674_v12 = vpop.f32.mrb[28].mxu0 }
 0x185   : > { %v676_v28 = vpop.f32.mrb[29].mxu0 }
 0x186   : > { %695 = vxpose.xlu0.b32.cont [5/16] (narrow) %v626_v3, 8  ;;  %v678_v29 = vpop.f32.mrb[30].mxu0 }
 0x187   : > { %v3054_v30 = vpack.c.bf16 %v678_v29, %v674_v12  ;;  %v680_v31 = vpop.f32.mrb[31].mxu0 }
 0x189   : > { %2287 = vmatprep.subr.bf16.mxu1 %v3054_v30 }
 0x18a   : > { %696 = vxpose.xlu0.b32.cont [6/16] (narrow) %v630_v6, 8  ;;  %2288 = vmatpush3.bf16.msra.mxu1 %v3054_v30  ;;  %v1329_v6 = vsub.s32 1, %v941_v39 }
 0x18e   : > { %697 = vxpose.xlu0.b32.cont [7/16] (narrow) %v636_v8, 8 }
 0x192   : > { %698 = vxpose.xlu0.b32.cont [8/16] (narrow) %v640_v11, 8 }
 0x196   : > { %699 = vxpose.xlu0.b32.cont [9/16] (narrow) %v646_v14, 8 }
 0x19a   : > { %700 = vxpose.xlu0.b32.cont [10/16] (narrow) %v650_v17, 8  ;;  %v2201_v17 = vunpack.c.h.bf16 %v3083_v2 }
 0x19e   : > { %701 = vxpose.xlu0.b32.cont [11/16] (narrow) %v656_v19, 8 }
 0x1a2   : > { %702 = vxpose.xlu0.b32.cont [12/16] (narrow) %v660_v22, 8 }
 0x1a6   : > { %703 = vxpose.xlu0.b32.cont [13/16] (narrow) %v666_v24, 8 }
 0x1aa   : > { %704 = vxpose.xlu0.b32.cont [14/16] (narrow) %v670_v27, 8  ;;  %v2211_v27 = vld [vmem:[%s2878_s6 + $0x10] sm:$0xff]  }
 0x1ae   : > { %705 = vxpose.xlu0.b32.cont [15/16] (narrow) %v676_v28, 8 }
 0x1b2   : > { %706 = vxpose.xlu0.b32.end [16/16] (narrow) %v680_v31, 8  ;;  %v2204_v31 = vunpack.c.l.bf16 %v2211_v27 }
 0x1ca   : > { %v913_v33 = vpop.permute.xlu1 %912 }
 0x1cb   : > { %v903_v32 = vpop.permute.xlu0 %902 }
 0x1ce   : > { %v918_v35 = vpop.permute.xlu1 %917 }
 0x1cf   : > { %v908_v34 = vpop.permute.xlu0 %907 }
 0x1d3   : > { %v933_v37 = vpop.permute.xlu0 %932 }
 0x1d4   : > { %v938_v38 = vpop.permute.xlu1 %937 }
 0x1d7   : > { %v923_v40 = vpop.permute.xlu0 %922 }
 0x1d8   : > { %v3058_v42 = vpop.permute.xlu1 %927 }
 0x1dd   : > { %v1297_v50 = vpop.permute.xlu1 %1296 }
 0x1e1   : > { %v1301_v4 = vpop.permute.xlu1 %1300 }
 0x1e5   : > { %v1313_v14 = vpop.permute.xlu1 %1312 }
 0x1e9   : > { %v1317_v29 = vpop.permute.xlu1 %1316 }
 0x1ed   : > { %v1305_v36 = vpop.permute.xlu1 %1304 }
 0x1f6   : > { %v707_v43 = vpop.trf.xlu0 }
 0x1f7   : > { %v3060_v44 = vrot.slane %v707_v43, %v942_v41  ;;  %v1330_v15 = vrot.slane %v707_v43, %v1329_v6 }
 0x1f9   : > { %v951_v47 = vadd.f32 %v3060_v44, %v938_v38  ;;  %v944_v48 = vadd.f32 %v3060_v44, %v903_v32  ;;  %v945_v49 = vadd.f32 %v3060_v44, %v908_v34  ;;  %v946_v56 = vadd.f32 %v3060_v44, %v913_v33 }
 0x1fa   : > { %v947_v61 = vadd.f32 %v3060_v44, %v918_v35  ;;  %v950_v13 = vadd.f32 %v3060_v44, %v933_v37  ;;  %v948_v22 = vadd.f32 %v3060_v44, %v923_v40  ;;  %v1331_v28 = vadd.f32 %v1330_v15, %v1297_v50 }
 0x1fb   : > { %v959_v53 = vmul.f32 0.2, %v951_v47  ;;  %v952_v54 = vmul.f32 0.2, %v944_v48  ;;  %v953_v55 = vmul.f32 0.2, %v945_v49  ;;  %v1332_v35 = vadd.f32 %v1330_v15, %v1301_v4 }
 0x1fc   : > { %v954_v3 = vmul.f32 0.2, %v946_v56  ;;  %v955_v11 = vmul.f32 0.2, %v947_v61  ;;  %v958_v20 = vmul.f32 0.2, %v950_v13  ;;  %v1335_v40 = vadd.f32 %v1330_v15, %v1313_v14 }
 0x1fd   : > { %v967_v57 = vmax.f32 %v951_v47, %v959_v53  ;;  %v960_v59 = vmax.f32 %v944_v48, %v952_v54  ;;  %v961_v1 = vmax.f32 %v945_v49, %v953_v55  ;;  %v956_v12 = vmul.f32 0.2, %v948_v22  ;;  %v1309_v48 = vpop.permute.xlu1 %1308 }
 0x1fe   : > { %v962_v9 = vmax.f32 %v946_v56, %v954_v3  ;;  %v963_v19 = vmax.f32 %v947_v61, %v955_v11  ;;  %v966_v25 = vmax.f32 %v950_v13, %v958_v20  ;;  %v1339_v34 = vmul.f32 0.2, %v1331_v28 }
 0x1ff   : > { %v3078_v62 = vadd.f32 %v2209_v51, %v967_v57  ;;  %v3080_v63 = vadd.f32 %v2196_v52, %v960_v59  ;;  %v3088_v8 = vadd.f32 %v2197_v60, %v961_v1  ;;  %v964_v33 = vmax.f32 %v948_v22, %v956_v12 }
 0x200   : > { %v3093_v18 = vadd.f32 %v2200_v7, %v962_v9  ;;  %v3098_v24 = vadd.f32 %v2201_v17, %v963_v19  ;;  %v3102_v32 = vadd.f32 %v2208_v23, %v966_v25  ;;  %v1347_v38 = vmax.f32 %v1331_v28, %v1339_v34 }
 0x201   : > { %998 = vmax.xlane.f32.xlu0 %v3078_v62  ;;  %984 = vmax.xlane.f32.xlu1 %v3080_v63  ;;  %v3105_v37 = vadd.f32 %v2204_v31, %v964_v33  ;;  %v1340_v39 = vmul.f32 0.2, %v1332_v35  ;;  %v1343_v46 = vmul.f32 0.2, %v1335_v40  ;;  %v1333_v47 = vadd.f32 %v1330_v15, %v1305_v36  ;;  %v1321_v55 = vpop.permute.xlu1 %1320 }
 0x202   : > { %v3108_v41 = vadd.f32 %v2196_v52, %v1347_v38  ;;  %v1334_v54 = vadd.f32 %v1330_v15, %v1309_v48  ;;  %v1337_v52 = vadd.f32 %v1330_v15, %v1321_v55  ;;  %v2205_v13 = vunpack.c.h.bf16 %v2211_v27 }
 0x203   : > { %v1348_v43 = vmax.f32 %v1332_v35, %v1340_v39  ;;  %v1351_v50 = vmax.f32 %v1335_v40, %v1343_v46  ;;  %v1341_v53 = vmul.f32 0.2, %v1333_v47  ;;  %v1336_v20 = vadd.f32 %v1330_v15, %v1317_v29  ;;  %v3161_v35 = vld [vmem:[#allocation2 + $0x10] sm:$0xff]  ;;  %v3169_v39 = vld [vmem:[#allocation2 + $0x18] sm:$0xff] }
 0x204   : > { %v1342_v59 = vmul.f32 0.2, %v1334_v54  ;;  %v1345_v2 = vmul.f32 0.2, %v1337_v52  ;;  %v3179_v46 = vld [vmem:[#allocation2 + $0x30] sm:$0xff] }
 0x205   : > { %986 = vmax.xlane.f32.xlu1 %v3088_v8  ;;  %v3111_v49 = vadd.f32 %v2197_v60, %v1348_v43  ;;  %v3114_v56 = vadd.f32 %v2204_v31, %v1351_v50  ;;  %v1349_v57 = vmax.f32 %v1333_v47, %v1341_v53  ;;  %v949_v60 = vadd.f32 %v3060_v44, %v3058_v42  ;;  %v1325_v3 = vpop.permute.xlu1 %1324  ;;  %v3187_v50 = vld [vmem:[#allocation2 + $0x20] sm:$0xff] }
 0x206   : > { %v1350_v1 = vmax.f32 %v1334_v54, %v1342_v59  ;;  %v1338_v4 = vadd.f32 %v1330_v15, %v1325_v3  ;;  %v1353_v9 = vmax.f32 %v1337_v52, %v1345_v2  ;;  %v1344_v44 = vmul.f32 0.2, %v1336_v20  ;;  %v3139_v15 = vld [vmem:[#allocation2 + $0x38] sm:$0xff]  ;;  %v3196_v54 = vld [vmem:[#allocation2 + $0x40] sm:$0xff]  ;;  %v1365_v59 = vld [vmem:[#allocation2 + $0x48] sm:$0xff] }
 0x207   : > { %v3117_v61 = vadd.f32 %v2200_v7, %v1349_v57  ;;  %v957_v11 = vmul.f32 0.2, %v949_v60  ;;  %v3212_v3 = vld [vmem:[#allocation2 + $0x50] sm:$0xff] }
 0x208   : > { %v3122_v6 = vadd.f32 %v2201_v17, %v1350_v1  ;;  %v1346_v14 = vmul.f32 0.2, %v1338_v4  ;;  %v3125_v19 = vadd.f32 %v2208_v23, %v1353_v9  ;;  %v1352_v25 = vmax.f32 %v1336_v20, %v1344_v44  ;;  %v3141_v23 = vld [vmem:[#allocation2] sm:$0xff]  ;;  %v3237_v44 = vld [vmem:[#allocation2 + $0x28] sm:$0xff] }
 0x209   : > { %988 = vmax.xlane.f32.xlu1 %v3093_v18  ;;  %v965_v7 = vmax.f32 %v949_v60, %v957_v11  ;;  %v3206_v1 = vld [vmem:[#allocation2 + $0x60] sm:$0xff]  ;;  %v3220_v11 = vld [vmem:[#allocation2 + $0x58] sm:$0xff] }
 0x20a   : > { %v1354_v22 = vmax.f32 %v1338_v4, %v1346_v14  ;;  %v3136_v27 = vadd.f32 %v2205_v13, %v1352_v25 }
 0x20b   : > { %v3128_v42 = vadd.f32 %v2205_v13, %v965_v7  ;;  %v3229_v7 = vld [vmem:[#allocation2 + $0x70] sm:$0xff] }
 0x20c   : > { %v3133_v17 = vadd.f32 %v2209_v51, %v1354_v22  ;;  %v3149_v51 = vld [vmem:[#allocation2 + $0x8] sm:$0xff] }
 0x20d   : > { %990 = vmax.xlane.f32.xlu1 %v3098_v24 }
 0x211   : > { %996 = vmax.xlane.f32.xlu1 %v3102_v32 }
 0x215   : > { %992 = vmax.xlane.f32.xlu1 %v3105_v37 }
 0x219   : > { %1372 = vmax.xlane.f32.xlu1 %v3108_v41 }
 0x21d   : > { %1374 = vmax.xlane.f32.xlu1 %v3111_v49 }
 0x221   : > { %1380 = vmax.xlane.f32.xlu1 %v3114_v56 }
 0x225   : > { %1376 = vmax.xlane.f32.xlu1 %v3117_v61 }
 0x229   : > { %1378 = vmax.xlane.f32.xlu1 %v3122_v6 }
 0x22d   : > { %1384 = vmax.xlane.f32.xlu1 %v3125_v19 }
 0x231   : > { %994 = vmax.xlane.f32.xlu1 %v3128_v42 }
 0x235   : > { %1386 = vmax.xlane.f32.xlu1 %v3133_v17 }
 0x239   : > { %1382 = vmax.xlane.f32.xlu1 %v3136_v27 }
 0x28e   : > { %v999_v12 = vpop.xlane.xlu0 %998  ;;  %v985_v28 = vpop.xlane.xlu1 %984 }
 0x28f   : > { %v3144_v29 = vmax.f32 %v3139_v15, %v999_v12  ;;  %v3147_v45 = vmax.f32 %v3141_v23, %v985_v28 }
 0x291   : > { %v1015_v31 = vsub.f32 %v3139_v15, %v3144_v29  ;;  %1294 = vst.msk [vmem:[#allocation2 + $0x38] sm:$0xff] %vm1136_vm2, %v3144_v29  ;;  %1287 = vst.msk [vmem:[#allocation2] sm:$0xff] %vm1136_vm2, %v3147_v45  ;;  %1034 = vperm.xlu1 %2435, %v3147_v45  }
 0x292   : > { %v987_v33 = vpop.xlane.xlu1 %986 }
 0x293   : > { %v3159_v34 = vmax.f32 %v3149_v51, %v987_v33 }
 0x295   : > { %1288 = vst.msk [vmem:[#allocation2 + $0x8] sm:$0xff] %vm1136_vm2, %v3159_v34  ;;  %1039 = vperm.xlu0 %2433, %v3159_v34   ;;  %v1009_v12 = vsub.f32 %v3149_v51, %v3159_v34  ;;  %v3258_v51 = vld [vmem:[#allocation2 + $0x68] sm:$0xff] }
 0x296   : > { %v989_v36 = vpop.xlane.xlu1 %988 }
 0x297   : > { %v3167_v38 = vmax.f32 %v3161_v35, %v989_v36  ;;  %v3249_v36 = vld [vmem:[#allocation2 + $0x78] sm:$0xff] }
 0x299   : > { %1289 = vst.msk [vmem:[#allocation2 + $0x10] sm:$0xff] %vm1136_vm2, %v3167_v38  ;;  %1602 = vrot.lane.b32.xlu0 %v3025_v58, %s2726_s7  ;;  %1044 = vperm.xlu1 %2435, %v3167_v38  }
 0x29a   : > { %v991_v40 = vpop.xlane.xlu1 %990 }
 0x29b   : > { %v3177_v43 = vmax.f32 %v3169_v39, %v991_v40  ;;  %v1018_v40 = vmul.f32 1.442695, %v1009_v12  ;;  %v1030_v12 = vmul.f32 1.442695, %v1015_v31 }
 0x29d   : > { %1290 = vst.msk [vmem:[#allocation2 + $0x18] sm:$0xff] %vm1136_vm2, %v3177_v43  ;;  %1049 = vperm.xlu1 %2435, %v3177_v43   ;;  %2480 = vpow2.f32 %v1018_v40 }
 0x29e   : > { %v997_v47 = vpop.xlane.xlu1 %996 }
 0x29f   : > { %v3185_v48 = vmax.f32 %v3179_v46, %v997_v47 }
 0x2a1   : > { %1293 = vst.msk [vmem:[#allocation2 + $0x30] sm:$0xff] %vm1136_vm2, %v3185_v48  ;;  %1604 = vrot.lane.b32.xlu1 %v3029_v0, %s2726_s7 }
 0x2a2   : > { %v993_v58 = vpop.xlane.xlu1 %992 }
 0x2a3   : > { %v3194_v53 = vmax.f32 %v3187_v50, %v993_v58 }
 0x2a5   : > { %1291 = vst.msk [vmem:[#allocation2 + $0x20] sm:$0xff] %vm1136_vm2, %v3194_v53 }
 0x2a6   : > { %v1373_v55 = vpop.xlane.xlu1 %1372 }
 0x2a7   : > { %v3201_v57 = vmax.f32 %v3196_v54, %v1373_v55 }
 0x2a9   : > { %1707 = vst.msk [vmem:[#allocation2 + $0x40] sm:$0xff] %vm1136_vm2, %v3201_v57  ;;  %1422 = vperm.xlu0 %2433, %v3201_v57  }
 0x2aa   : > { %v1375_v0 = vpop.xlane.xlu1 %1374 }
 0x2ab   : > { %v1389_v52 = vmax.f32 %v1365_v59, %v1375_v0 }
 0x2ad   : > { %1708 = vst.msk [vmem:[#allocation2 + $0x48] sm:$0xff] %vm1136_vm2, %v1389_v52  ;;  %1427 = vperm.xlu1 %2435, %v1389_v52   ;;  %v1397_v47 = vsub.f32 %v1365_v59, %v1389_v52  ;;  %v1014_v59 = vsub.f32 %v3179_v46, %v3185_v48  ;;  %v1010_v46 = vsub.f32 %v3161_v35, %v3167_v38 }
 0x2ae   : > { %v1381_v2 = vpop.xlane.xlu1 %1380  ;;  %v1011_v35 = vsub.f32 %v3169_v39, %v3177_v43 }
 0x2af   : > { %v3210_v60 = vmax.f32 %v3206_v1, %v1381_v2  ;;  %v1406_v0 = vmul.f32 1.442695, %v1397_v47 }
 0x2b1   : > { %1711 = vst.msk [vmem:[#allocation2 + $0x60] sm:$0xff] %vm1136_vm2, %v3210_v60  ;;  %1054 = vperm.xlu1 %2435, %v3194_v53   ;;  %2482 = vpow2.f32 %v1406_v0 }
 0x2b2   : > { %v1377_v4 = vpop.xlane.xlu1 %1376 }
 0x2b3   : > { %v3218_v9 = vmax.f32 %v3212_v3, %v1377_v4  ;;  %v1008_v4 = vsub.f32 %v3141_v23, %v3147_v45  ;;  %v3284_v45 = vpop.eup %2480 }
 0x2b5   : > { %1709 = vst.msk [vmem:[#allocation2 + $0x50] sm:$0xff] %vm1136_vm2, %v3218_v9  ;;  %1069 = vperm.xlu1 %2435, %v3144_v29   ;;  %1432 = vperm.xlu0 %2433, %v3218_v9   ;;  %v1398_v39 = vsub.f32 %v3212_v3, %v3218_v9 }
 0x2b6   : > { %v1379_v13 = vpop.xlane.xlu1 %1378 }
 0x2b7   : > { %v3227_v14 = vmax.f32 %v3220_v11, %v1379_v13  ;;  %v1012_v13 = vsub.f32 %v3187_v50, %v3194_v53  ;;  %v1022_v50 = vmul.f32 1.442695, %v1011_v35  ;;  %v1396_v53 = vsub.f32 %v3196_v54, %v3201_v57 }
 0x2b8   : > { %v1408_v54 = vmul.f32 1.442695, %v1398_v39 }
 0x2b9   : > { %1710 = vst.msk [vmem:[#allocation2 + $0x58] sm:$0xff] %vm1136_vm2, %v3227_v14  ;;  %1064 = vperm.xlu0 %2433, %v3185_v48   ;;  %v1024_v23 = vmul.f32 1.442695, %v1012_v13  ;;  %v1020_v48 = vmul.f32 1.442695, %v1010_v46  ;;  %v1399_v57 = vsub.f32 %v3220_v11, %v3227_v14 }
 0x2ba   : > { %v1385_v20 = vpop.xlane.xlu1 %1384 }
 0x2bb   : > { %v3235_v22 = vmax.f32 %v3229_v7, %v1385_v20  ;;  %v1016_v20 = vmul.f32 1.442695, %v1008_v4  ;;  %v3291_v38 = vpop.eup %2482  ;;  %v1410_v3 = vmul.f32 1.442695, %v1399_v57 }
 0x2bd   : > { %v1402_v25 = vsub.f32 %v3229_v7, %v3235_v22  ;;  %1713 = vst.msk [vmem:[#allocation2 + $0x70] sm:$0xff] %vm1136_vm2, %v3235_v22  ;;  %1442 = vperm.xlu0 %2433, %v3210_v60  }
 0x2be   : > { %v995_v28 = vpop.xlane.xlu1 %994 }
 0x2bf   : > { %v3247_v33 = vmax.f32 %v3237_v44, %v995_v28 }
 0x2c1   : > { %1292 = vst.msk [vmem:[#allocation2 + $0x28] sm:$0xff] %vm1136_vm2, %v3247_v33  ;;  %1452 = vperm.xlu0 %2433, %v3235_v22   ;;  %1059 = vperm.xlu1 %2435, %v3247_v33   ;;  %v1013_v11 = vsub.f32 %v3237_v44, %v3247_v33 }
 0x2c2   : > { %v1387_v58 = vpop.xlane.xlu1 %1386 }
 0x2c3   : > { %v3256_v55 = vmax.f32 %v3249_v36, %v1387_v58  ;;  %v1026_v28 = vmul.f32 1.442695, %v1013_v11 }
 0x2c5   : > { %v1403_v34 = vsub.f32 %v3249_v36, %v3256_v55  ;;  %1714 = vst.msk [vmem:[#allocation2 + $0x78] sm:$0xff] %vm1136_vm2, %v3256_v55  ;;  %1606 = vrot.lane.b32.xlu0 %v3033_v5, %s2726_s7  ;;  %1437 = vperm.xlu1 %2435, %v3227_v14   ;;  %v1028_v5 = vmul.f32 1.442695, %v1014_v59 }
 0x2c6   : > { %v1383_v52 = vpop.xlane.xlu1 %1382 }
 0x2c7   : > { %v1393_v2 = vmax.f32 %v3258_v51, %v1383_v52  ;;  %2484 = vpow2.f32 %v1028_v5 }
 0x2c8   : > { %2486 = vpow2.f32 %v1016_v20 }
 0x2c9   : > { %1712 = vst.msk [vmem:[#allocation2 + $0x68] sm:$0xff] %vm1136_vm2, %v1393_v2  ;;  %1610 = vrot.lane.b32.xlu0 %v3041_v16, %s2726_s7  ;;  %1447 = vperm.xlu1 %2435, %v1393_v2   ;;  %v1400_v16 = vsub.f32 %v3206_v1, %v3210_v60  ;;  %2488 = vpow2.f32 %v1024_v23  ;;  %v1401_v40 = vsub.f32 %v3258_v51, %v1393_v2 }
 0x2ca   : > { %2490 = vpow2.f32 %v1020_v48 }
 0x2cb   : > { %v1414_v58 = vmul.f32 1.442695, %v1401_v40 }
 0x2cd   : > { %1614 = vrot.lane.b32.xlu0 %v3050_v26, %s2726_s7  ;;  %1457 = vperm.xlu1 %2435, %v3256_v55   ;;  %v1412_v26 = vmul.f32 1.442695, %v1400_v16  ;;  %v1416_v55 = vmul.f32 1.442695, %v1402_v25 }
 0x2cf   : > { %2492 = vpow2.f32 %v1412_v26 }
 0x2d0   : > { %2494 = vpow2.f32 %v1022_v50 }
 0x2d1   : > { %1160 = vperm.xlu0 %2433, %v3284_v45   ;;  %1608 = vrot.lane.b32.xlu1 %v3037_v10, %s2726_s7  ;;  %v3298_v1 = vpop.eup %2484  ;;  %v1404_v10 = vmul.f32 1.442695, %v1396_v53 }
 0x2d2   : > { %v3305_v43 = vpop.eup %2486 }
 0x2d3   : > { %2496 = vpow2.f32 %v1404_v10 }
 0x2d4   : > { %2498 = vpow2.f32 %v1408_v54 }
 0x2d5   : > { %1549 = vperm.xlu0 %2433, %v3291_v38   ;;  %1612 = vrot.lane.b32.xlu1 %v3046_v21, %s2726_s7  ;;  %v3307_v21 = vpop.eup %2488  ;;  %2500 = vpow2.f32 %v1410_v3 }
 0x2d6   : > { %v3313_v60 = vpop.eup %2490  ;;  %2502 = vpow2.f32 %v1030_v12 }
 0x2d7   : > { %2504 = vpow2.f32 %v1026_v28 }
 0x2d8   : > { %2506 = vpow2.f32 %v1414_v58 }
 0x2d9   : > { %1185 = vperm.xlu0 %2433, %v3298_v1   ;;  %1616 = vrot.lane.b32.xlu1 %v3054_v30, %s2726_s7  ;;  %v3315_v30 = vpop.eup %2492 }
 0x2da   : > { %v3319_v9 = vpop.eup %2494 }
 0x2dd   : > { %1175 = vperm.xlu0 %2433, %v3307_v21   ;;  %1155 = vperm.xlu1 %2435, %v3305_v43   ;;  %v3327_v14 = vpop.eup %2496 }
 0x2de   : > { %v3331_v47 = vpop.eup %2498 }
 0x2df   : > { %v3334_v15 = vpop.eup %2500 }
 0x2e0   : > { %v3337_v29 = vpop.eup %2502 }
 0x2e1   : > { %1564 = vperm.xlu0 %2433, %v3315_v30   ;;  %1165 = vperm.xlu1 %2435, %v3313_v60   ;;  %v3340_v31 = vpop.eup %2504 }
 0x2e2   : > { %v3343_v44 = vpop.eup %2506 }
 0x2e5   : > { %1170 = vperm.xlu1 %2435, %v3319_v9  }
 0x2e9   : > { %1544 = vperm.xlu1 %2435, %v3327_v14  }
 0x2ed   : > { %1554 = vperm.xlu1 %2435, %v3331_v47  }
 0x2f1   : > { %1559 = vperm.xlu1 %2435, %v3334_v15  }
 0x2f5   : > { %1190 = vperm.xlu1 %2435, %v3337_v29  }
 0x2f9   : > { %1180 = vperm.xlu1 %2435, %v3340_v31  }
 0x2fd   : > { %1569 = vperm.xlu1 %2435, %v3343_v44  }
 0x310   : > { %v1035_v33 = vpop.permute.xlu1 %1034 }
 0x311   : > { %v1072_v51 = vsub.f32 %v3080_v63, %v1035_v33 }
 0x313   : > { %v1080_v59 = vmul.f32 1.442695, %v1072_v51 }
 0x314   : > { %v1040_v0 = vpop.permute.xlu0 %1039 }
 0x315   : > { %2508 = vpow2.f32 %v1080_v59  ;;  %v1073_v52 = vsub.f32 %v3088_v8, %v1040_v0 }
 0x317   : > { %v1082_v2 = vmul.f32 1.442695, %v1073_v52 }
 0x318   : > { %v1603_v4 = vpop.permute.xlu0 %1602  ;;  %v1045_v5 = vpop.permute.xlu1 %1044 }
 0x319   : > { %2510 = vpow2.f32 %v1082_v2  ;;  %v1074_v13 = vsub.f32 %v3093_v18, %v1045_v5  ;;  %2297 = vmatprep.subr.bf16.mxu0 %v1603_v4  ;;  %2321 = vmatprep.subr.bf16.mxu1 %v1603_v4 }
 0x31a   : > { %2298 = vmatpush3.bf16.msra.mxu0 %v1603_v4 }
 0x31b   : > { %v1084_v20 = vmul.f32 1.442695, %v1074_v13 }
 0x31c   : > { %v1050_v46 = vpop.permute.xlu1 %1049 }
 0x31d   : > { %2512 = vpow2.f32 %v1084_v20  ;;  %v1075_v23 = vsub.f32 %v3098_v24, %v1050_v46 }
 0x31f   : > { %v2509_v63 = vpop.eup %2508  ;;  %v1086_v16 = vmul.f32 1.442695, %v1075_v23 }
 0x320   : > { %1112 = vadd.xlane.f32.xlu0 %v2509_v63  ;;  %v1605_v48 = vpop.permute.xlu1 %1604 }
 0x321   : > { %2514 = vpow2.f32 %v1086_v16  ;;  %2299 = vmatprep.subr.bf16.mxu0 %v1605_v48 }
 0x322   : > { %2300 = vmatpush3.bf16.msra.mxu0 %v1605_v48 }
 0x323   : > { %v2511_v8 = vpop.eup %2510 }
 0x324   : > { %1114 = vadd.xlane.f32.xlu1 %v2511_v8  ;;  %v1201_v35 = vpack.c.bf16 %v2511_v8, %v2509_v63 }
 0x326   : > { %2289 = vmatprep.mubr.bf16.mxu1 %v1201_v35 }
 0x327   : > { %v2513_v18 = vpop.eup %2512 }
 0x328   : > { %v1423_v26 = vpop.permute.xlu0 %1422  ;;  %1116 = vadd.xlane.f32.xlu0 %v2513_v18 }
 0x329   : > { %v1460_v50 = vsub.f32 %v3108_v41, %v1423_v26 }
 0x32b   : > { %v2515_v53 = vpop.eup %2514  ;;  %v1468_v10 = vmul.f32 1.442695, %v1460_v50 }
 0x32c   : > { %1118 = vadd.xlane.f32.xlu0 %v2515_v53  ;;  %v1428_v24 = vpop.permute.xlu1 %1427  ;;  %v1202_v39 = vpack.c.bf16 %v2515_v53, %v2513_v18 }
 0x32d   : > { %2516 = vpow2.f32 %v1468_v10  ;;  %v1461_v54 = vsub.f32 %v3111_v49, %v1428_v24 }
 0x32e   : > { %2290 = vmatmul.mubr.bf16.vlgmr.msra.gmra.mrb[8].mxu1 %v1202_v39 }
 0x32f   : > { %v1470_v57 = vmul.f32 1.442695, %v1461_v54  ;;  %2329 = vmatpush3.bf16.msra.mxu1 %v1603_v4 }
 0x330   : > { %2322 = vmatprep.subr.bf16.mxu1 %v1605_v48  ;;  %v1055_v11 = vpop.permute.xlu1 %1054 }
 0x331   : > { %2518 = vpow2.f32 %v1470_v57  ;;  %v1076_v49 = vsub.f32 %v3105_v37, %v1055_v11 }
 0x333   : > { %2330 = vmatpush3.bf16.msra.mxu1 %v1605_v48  ;;  %v1088_v2 = vmul.f32 1.442695, %v1076_v49 }
 0x334   : > { %v1433_v3 = vpop.permute.xlu0 %1432  ;;  %v1070_v59 = vpop.permute.xlu1 %1069 }
 0x335   : > { %v1462_v12 = vsub.f32 %v3117_v61, %v1433_v3  ;;  %v1079_v61 = vsub.f32 %v3078_v62, %v1070_v59 }
 0x337   : > { %v2517_v28 = vpop.eup %2516  ;;  %v1472_v41 = vmul.f32 1.442695, %v1462_v12  ;;  %v1094_v46 = vmul.f32 1.442695, %v1079_v61 }
 0x338   : > { %v1065_v40 = vpop.permute.xlu0 %1064  ;;  %1501 = vadd.xlane.f32.xlu0 %v2517_v28 }
 0x339   : > { %2520 = vpow2.f32 %v1472_v41  ;;  %v1078_v58 = vsub.f32 %v3102_v32, %v1065_v40 }
 0x33b   : > { %v2519_v33 = vpop.eup %2518  ;;  %v1092_v51 = vmul.f32 1.442695, %v1078_v58 }
 0x33c   : > { %v1443_v0 = vpop.permute.xlu0 %1442  ;;  %1503 = vadd.xlane.f32.xlu1 %v2519_v33  ;;  %v1590_v52 = vpack.c.bf16 %v2519_v33, %v2517_v28  ;;  %v1418_v33 = vmul.f32 1.442695, %v1403_v34 }
 0x33d   : > { %2522 = vpow2.f32 %v1092_v51  ;;  %v1464_v63 = vsub.f32 %v3114_v56, %v1443_v0 }
 0x33e   : > { %2313 = vmatprep.mubr.bf16.mxu0 %v1590_v52  ;;  %2524 = vpow2.f32 %v1088_v2 }
 0x33f   : > { %v1476_v8 = vmul.f32 1.442695, %v1464_v63 }
 0x340   : > { %v1453_v4 = vpop.permute.xlu0 %1452  ;;  %v1060_v5 = vpop.permute.xlu1 %1059 }
 0x341   : > { %v1466_v13 = vsub.f32 %v3125_v19, %v1453_v4  ;;  %v1077_v20 = vsub.f32 %v3128_v42, %v1060_v5 }
 0x343   : > { %v3358_v32 = vpop.eup %2520  ;;  %v1480_v23 = vmul.f32 1.442695, %v1466_v13  ;;  %v1090_v37 = vmul.f32 1.442695, %v1077_v20 }
 0x344   : > { %v1607_v16 = vpop.permute.xlu0 %1606  ;;  %1505 = vadd.xlane.f32.xlu0 %v3358_v32  ;;  %v1438_v48 = vpop.permute.xlu1 %1437 }
 0x345   : > { %2526 = vpow2.f32 %v1480_v23  ;;  %v1463_v62 = vsub.f32 %v3122_v6, %v1438_v48  ;;  %2301 = vmatprep.subr.bf16.mxu0 %v1607_v16  ;;  %2323 = vmatprep.subr.bf16.mxu1 %v1607_v16  ;;  %v1096_v23 = vld [vmem:[#allocation3] sm:$0xff]  ;;  %v1097_v48 = vld [vmem:[#allocation3 + $0x8] sm:$0xff] }
 0x346   : > { %2528 = vpow2.f32 %v1090_v37  ;;  %2302 = vmatpush3.bf16.msra.mxu0 %v1607_v16  ;;  %2331 = vmatpush3.bf16.msra.mxu1 %v1607_v16  ;;  %v1104_v37 = vmul.f32 %v3305_v43, %v1096_v23 }
 0x347   : > { %v2523_v19 = vpop.eup %2522  ;;  %2530 = vpow2.f32 %v1094_v46  ;;  %v1474_v42 = vmul.f32 1.442695, %v1463_v62 }
 0x348   : > { %1124 = vadd.xlane.f32.xlu1 %v2523_v19  ;;  %v1448_v35 = vpop.permute.xlu1 %1447  ;;  %v2525_v50 = vpop.eup %2524 }
 0x349   : > { %2532 = vpow2.f32 %v1474_v42  ;;  %v1465_v56 = vsub.f32 %v3136_v27, %v1448_v35  ;;  %v1611_v3 = vpop.permute.xlu0 %1610 }
 0x34a   : > { %2534 = vpow2.f32 %v1476_v8  ;;  %v1098_v8 = vld [vmem:[#allocation3 + $0x10] sm:$0xff] }
 0x34b   : > { %v1478_v18 = vmul.f32 1.442695, %v1465_v56  ;;  %v1106_v56 = vmul.f32 %v3313_v60, %v1098_v8  ;;  %v1492_v8 = vld [vmem:[#allocation3 + $0x78] sm:$0xff] }
 0x34c   : > { %v1458_v26 = vpop.permute.xlu1 %1457 }
 0x34d   : > { %2536 = vpow2.f32 %v1478_v18  ;;  %v1467_v6 = vsub.f32 %v3133_v17, %v1458_v26  ;;  %v1615_v40 = vpop.permute.xlu0 %1614  ;;  %v1099_v26 = vld [vmem:[#allocation3 + $0x18] sm:$0xff] }
 0x34e   : > { %v1107_v43 = vmul.f32 %v3319_v9, %v1099_v26 }
 0x34f   : > { %v2527_v53 = vpop.eup %2526  ;;  %v1482_v10 = vmul.f32 1.442695, %v1467_v6 }
 0x350   : > { %v2529_v24 = vpop.eup %2528  ;;  %1513 = vadd.xlane.f32.xlu1 %v2527_v53  ;;  %v1609_v39 = vpop.permute.xlu1 %1608 }
 0x351   : > { %v2531_v54 = vpop.eup %2530  ;;  %2538 = vpow2.f32 %v1482_v10  ;;  %2303 = vmatprep.subr.bf16.mxu0 %v1609_v39  ;;  %2324 = vmatprep.subr.bf16.mxu1 %v1609_v39  ;;  %v1203_v57 = vpack.c.bf16 %v2529_v24, %v2525_v50  ;;  %v3383_v4 = vpop.permute.xlu0 %1160  ;;  %v1485_v10 = vld [vmem:[#allocation3 + $0x40] sm:$0xff] }
 0x352   : > { %2304 = vmatpush3.bf16.msra.mxu0 %v1609_v39  ;;  %2332 = vmatpush3.bf16.msra.mxu1 %v1609_v39  ;;  %v1204_v27 = vpack.c.bf16 %v2531_v54, %v2523_v19  ;;  %2540 = vpow2.f32 %v1418_v33  ;;  %v1105_v19 = vmul.f32 %v3284_v45, %v1097_v48  ;;  %v1493_v45 = vmul.f32 %v3327_v14, %v1485_v10  ;;  %v1486_v39 = vld [vmem:[#allocation3 + $0x48] sm:$0xff] }
 0x353   : > { %v2533_v12 = vpop.eup %2532  ;;  %2293 = vmatprep.mubr.bf16.mxu1 %v1203_v57  ;;  %2305 = vmatprep.subr.bf16.mxu0 %v1611_v3  ;;  %2542 = vpow2.f32 %v1416_v55  ;;  %v1494_v60 = vmul.f32 %v3291_v38, %v1486_v39  ;;  %v1146_v39 = vld [vmem:[#allocation4 + $0x8] sm:$0xff] }
 0x354   : > { %2294 = vmatmul.mubr.bf16.gmra.mrb[12].mxu1 %v1204_v27  ;;  %2325 = vmatprep.subr.bf16.mxu1 %v1611_v3  ;;  %v2535_v17 = vpop.eup %2534  ;;  %v1613_v11 = vpop.permute.xlu1 %1612  ;;  %v1591_v49 = vpack.c.bf16 %v2533_v12, %v3358_v32  ;;  %v1487_v27 = vld [vmem:[#allocation3 + $0x50] sm:$0xff] }
 0x355   : > { %1120 = vadd.xlane.f32.xlu1 %v2525_v50  ;;  %1507 = vadd.xlane.f32.xlu0 %v2533_v12  ;;  %v3387_v13 = vpop.permute.xlu0 %1549  ;;  %v1495_v9 = vmul.f32 %v3331_v47, %v1487_v27 }
 0x356   : > { %2306 = vmatpush3.bf16.msra.mxu0 %v1611_v3  ;;  %2333 = vmatpush3.bf16.msra.mxu1 %v1611_v3 }
 0x357   : > { %v2537_v28 = vpop.eup %2536  ;;  %2307 = vmatprep.subr.bf16.mxu0 %v1613_v11  ;;  %2326 = vmatprep.subr.bf16.mxu1 %v1613_v11 }
 0x358   : > { %v1592_v41 = vpack.c.bf16 %v2537_v28, %v2535_v17  ;;  %v1617_v51 = vpop.permute.xlu1 %1616 }
 0x359   : > { %1509 = vadd.xlane.f32.xlu1 %v2535_v17  ;;  %1126 = vadd.xlane.f32.xlu0 %v2531_v54  ;;  %v3391_v7 = vpop.permute.xlu0 %1185  ;;  %v1102_v17 = vld [vmem:[#allocation3 + $0x30] sm:$0xff] }
 0x35a   : > { %2308 = vmatpush3.bf16.msra.mxu0 %v1613_v11  ;;  %2334 = vmatpush3.bf16.msra.mxu1 %v1613_v11  ;;  %v1110_v14 = vmul.f32 %v3298_v1, %v1102_v17  ;;  %v1489_v1 = vld [vmem:[#allocation3 + $0x60] sm:$0xff] }
 0x35b   : > { %v2539_v58 = vpop.eup %2538  ;;  %2317 = vmatprep.mubr.bf16.mxu1 %v1592_v41  ;;  %2309 = vmatprep.subr.bf16.mxu0 %v1615_v40 }
 0x35c   : > { %2327 = vmatprep.subr.bf16.mxu1 %v1615_v40  ;;  %v1593_v59 = vpack.c.bf16 %v2539_v58, %v2527_v53  ;;  %v3369_v36 = vpop.eup %2540  ;;  %v3375_v0 = vpop.permute.xlu1 %1155 }
 0x35d   : > { %1515 = vadd.xlane.f32.xlu0 %v2539_v58  ;;  %v2543_v34 = vpop.eup %2542  ;;  %v3395_v25 = vpop.permute.xlu0 %1175 }
 0x35e   : > { %2310 = vmatpush3.bf16.msra.mxu0 %v1615_v40  ;;  %2335 = vmatpush3.bf16.msra.mxu1 %v1615_v40  ;;  %v1491_v40 = vld [vmem:[#allocation3 + $0x70] sm:$0xff] }
 0x35f   : > { %2311 = vmatprep.subr.bf16.mxu0 %v1617_v51  ;;  %2328 = vmatprep.subr.bf16.mxu1 %v1617_v51  ;;  %v1499_v38 = vmul.f32 %v2543_v34, %v1491_v40 }
 0x360   : > { %v3377_v52 = vpop.permute.xlu1 %1165 }
 0x361   : > { %1122 = vadd.xlane.f32.xlu0 %v2529_v24  ;;  %v3399_v46 = vpop.permute.xlu0 %1564 }
 0x362   : > { %2312 = vmatpush3.bf16.msra.mxu0 %v1617_v51  ;;  %2336 = vmatpush3.bf16.msra.mxu1 %v1617_v51  ;;  %v1488_v51 = vld [vmem:[#allocation3 + $0x58] sm:$0xff] }
 0x363   : > { %v1496_v47 = vmul.f32 %v3334_v15, %v1488_v51 }
 0x364   : > { %v3379_v61 = vpop.permute.xlu1 %1170 }
 0x365   : > { %1511 = vadd.xlane.f32.xlu0 %v2537_v28  ;;  %2314 = vmatmul.mubr.bf16.vlgmr.msra.gmra.mrb[32].mxu0 %v1591_v49  ;;  %v1100_v49 = vld [vmem:[#allocation3 + $0x20] sm:$0xff] }
 0x366   : > { %2318 = vmatmul.mubr.bf16.vlgmr.msra.gmra.mrb[16].mxu1 %v1593_v59  ;;  %v1108_v59 = vmul.f32 %v3307_v21, %v1100_v49  ;;  %v1500_v21 = vmul.f32 %v3369_v36, %v1492_v8 }
 0x368   : > { %v3381_v2 = vpop.permute.xlu1 %1544 }
 0x36a   : > { %1579 = vperm.xlu1 %2435, %v3369_v36   ;;  %v1145_v36 = vld [vmem:[#allocation4] sm:$0xff] }
 0x36c   : > { %v3385_v5 = vpop.permute.xlu1 %1554 }
 0x370   : > { %v3389_v20 = vpop.permute.xlu1 %1559 }
 0x374   : > { %v3393_v22 = vpop.permute.xlu1 %1190 }
 0x378   : > { %v3397_v32 = vpop.permute.xlu1 %1180 }
 0x37b   : > { %1574 = vperm.xlu0 %2433, %v2543_v34  }
 0x37c   : > { %v3402_v63 = vpop.permute.xlu1 %1569 }
 0x3ad   : > { %v1113_v16 = vpop.xlane.xlu0 %1112 }
 0x3ae   : > { %v1128_v62 = vadd.f32 %v1113_v16, %v1104_v37  ;;  %v1103_v37 = vld [vmem:[#allocation3 + $0x38] sm:$0xff] }
 0x3af   : > { %v1111_v34 = vmul.f32 %v3337_v29, %v1103_v37 }
 0x3b0   : > { %1137 = vst.msk [vmem:[#allocation3] sm:$0xff] %vm1136_vm2, %v1128_v62  ;;  %v1497_v62 = vmul.f32 %v3315_v30, %v1489_v1  ;;  %v1490_v30 = vld [vmem:[#allocation3 + $0x68] sm:$0xff]  ;;  %v1538_v1 = vld [vmem:[#allocation4 + $0x60] sm:$0xff] }
 0x3b1   : > { %v1115_v42 = vpop.xlane.xlu1 %1114 }
 0x3b2   : > { %v1129_v35 = vadd.f32 %v1115_v42, %v1105_v19 }
 0x3b4   : > { %1138 = vst.msk [vmem:[#allocation3 + $0x8] sm:$0xff] %vm1136_vm2, %v1129_v35 }
 0x3b5   : > { %v1117_v18 = vpop.xlane.xlu0 %1116 }
 0x3b6   : > { %v1130_v6 = vadd.f32 %v1117_v18, %v1106_v56  ;;  %v1101_v18 = vld [vmem:[#allocation3 + $0x28] sm:$0xff] }
 0x3b7   : > { %v1109_v29 = vmul.f32 %v3340_v31, %v1101_v18 }
 0x3b8   : > { %1139 = vst.msk [vmem:[#allocation3 + $0x10] sm:$0xff] %vm1136_vm2, %v1130_v6 }
 0x3b9   : > { %v1119_v50 = vpop.xlane.xlu0 %1118 }
 0x3ba   : > { %v1131_v53 = vadd.f32 %v1119_v50, %v1107_v43  ;;  %v1498_v50 = vmul.f32 %v3343_v44, %v1490_v30  ;;  %v1194_v44 = vmul.f32 %v3383_v4, %v1146_v39  ;;  %v1719_v39 = vld [vmem:[#allocation3] sm:$0xff] (!%p2186_p6) }
 0x3bc   : > { %1140 = vst.msk [vmem:[#allocation3 + $0x18] sm:$0xff] %vm1136_vm2, %v1131_v53 }
 0x3c5   : > { %v1502_v24 = vpop.xlane.xlu0 %1501 }
 0x3c6   : > { %v1517_v54 = vadd.f32 %v1502_v24, %v1493_v45  ;;  %v1147_v45 = vld [vmem:[#allocation4 + $0x10] sm:$0xff]  ;;  %v1148_v24 = vld [vmem:[#allocation4 + $0x18] sm:$0xff] }
 0x3c8   : > { %1525 = vst.msk [vmem:[#allocation3 + $0x40] sm:$0xff] %vm1136_vm2, %v1517_v54  ;;  %v1195_v54 = vmul.f32 %v3377_v52, %v1147_v45  ;;  %v1149_v52 = vld [vmem:[#allocation4 + $0x20] sm:$0xff] }
 0x3c9   : > { %v1504_v57 = vpop.xlane.xlu1 %1503  ;;  %v1197_v4 = vmul.f32 %v3395_v25, %v1149_v52  ;;  %v1534_v25 = vld [vmem:[#allocation4 + $0x40] sm:$0xff] }
 0x3ca   : > { %v1518_v3 = vadd.f32 %v1504_v57, %v1494_v60  ;;  %v1193_v60 = vmul.f32 %v3375_v0, %v1145_v36  ;;  %v1196_v57 = vmul.f32 %v3379_v61, %v1148_v24  ;;  %v1151_v0 = vld [vmem:[#allocation4 + $0x30] sm:$0xff]  ;;  %v1152_v61 = vld [vmem:[#allocation4 + $0x38] sm:$0xff] }
 0x3cc   : > { %1526 = vst.msk [vmem:[#allocation3 + $0x48] sm:$0xff] %vm1136_vm2, %v1518_v3 }
 0x3d1   : > { %v1506_v12 = vpop.xlane.xlu0 %1505 }
 0x3d2   : > { %v1519_v11 = vadd.f32 %v1506_v12, %v1495_v9 }
 0x3d4   : > { %1527 = vst.msk [vmem:[#allocation3 + $0x50] sm:$0xff] %vm1136_vm2, %v1519_v11 }
 0x3d5   : > { %v1125_v28 = vpop.xlane.xlu1 %1124 }
 0x3d6   : > { %v1134_v41 = vadd.f32 %v1125_v28, %v1110_v14  ;;  %v1199_v28 = vmul.f32 %v3391_v7, %v1151_v0  ;;  %v1536_v7 = vld [vmem:[#allocation4 + $0x50] sm:$0xff] }
 0x3d8   : > { %1143 = vst.msk [vmem:[#allocation3 + $0x30] sm:$0xff] %vm1136_vm2, %v1134_v41  ;;  %v1150_v41 = vld [vmem:[#allocation4 + $0x28] sm:$0xff] }
 0x3d9   : > { %v1198_v51 = vmul.f32 %v3397_v32, %v1150_v41  ;;  %v1535_v32 = vld [vmem:[#allocation4 + $0x48] sm:$0xff]  ;;  %v1807_v41 = vld [vmem:[#allocation3 + $0x40] sm:$0xff] (!%p2186_p6) }
 0x3dd   : > { %v1514_v58 = vpop.xlane.xlu1 %1513 }
 0x3de   : > { %v1523_v33 = vadd.f32 %v1514_v58, %v1499_v38  ;;  %v1200_v38 = vmul.f32 %v3393_v22, %v1152_v61  ;;  %v1540_v22 = vld [vmem:[#allocation4 + $0x70] sm:$0xff] }
 0x3df   : > { %v1725_v0 = vld [vmem:[#allocation3 + $0x30] sm:$0xff] (!%p2186_p6) }
 0x3e0   : > { %1531 = vst.msk [vmem:[#allocation3 + $0x70] sm:$0xff] %vm1136_vm2, %v1523_v33  ;;  %v1733_v61 = vmax.f32 (!%p2186_p6), %v1725_v0, 1e-30 }
 0x3e2   : > { %v1508_v55 = vpop.xlane.xlu0 %1507  ;;  %v1121_v23 = vpop.xlane.xlu1 %1120 }
 0x3e3   : > { %v1520_v16 = vadd.f32 %v1508_v55, %v1496_v47  ;;  %v1132_v48 = vadd.f32 %v1121_v23, %v1108_v59 }
 0x3e5   : > { %1528 = vst.msk [vmem:[#allocation3 + $0x58] sm:$0xff] %vm1136_vm2, %v1520_v16  ;;  %1141 = vst.msk [vmem:[#allocation3 + $0x20] sm:$0xff] %vm1136_vm2, %v1132_v48  ;;  %v1537_v16 = vld [vmem:[#allocation4 + $0x58] sm:$0xff]  ;;  %v1584_v48 = vmul.f32 %v3385_v5, %v1536_v7 }
 0x3e6   : > { %v1127_v19 = vpop.xlane.xlu0 %1126  ;;  %v1510_v42 = vpop.xlane.xlu1 %1509 }
 0x3e7   : > { %v1135_v15 = vadd.f32 %v1127_v19, %v1111_v34  ;;  %v1521_v35 = vadd.f32 %v1510_v42, %v1497_v62  ;;  %v1541_v34 = vld [vmem:[#allocation4 + $0x78] sm:$0xff]  ;;  %v1582_v19 = vmul.f32 %v3381_v2, %v1534_v25  ;;  %v1539_v42 = vld [vmem:[#allocation4 + $0x68] sm:$0xff] }
 0x3e9   : > { %1144 = vst.msk [vmem:[#allocation3 + $0x38] sm:$0xff] %vm1136_vm2, %v1135_v15  ;;  %1529 = vst.msk [vmem:[#allocation3 + $0x60] sm:$0xff] %vm1136_vm2, %v1521_v35  ;;  %v1586_v35 = vmul.f32 %v3399_v46, %v1538_v1 }
 0x3ea   : > { %v1516_v56 = vpop.xlane.xlu0 %1515  ;;  %v1580_v62 = vpop.permute.xlu1 %1579 }
 0x3eb   : > { %v1524_v26 = vadd.f32 %v1516_v56, %v1500_v21  ;;  %v1585_v21 = vmul.f32 %v3389_v20, %v1537_v16 }
 0x3ed   : > { %1532 = vst.msk [vmem:[#allocation3 + $0x78] sm:$0xff] %vm1136_vm2, %v1524_v26 }
 0x3ee   : > { %v1123_v6 = vpop.xlane.xlu0 %1122 }
 0x3ef   : > { %v1133_v43 = vadd.f32 %v1123_v6, %v1109_v29  ;;  %v1583_v29 = vmul.f32 %v3387_v13, %v1535_v32  ;;  %v1589_v6 = vmul.f32 %v1580_v62, %v1541_v34 }
 0x3f0   : > { %v1811_v25 = vld [vmem:[#allocation3 + $0x60] sm:$0xff] (!%p2186_p6) }
 0x3f1   : > { %1142 = vst.msk [vmem:[#allocation3 + $0x28] sm:$0xff] %vm1136_vm2, %v1133_v43  ;;  %v1819_v1 = vmax.f32 (!%p2186_p6), %v1811_v25, 1e-30 }
 0x3f2   : > { %v1512_v53 = vpop.xlane.xlu0 %1511 }
 0x3f3   : > { %v1522_v10 = vadd.f32 %v1512_v53, %v1498_v50  ;;  %v1587_v53 = vmul.f32 %v3402_v63, %v1539_v42  ;;  %v1721_v63 = vld [vmem:[#allocation3 + $0x10] sm:$0xff] (!%p2186_p6) }
 0x3f4   : > { %v1814_v16 = vld [vmem:[#allocation3 + $0x78] sm:$0xff] (!%p2186_p6) }
 0x3f5   : > { %1530 = vst.msk [vmem:[#allocation3 + $0x68] sm:$0xff] %vm1136_vm2, %v1522_v10  ;;  %v1822_v62 = vmax.f32 (!%p2186_p6), %v1814_v16, 1e-30 }
 0x3fa   : > { %v1575_v37 = vpop.permute.xlu0 %1574 }
 0x3fb   : > { %v1588_v8 = vmul.f32 %v1575_v37, %v1540_v22 }
 0x401   : > { %v2291_v31 = vpop.f32.mrb[8].mxu1 }
 0x402   : > { %v1272_v3 = vadd.f32 %v2291_v31, %v1195_v54  ;;  %v1239_v27 = vpop.f32.mrb[9].mxu1  ;;  %v1722_v54 = vld [vmem:[#allocation3 + $0x18] sm:$0xff] (!%p2186_p6)  ;;  %v1729_v31 = vmax.f32 (!%p2186_p6), %v1721_v63, 1e-30 }
 0x403   : > { %v1270_v9 = vadd.f32 %v1239_v27, %v1193_v60  ;;  %v2292_v12 = vpop.f32.mrb[10].mxu1  ;;  %v2727_v60 = vmov (!%p2186_p6), 0   ;;  %v1720_v27 = vld [vmem:[#allocation3 + $0x8] sm:$0xff] (!%p2186_p6) }
 0x404   : > { %1281 = vst.msk [vmem:[#allocation4 + $0x10] sm:$0xff] %vm1278_vm3, %v1272_v3  ;;  %v1273_v17 = vadd.f32 %v2292_v12, %v1196_v57  ;;  %v1242_v11 = vpop.f32.mrb[11].mxu1  ;;  %2545 = vset.pattern.permute.xlu1 (!%p2186_p6), %v2727_v60  ;;  %2544 = vset.pattern.permute.xlu0 (!%p2186_p6), %v2727_v60  ;;  %v1727_v57 = vmax.f32 (!%p2186_p6), %v1719_v39, 1e-30  ;;  %v1730_v3 = vmax.f32 (!%p2186_p6), %v1722_v54, 1e-30  ;;  %2546 = vrcp.f32 (!%p2186_p6), %v1729_v31 }
 0x405   : > { %1279 = vst.msk [vmem:[#allocation4] sm:$0xff] %vm1278_vm3, %v1270_v9  ;;  %v1271_v14 = vadd.f32 %v1242_v11, %v1194_v44  ;;  %v1724_v44 = vld [vmem:[#allocation3 + $0x28] sm:$0xff] (!%p2186_p6)  ;;  %v1728_v9 = vmax.f32 (!%p2186_p6), %v1720_v27, 1e-30  ;;  %v1723_v12 = vld [vmem:[#allocation3 + $0x20] sm:$0xff] (!%p2186_p6) }
 0x406   : > { %1282 = vst.msk [vmem:[#allocation4 + $0x18] sm:$0xff] %vm1278_vm3, %v1273_v17  ;;  %2548 = vrcp.f32 (!%p2186_p6), %v1727_v57  ;;  %v1732_v17 = vmax.f32 (!%p2186_p6), %v1724_v44, 1e-30  ;;  %v1731_v11 = vmax.f32 (!%p2186_p6), %v1723_v12, 1e-30 }
 0x407   : > { %1280 = vst.msk [vmem:[#allocation4 + $0x8] sm:$0xff] %vm1278_vm3, %v1271_v14  ;;  %2550 = vrcp.f32 (!%p2186_p6), %v1730_v3  ;;  %v1726_v14 = vld [vmem:[#allocation3 + $0x38] sm:$0xff] (!%p2186_p6) }
 0x408   : > { %2552 = vrcp.f32 (!%p2186_p6), %v1728_v9  ;;  %v1734_v52 = vmax.f32 (!%p2186_p6), %v1726_v14, 1e-30 }
 0x409   : > { %2554 = vrcp.f32 (!%p2186_p6), %v1732_v17 }
 0x40a   : > { %2556 = vrcp.f32 (!%p2186_p6), %v1731_v11 }
 0x40b   : > { %2558 = vrcp.f32 (!%p2186_p6), %v1734_v52  ;;  %v1745_v57 = vld [vmem:[#allocation4 + $0x10] sm:$0xff] (!%p2186_p6) }
 0x40c   : > { %2560 = vrcp.f32 (!%p2186_p6), %v1733_v61 }
 0x40d   : > { %v1746_v54 = vld [vmem:[#allocation4 + $0x18] sm:$0xff] (!%p2186_p6) }
 0x427   : > { %v2295_v40 = vpop.f32.mrb[12].mxu1 }
 0x428   : > { %v1276_v58 = vadd.f32 %v2295_v40, %v1199_v28  ;;  %v1255_v33 = vpop.f32.mrb[13].mxu1  ;;  %v1808_v28 = vld [vmem:[#allocation3 + $0x48] sm:$0xff] (!%p2186_p6) }
 0x429   : > { %v1274_v49 = vadd.f32 %v1255_v33, %v1197_v4  ;;  %v2296_v47 = vpop.f32.mrb[14].mxu1  ;;  %v2547_v4 = vpop.eup (!%p2186_p6), %2546  ;;  %v1816_v40 = vmax.f32 (!%p2186_p6), %v1808_v28, 1e-30  ;;  %v1810_v33 = vld [vmem:[#allocation3 + $0x58] sm:$0xff] (!%p2186_p6) }
 0x42a   : > { %1285 = vst.msk [vmem:[#allocation4 + $0x30] sm:$0xff] %vm1278_vm3, %v1276_v58  ;;  %v1277_v59 = vadd.f32 %v2296_v47, %v1200_v38  ;;  %v1258_v55 = vpop.f32.mrb[15].mxu1  ;;  %v2549_v38 = vpop.eup (!%p2186_p6), %2548  ;;  %1763 = vperm.xlu1 (!%p2186_p6), %2545, %v2547_v4   ;;  %v1815_v58 = vmax.f32 (!%p2186_p6), %v1807_v41, 1e-30 }
 0x42b   : > { %1283 = vst.msk [vmem:[#allocation4 + $0x20] sm:$0xff] %vm1278_vm3, %v1274_v49  ;;  %v1275_v23 = vadd.f32 %v1258_v55, %v1198_v51  ;;  %v2551_v51 = vpop.eup (!%p2186_p6), %2550  ;;  %1753 = vperm.xlu0 (!%p2186_p6), %2544, %v2549_v38   ;;  %v1809_v49 = vld [vmem:[#allocation3 + $0x50] sm:$0xff] (!%p2186_p6)  ;;  %2562 = vrcp.f32 (!%p2186_p6), %v1816_v40 }
 0x42c   : > { %1286 = vst.msk [vmem:[#allocation4 + $0x38] sm:$0xff] %vm1278_vm3, %v1277_v59  ;;  %v2553_v47 = vpop.eup (!%p2186_p6), %2552  ;;  %v1818_v59 = vmax.f32 (!%p2186_p6), %v1810_v33, 1e-30  ;;  %2564 = vrcp.f32 (!%p2186_p6), %v1815_v58  ;;  %v1817_v55 = vmax.f32 (!%p2186_p6), %v1809_v49, 1e-30 }
 0x42d   : > { %1284 = vst.msk [vmem:[#allocation4 + $0x28] sm:$0xff] %vm1278_vm3, %v1275_v23  ;;  %v1812_v23 = vld [vmem:[#allocation3 + $0x68] sm:$0xff] (!%p2186_p6)  ;;  %v2555_v7 = vpop.eup (!%p2186_p6), %2554 }
 0x42e   : > { %1768 = vperm.xlu1 (!%p2186_p6), %2545, %v2551_v51   ;;  %v2557_v22 = vpop.eup (!%p2186_p6), %2556  ;;  %2566 = vrcp.f32 (!%p2186_p6), %v1818_v59  ;;  %v1820_v37 = vmax.f32 (!%p2186_p6), %v1812_v23, 1e-30 }
 0x42f   : > { %1758 = vperm.xlu0 (!%p2186_p6), %2544, %v2553_v47   ;;  %2568 = vrcp.f32 (!%p2186_p6), %v1817_v55  ;;  %v2559_v32 = vpop.eup (!%p2186_p6), %2558 }
 0x430   : > { %v2561_v34 = vpop.eup (!%p2186_p6), %2560  ;;  %2570 = vrcp.f32 (!%p2186_p6), %v1820_v37 }
 0x431   : > { %2572 = vrcp.f32 (!%p2186_p6), %v1819_v1  ;;  %v1749_v1 = vld [vmem:[#allocation4 + $0x30] sm:$0xff] (!%p2186_p6) }
 0x432   : > { %1778 = vperm.xlu1 (!%p2186_p6), %2545, %v2555_v7   ;;  %2574 = vrcp.f32 (!%p2186_p6), %v1822_v62  ;;  %v1747_v4 = vld [vmem:[#allocation4 + $0x20] sm:$0xff] (!%p2186_p6) }
 0x433   : > { %1773 = vperm.xlu0 (!%p2186_p6), %2544, %v2557_v22   ;;  %v1750_v37 = vld [vmem:[#allocation4 + $0x38] sm:$0xff] (!%p2186_p6) }
 0x434   : > { %v1748_v41 = vld [vmem:[#allocation4 + $0x28] sm:$0xff] (!%p2186_p6) }
 0x435   : > { %v2563_v42 = vpop.eup (!%p2186_p6), %2562 }
 0x436   : > { %1788 = vperm.xlu1 (!%p2186_p6), %2545, %v2559_v32  }
 0x437   : > { %1783 = vperm.xlu0 (!%p2186_p6), %2544, %v2561_v34  }
 0x438   : > { %v2315_v15 = vpop.f32.mrb[32].mxu0 }
 0x439   : > { %v1693_v56 = vadd.f32 %v2315_v15, %v1584_v48  ;;  %v2319_v18 = vpop.f32.mrb[16].mxu1  ;;  %v1660_v26 = vpop.f32.mrb[33].mxu0  ;;  %1718 = sbr.rel (%p2186_p6) target bundleno = 1554 (0x612), region = 89  ;;  %v1813_v48 = vld [vmem:[#allocation3 + $0x70] sm:$0xff] (!%p2186_p6) }
 0x43a   : > { %v1697_v30 = vadd.f32 %v2319_v18, %v1588_v8  ;;  %v1691_v43 = vadd.f32 %v1660_v26, %v1582_v19  ;;  %v1676_v5 = vpop.f32.mrb[17].mxu1  ;;  %v2316_v50 = vpop.f32.mrb[34].mxu0  ;;  %v1821_v19 = vmax.f32 (!%p2186_p6), %v1813_v48, 1e-30  ;;  %1846 = vperm.xlu1 (!%p2186_p6), %2545, %v2563_v42  }
 0x43b   : > { %1701 = vst.msk [vmem:[#allocation4 + $0x50] sm:$0xff] %vm1278_vm3, %v1693_v56  ;;  %v1695_v2 = vadd.f32 %v1676_v5, %v1586_v35  ;;  %v1694_v10 = vadd.f32 %v2316_v50, %v1585_v21  ;;  %v2320_v45 = vpop.f32.mrb[18].mxu1  ;;  %v1663_v46 = vpop.f32.mrb[35].mxu0 }
 0x43c   : > { %1705 = vst.msk [vmem:[#allocation4 + $0x70] sm:$0xff] %vm1278_vm3, %v1697_v30  ;;  %1699 = vst.msk [vmem:[#allocation4 + $0x40] sm:$0xff] %vm1278_vm3, %v1691_v43  ;;  %v1698_v20 = vadd.f32 %v2320_v45, %v1589_v6  ;;  %v1692_v36 = vadd.f32 %v1663_v46, %v1583_v29  ;;  %v1679_v13 = vpop.f32.mrb[19].mxu1  ;;  %v2565_v8 = vpop.eup (!%p2186_p6), %2564  ;;  %2576 = vrcp.f32 (!%p2186_p6), %v1821_v19  ;;  %v1743_v46 = vld [vmem:[#allocation4] sm:$0xff] (!%p2186_p6) }
 0x43d   : > { %1703 = vst.msk [vmem:[#allocation4 + $0x60] sm:$0xff] %vm1278_vm3, %v1695_v2  ;;  %1702 = vst.msk [vmem:[#allocation4 + $0x58] sm:$0xff] %vm1278_vm3, %v1694_v10  ;;  %v1696_v24 = vadd.f32 %v1679_v13, %v1587_v53  ;;  %v2567_v15 = vpop.eup (!%p2186_p6), %2566  ;;  %1841 = vperm.xlu0 (!%p2186_p6), %2544, %v2565_v8   ;;  %v1744_v10 = vld [vmem:[#allocation4 + $0x8] sm:$0xff] (!%p2186_p6) }
 0x43e   : > { %1706 = vst.msk [vmem:[#allocation4 + $0x78] sm:$0xff] %vm1278_vm3, %v1698_v20  ;;  %1700 = vst.msk [vmem:[#allocation4 + $0x48] sm:$0xff] %vm1278_vm3, %v1692_v36  ;;  %v2569_v35 = vpop.eup (!%p2186_p6), %2568  ;;  %1856 = vperm.xlu1 (!%p2186_p6), %2545, %v2567_v15  }
 0x43f   : > { %1704 = vst.msk [vmem:[#allocation4 + $0x68] sm:$0xff] %vm1278_vm3, %v1696_v24  ;;  %v2571_v21 = vpop.eup (!%p2186_p6), %2570 }
 0x440   : > { %v2573_v56 = vpop.eup %2572 }
 0x441   : > { %1851 = vperm.xlu0 %2544, %v2569_v35   ;;  %v2575_v18 = vpop.eup %2574 }
 0x442   : > { %1866 = vperm.xlu1 %2545, %v2571_v21   ;;  %v1833_v27 = vld [vmem:[#allocation4 + $0x50] sm:$0xff] }
 0x443   : > { %v1831_v20 = vld [vmem:[#allocation4 + $0x40] sm:$0xff]  ;;  %v1837_v16 = vld [vmem:[#allocation4 + $0x70] sm:$0xff] }
 0x444   : > { %v1834_v31 = vld [vmem:[#allocation4 + $0x58] sm:$0xff]  ;;  %v1835_v58 = vld [vmem:[#allocation4 + $0x60] sm:$0xff] }
 0x445   : > { %1861 = vperm.xlu0 %2544, %v2573_v56   ;;  %v1832_v45 = vld [vmem:[#allocation4 + $0x48] sm:$0xff]  ;;  %v1838_v25 = vld [vmem:[#allocation4 + $0x78] sm:$0xff] }
 0x446   : > { %v2577_v26 = vpop.eup %2576  ;;  %1876 = vperm.xlu1 %2545, %v2575_v18   ;;  %v1836_v61 = vld [vmem:[#allocation4 + $0x68] sm:$0xff] }
 0x449   : > { %1871 = vperm.xlu0 %2544, %v2577_v26  }
 0x4a9   : > { %v1764_v29 = vpop.permute.xlu1 %1763 }
 0x4aa   : > { %v1754_v6 = vpop.permute.xlu0 %1753  ;;  %v1793_v0 = vmul.f32 %v1764_v29, %v1745_v57 }
 0x4ab   : > { %v1791_v39 = vmul.f32 %v1754_v6, %v1743_v46 }
 0x4ad   : > { %v1769_v30 = vpop.permute.xlu1 %1768 }
 0x4ae   : > { %v1759_v43 = vpop.permute.xlu0 %1758  ;;  %v1794_v12 = vmul.f32 %v1769_v30, %v1746_v54 }
 0x4af   : > { %v1792_v13 = vmul.f32 %v1759_v43, %v1744_v10 }
 0x4b1   : > { %v1779_v5 = vpop.permute.xlu1 %1778 }
 0x4b2   : > { %v1774_v50 = vpop.permute.xlu0 %1773  ;;  %v1796_v55 = vmul.f32 %v1779_v5, %v1748_v41 }
 0x4b3   : > { %v1795_v23 = vmul.f32 %v1774_v50, %v1747_v4 }
 0x4b5   : > { %v1789_v53 = vpop.permute.xlu1 %1788 }
 0x4b6   : > { %v1784_v2 = vpop.permute.xlu0 %1783  ;;  %v1798_v15 = vmul.f32 %v1789_v53, %v1750_v37 }
 0x4b7   : > { %v1797_v35 = vmul.f32 %v1784_v2, %v1749_v1 }
 0x4b9   : > { %v1847_v36 = vpop.permute.xlu1 %1846 }
 0x4ba   : > { %v1880_v24 = vmul.f32 %v1847_v36, %v1832_v45 }
 0x4bc   : > { %v1842_v63 = vpop.permute.xlu0 %1841  ;;  %v1888_v3 = vadd.f32 %v1880_v24, %v1792_v13 }
 0x4bd   : > { %v1879_v60 = vmul.f32 %v1842_v63, %v1831_v20  ;;  %v1857_v9 = vpop.permute.xlu1 %1856 }
 0x4be   : > { %v1882_v17 = vmul.f32 %v1857_v9, %v1834_v31  ;;  %v1896_v14 = vmul.f32 0.5, %v1888_v3 }
 0x4bf   : > { %v1887_v44 = vadd.f32 %v1879_v60, %v1791_v39 }
 0x4c0   : > { %v1852_v11 = vpop.permute.xlu0 %1851  ;;  %v1890_v40 = vadd.f32 %v1882_v17, %v1794_v12  ;;  %v1906_v38 = vsel %vm1278_vm3, %v1896_v14, -inf }
 0x4c1   : > { %v1881_v52 = vmul.f32 %v1852_v11, %v1833_v27  ;;  %v1895_v28 = vmul.f32 0.5, %v1887_v44  ;;  %v1867_v51 = vpop.permute.xlu1 %1866  ;;  %1907 = vmax.xlane.f32.xlu1 %v1906_v38 }
 0x4c2   : > { %v1884_v47 = vmul.f32 %v1867_v51, %v1836_v61  ;;  %v1898_v32 = vmul.f32 0.5, %v1890_v40 }
 0x4c3   : > { %v1889_v33 = vadd.f32 %v1881_v52, %v1793_v0  ;;  %v1903_v49 = vsel %vm1278_vm3, %v1895_v28, -inf }
 0x4c4   : > { %1904 = vmax.xlane.f32.xlu0 %v1903_v49  ;;  %v1862_v59 = vpop.permute.xlu0 %1861  ;;  %v1892_v48 = vadd.f32 %v1884_v47, %v1796_v55  ;;  %v1912_v18 = vsel %vm1278_vm3, %v1898_v32, -inf }
 0x4c5   : > { %v1883_v7 = vmul.f32 %v1862_v59, %v1835_v58  ;;  %v1897_v22 = vmul.f32 0.5, %v1889_v33  ;;  %v1877_v62 = vpop.permute.xlu1 %1876 }
 0x4c6   : > { %v1886_v42 = vmul.f32 %v1877_v62, %v1838_v25  ;;  %v1900_v30 = vmul.f32 0.5, %v1892_v48 }
 0x4c7   : > { %v1891_v34 = vadd.f32 %v1883_v7, %v1795_v23  ;;  %v1909_v19 = vsel %vm1278_vm3, %v1897_v22, -inf }
 0x4c8   : > { %1910 = vmax.xlane.f32.xlu0 %v1909_v19  ;;  %v1872_v8 = vpop.permute.xlu0 %1871  ;;  %v1894_v26 = vadd.f32 %v1886_v42, %v1798_v15  ;;  %v1918_v5 = vsel %vm1278_vm3, %v1900_v30, -inf }
 0x4c9   : > { %v1885_v21 = vmul.f32 %v1872_v8, %v1837_v16  ;;  %v1899_v56 = vmul.f32 0.5, %v1891_v34 }
 0x4ca   : > { %v1902_v10 = vmul.f32 0.5, %v1894_v26 }
 0x4cb   : > { %v1893_v29 = vadd.f32 %v1885_v21, %v1797_v35  ;;  %v1915_v6 = vsel %vm1278_vm3, %v1899_v56, -inf }
 0x4cc   : > { %1913 = vmax.xlane.f32.xlu0 %v1912_v18  ;;  %1916 = vmax.xlane.f32.xlu1 %v1915_v6  ;;  %v1924_v53 = vsel %vm1278_vm3, %v1902_v10, -inf }
 0x4cd   : > { %v1901_v43 = vmul.f32 0.5, %v1893_v29 }
 0x4cf   : > { %v1921_v50 = vsel %vm1278_vm3, %v1901_v43, -inf }
 0x4d0   : > { %1919 = vmax.xlane.f32.xlu0 %v1918_v5  ;;  %1922 = vmax.xlane.f32.xlu1 %v1921_v50 }
 0x4d4   : > { %1925 = vmax.xlane.f32.xlu0 %v1924_v53 }
 0x54e   : > { %v1908_v2 = vpop.xlane.xlu1 %1907 }
 0x54f   : > { %v3473_v45 = vsub.f32 %v1896_v14, %v1908_v2 }
 0x551   : > { %v1905_v46 = vpop.xlane.xlu0 %1904  ;;  %v1937_v36 = vmul.f32 1.442695, %v3473_v45 }
 0x552   : > { %v3475_v20 = vsub.f32 %v1895_v28, %v1905_v46 }
 0x553   : > { %2578 = vpow2.f32 %v1937_v36 }
 0x554   : > { %v1935_v13 = vmul.f32 1.442695, %v3475_v20 }
 0x555   : > { %v1911_v24 = vpop.xlane.xlu0 %1910 }
 0x556   : > { %2580 = vpow2.f32 %v1935_v13  ;;  %v3479_v63 = vsub.f32 %v1897_v22, %v1911_v24 }
 0x558   : > { %v1939_v39 = vmul.f32 1.442695, %v3479_v63 }
 0x559   : > { %v1917_v54 = vpop.xlane.xlu1 %1916  ;;  %v1914_v60 = vpop.xlane.xlu0 %1913 }
 0x55a   : > { %2582 = vpow2.f32 %v1939_v39  ;;  %v3482_v31 = vsub.f32 %v1899_v56, %v1917_v54  ;;  %v3484_v57 = vsub.f32 %v1898_v32, %v1914_v60 }
 0x55c   : > { %v1943_v3 = vmul.f32 1.442695, %v3482_v31  ;;  %v1941_v27 = vmul.f32 1.442695, %v3484_v57 }
 0x55d   : > { %v1923_v44 = vpop.xlane.xlu1 %1922  ;;  %v1920_v9 = vpop.xlane.xlu0 %1919 }
 0x55e   : > { %2584 = vpow2.f32 %v1943_v3  ;;  %v3488_v12 = vsub.f32 %v1901_v43, %v1923_v44  ;;  %v3490_v17 = vsub.f32 %v1900_v30, %v1920_v9  ;;  %v2579_v11 = vpop.eup %2578 }
 0x55f   : > { %2586 = vpow2.f32 %v1941_v27  ;;  %v1954_v61 = vsel %vm1278_vm3, %v2579_v11, 0.0 }
 0x560   : > { %v2581_v14 = vpop.eup %2580  ;;  %v1947_v0 = vmul.f32 1.442695, %v3488_v12  ;;  %v1945_v52 = vmul.f32 1.442695, %v3490_v17  ;;  %1955 = vadd.xlane.f32.xlu0 %v1954_v61 }
 0x561   : > { %v1926_v28 = vpop.xlane.xlu0 %1925  ;;  %v1951_v41 = vsel %vm1278_vm3, %v2581_v14, 0.0 }
 0x562   : > { %2588 = vpow2.f32 %v1947_v0  ;;  %v3496_v4 = vsub.f32 %v1902_v10, %v1926_v28  ;;  %1952 = vadd.xlane.f32.xlu1 %v1951_v41 }
 0x563   : > { %2590 = vpow2.f32 %v1945_v52 }
 0x564   : > { %v2583_v40 = vpop.eup %2582  ;;  %v1949_v38 = vmul.f32 1.442695, %v3496_v4 }
 0x565   : > { %v1957_v58 = vsel %vm1278_vm3, %v2583_v40, 0.0 }
 0x566   : > { %2592 = vpow2.f32 %v1949_v38  ;;  %1958 = vadd.xlane.f32.xlu1 %v1957_v58 }
 0x568   : > { %v2585_v33 = vpop.eup %2584 }
 0x569   : > { %v2587_v51 = vpop.eup %2586  ;;  %v1963_v49 = vsel %vm1278_vm3, %v2585_v33, 0.0 }
 0x56a   : > { %1964 = vadd.xlane.f32.xlu1 %v1963_v49  ;;  %v1960_v47 = vsel %vm1278_vm3, %v2587_v51, 0.0 }
 0x56b   : > { %1961 = vadd.xlane.f32.xlu0 %v1960_v47 }
 0x56c   : > { %v2589_v59 = vpop.eup %2588 }
 0x56d   : > { %v2591_v55 = vpop.eup %2590  ;;  %v1969_v23 = vsel %vm1278_vm3, %v2589_v59, 0.0 }
 0x56e   : > { %1970 = vadd.xlane.f32.xlu1 %v1969_v23  ;;  %v1966_v7 = vsel %vm1278_vm3, %v2591_v55, 0.0 }
 0x56f   : > { %1967 = vadd.xlane.f32.xlu0 %v1966_v7 }
 0x570   : > { %v2593_v25 = vpop.eup %2592 }
 0x571   : > { %v1972_v22 = vsel %vm1278_vm3, %v2593_v25, 0.0 }
 0x573   : > { %1973 = vadd.xlane.f32.xlu0 %v1972_v22 }
 0x5ed   : > { %v1956_v37 = vpop.xlane.xlu0 %1955 }
 0x5ee   : > { %2594 = vlog2.f32 %v1956_v37 }
 0x5ef   : > { %v1953_v1 = vpop.xlane.xlu1 %1952 }
 0x5f0   : > { %2596 = vlog2.f32 %v1953_v1 }
 0x5f3   : > { %v1959_v16 = vpop.xlane.xlu1 %1958 }
 0x5f4   : > { %2598 = vlog2.f32 %v1959_v16 }
 0x5f7   : > { %v1965_v32 = vpop.xlane.xlu1 %1964 }
 0x5f8   : > { %2600 = vlog2.f32 %v1965_v32  ;;  %v1962_v48 = vpop.xlane.xlu0 %1961  ;;  %v2595_v34 = vpop.eup %2594 }
 0x5f9   : > { %2602 = vlog2.f32 %v1962_v48  ;;  %v1978_v19 = vmul.f32 0.6931472, %v2595_v34 }
 0x5fa   : > { %v2597_v62 = vpop.eup %2596 }
 0x5fb   : > { %v1976_v42 = vmul.f32 0.6931472, %v2597_v62  ;;  %v1971_v8 = vpop.xlane.xlu1 %1970  ;;  %v1992_v15 = vsub.f32 %v3473_v45, %v1978_v19 }
 0x5fc   : > { %2604 = vlog2.f32 %v1971_v8  ;;  %v1968_v35 = vpop.xlane.xlu0 %1967 }
 0x5fd   : > { %v1991_v21 = vsub.f32 %v3475_v20, %v1976_v42  ;;  %2606 = vlog2.f32 %v1968_v35  ;;  %v2000_v18 = vsel %vm1278_vm3, %v1992_v15, 0.0 }
 0x5fe   : > { %v2599_v56 = vpop.eup %2598  ;;  %2008 = vst [vmem:[%s2880_s9 + $0x8] sm:$0xff] %v2000_v18 }
 0x5ff   : > { %v1999_v26 = vsel %vm1278_vm3, %v1991_v21, 0.0  ;;  %v1980_v29 = vmul.f32 0.6931472, %v2599_v56 }
 0x600   : > { %2007 = vst [vmem:[%s2880_s9] sm:$0xff] %v1999_v26  ;;  %v1974_v6 = vpop.xlane.xlu0 %1973 }
 0x601   : > { %v1993_v30 = vsub.f32 %v3479_v63, %v1980_v29  ;;  %2608 = vlog2.f32 %v1974_v6 }
 0x602   : > { %v2601_v43 = vpop.eup %2600 }
 0x603   : > { %v2603_v5 = vpop.eup %2602  ;;  %v2001_v50 = vsel %vm1278_vm3, %v1993_v30, 0.0  ;;  %v1984_v10 = vmul.f32 0.6931472, %v2601_v43 }
 0x604   : > { %2009 = vst [vmem:[%s2880_s9 + $0x10] sm:$0xff] %v2001_v50  ;;  %v1982_v53 = vmul.f32 0.6931472, %v2603_v5 }
 0x605   : > { %v1995_v2 = vsub.f32 %v3482_v31, %v1984_v10 }
 0x606   : > { %v2605_v45 = vpop.eup %2604  ;;  %v1994_v46 = vsub.f32 %v3484_v57, %v1982_v53 }
 0x607   : > { %v2607_v20 = vpop.eup %2606  ;;  %v2003_v36 = vsel %vm1278_vm3, %v1995_v2, 0.0  ;;  %v1988_v13 = vmul.f32 0.6931472, %v2605_v45 }
 0x608   : > { %2011 = vst [vmem:[%s2880_s9 + $0x20] sm:$0xff] %v2003_v36  ;;  %v2002_v24 = vsel %vm1278_vm3, %v1994_v46, 0.0  ;;  %v1986_v63 = vmul.f32 0.6931472, %v2607_v20 }
 0x609   : > { %2010 = vst [vmem:[%s2880_s9 + $0x18] sm:$0xff] %v2002_v24  ;;  %v1997_v39 = vsub.f32 %v3488_v12, %v1988_v13 }
 0x60a   : > { %v1996_v54 = vsub.f32 %v3490_v17, %v1986_v63 }
 0x60b   : > { %v2609_v60 = vpop.eup %2608  ;;  %v2005_v31 = vsel %vm1278_vm3, %v1997_v39, 0.0 }
 0x60c   : > { %2013 = vst [vmem:[%s2880_s9 + $0x30] sm:$0xff] %v2005_v31  ;;  %v2004_v57 = vsel %vm1278_vm3, %v1996_v54, 0.0  ;;  %v1990_v3 = vmul.f32 0.6931472, %v2609_v60 }
 0x60d   : > { %2012 = vst [vmem:[%s2880_s9 + $0x28] sm:$0xff] %v2004_v57 }
 0x60e   : > { %v1998_v27 = vsub.f32 %v3496_v4, %v1990_v3 }
 0x610   : > { %v2006_v44 = vsel %vm1278_vm3, %v1998_v27, 0.0 }
 0x611   : > { %2014 = vst [vmem:[%s2880_s9 + $0x38] sm:$0xff] %v2006_v44 }
 0x612 PF: > { %s2193_s23 = sshll.u32 %s2708_s24, 10  ;;  %s2029_s10 = sshll.u32 %s2880_s9, 4  ;;  %s3536_s10 = int_to_ptr.vmem [resolvable:$true] %s2029_s10 }
 0x613   : > { %s3533_s13 = scalar_lea.hbm %s3603_s5, %s2193_s23  ;;  %s3616_s0 = sand.u32 1, %s2688_s19  }
 0x614   : > { %s3540_s26 = scalar_lea.sflag [#allocation7], %s3616_s0  ;;  %s2610_s30 = scalar_lea.vmem %s3536_s10, 1024 }
 0x615   : > { %p2611_p8 = scmp.ne.s32.totalorder %s3536_s10, %s2610_s30  ;;  %s2728_s24 = smov [#allocation6]  }
 0x616   : > { %s2614_s17 = sshll.u32 %s2728_s24, 4  ;;  %s2615_s17 = int_to_ptr.vmem [resolvable:$false] %s2614_s17 }
 0x617   : > { %p2612_p9 = pnand %p2611_p8, %p2833_p7  ;;  %s2616_s28 = scalar_lea.vmem %s2615_s17, 2048 }
 0x618   : > { %p2617_p11 = scmp.lt.s32.totalorder %s3536_s10, %s2615_s17  ;;  %p2618_p13 = scmp.lt.s32.totalorder %s2616_s28, %s2610_s30 }
 0x619   : > { %p2613_p10 = pneg %p2612_p9 }
 0x61a   : > { %p2619_p0 = por %p2618_p13, %p2617_p11 }
 0x61c   : > { %p2620_p1 = pnand %p2619_p0, %p2613_p10 }
 0x61e   : > { %2623 = shalt.err (!%p2620_p1)
}
 0x61f   : > { %s2624_s9 = scalar_lea.hbm %s3533_s13, 1024  ;;  %s2628_s12 = scalar_lea.hbm %s3603_s5, 2048 }
 0x620   : > { %p2625_p2 = scmp.ne.s32.totalorder %s3533_s13, %s2624_s9  ;;  %p2629_p5 = scmp.lt.u32.totalorder %s3533_s13, %s3603_s5 }
 0x621   : > { %p2630_p6 = scmp.lt.u32.totalorder %s2628_s12, %s2624_s9  ;;  %p2632_p9 = scmp.lt.u32.totalorder %s2624_s9, %s3533_s13 }
 0x622   : > { %p2626_p3 = pnand %p2625_p2, %p2833_p7 }
 0x623   : > { %p2631_p8 = por %p2630_p6, %p2629_p5 }
 0x624   : > { %p2627_p4 = pneg %p2626_p3 }
 0x625   : > { %p2633_p10 = por %p2632_p9, %p2631_p8 }
 0x627   : > { %p2634_p11 = pnand %p2633_p10, %p2627_p4 }
 0x629   : > { %2637 = shalt.err (!%p2634_p11)
}
 0x62a   : > { %s2729_s21 = smov 128   ;;  %s2730_s6 = smov 8  }
 0x62b   : > { %2337 = dma.vmem_to_hbm [thread:$0]  (%p2833_p7), %s3536_s10, 1024, %s3533_s13, %s3540_s26, %s2729_s21, %s2729_s21, %s2730_s6  }
 0x62c PF: > { %p2343_p13 = scmp.ge.s32.totalorder %s2720_s27, 2  ;;  %s2044_s0 = sand.u32 1, %s2684_s18  }
 0x62d   : > { %s2045_s30 = scalar_lea.sflag [#allocation7], %s2044_s0 }
 0x62e   : > { %p2340_p0 = pnand %p2343_p13, %p2841_p12 }
 0x630   : > { %2679 = dma.done.wait (!%p2340_p0), %s2045_s30, 1024  }
 0x631   : > { %2681 = vsyncadd (!%p2340_p0), %s2045_s30, 4294966272  ;;  %s18_s27 = sadd.s32 1, %s2720_s27   ;;  %s3617_s24 = sld [smem:[#allocation9_spill]] }
 0x632   : > { %p15_p1 = scmp.ge.s32.totalorder %s18_s27, 6   ;;  %s3618_s11 = sld [smem:[#allocation10_spill]] }
 0x633   : > { %s3619_s26 = sld [smem:[#allocation11_spill]]  ;;  %s3620_s18 = smov %s2688_s19 }
 0x634   : > { %s3621_s19 = smov %s2692_s20  ;;  %s3622_s20 = smov %s2846_s15 }
 0x635   : > { %s3623_s21 = smov %s2700_s22  ;;  %s3624_s22 = smov %s2849_s16 }
 0x636   : > { %s3625_s23 = smov %s2712_s25  ;;  %17 = sbr.rel (!%p15_p1) target bundleno = 8 (0x8), region = 138 }
 0x638   : > { %s3626_s25 = smov %s3618_s11 }
 0x63d   :  { %2050 = vsyncpa [#allocation7], 1 }
 0x63e   :  { %2052 = vsyncpa [#allocation7 + $0x1], 1 }

// kernel: gat_forward.2
= control target key start
LH: loop header
LB: loop body
LE: loop exit
PB: predicated region body
PF: predicated region fallthrough
CT: control target
= control target key end

     0   :  { %s2775_s18 = smov 0   ;;  %s2777_s19 = smov 0   ;;  %s3501_s0 = inlined_call_operand.vmem [shape: bf16[192,384], index: 0, kind: input, shape index: {}]   ;;  %s3502_s1 = inlined_call_operand.vmem [shape: bf16[384,128], index: 1, kind: input, shape index: {}, may-alias: {1,2}]   ;;  %s3503_s2 = inlined_call_operand.vmem [shape: bf16[384,128], index: 2, kind: input, shape index: {}, may-alias: {1,2}]   ;;  %s3504_s3 = inlined_call_operand.vmem [shape: bf16[128,256], index: 3, kind: input, shape index: {}]   ;;  %s3505_s4 = inlined_call_operand.vmem [shape: bf16[128,128], index: 4, kind: input, shape index: {}]   ;;  %s3506_s5 = inlined_call_operand.vmem [shape: bf16[192,128], index: 5, kind: output, shape index: {}]  }
   0x1   :  { %s2779_s20 = smov 0   ;;  %s2781_s21 = smov 0  }
   0x2   :  { %s2783_s22 = smov 0   ;;  %s2785_s23 = smov 0  }
   0x3   :  { %s2787_s24 = smov 0  }
   0x4 LB: > { %s24_s25 = sadd.s32 1, %s2728_s22  ;;  %s27_s26 = sadd.s32 1, %s2732_s23  ;;  %s2736_s24 = sphi %s2787_s24, %s15_s24   ;;  %s2732_s23 = sphi %s2785_s23, %s3512_s23   ;;  %s2728_s22 = sphi %s2783_s22, %s3511_s22   ;;  %s2724_s21 = sphi %s2781_s21, %s3510_s21   ;;  %s2720_s20 = sphi %s2779_s20, %s3509_s20   ;;  %s2716_s19 = sphi %s2777_s19, %s3508_s19   ;;  %s2712_s18 = sphi %s2775_s18, %s3507_s18  }
   0x5   : > { %p25_p0 = scmp.ge.s32.totalorder %s24_s25, 3  ;;  %p43_p1 = scmp.ne.s32.totalorder %s2716_s19, %s2712_s18 }
   0x6   : > { %p44_p2 = scmp.eq.s32.totalorder %s2736_s24, 0  ;;  %s36_s30 = sadd.s32 1, %s2716_s19 }
   0x7   : > { %s3514_s25 = smov (%p25_p0, %s24_s25), 0  ;;  %s3516_s26 = smov (!%p25_p0, %s27_s26), %s2732_s23 }
   0x8   : > { %p45_p3 = por %p44_p2, %p43_p1  ;;  %p29_p4 = scmp.ge.s32.totalorder %s3516_s26, 3 }
   0x9   : > { %s32_s27 = ssub.s32 %s2728_s22, %s3514_s25  ;;  %p2169_p6 = scmp.ge.s32.totalorder %s2736_s24, 9 }
   0xa   : > { %s3518_s26 = smov (%p29_p4, %s3516_s26), 0 }
   0xb   : > { %s31_s28 = ssub.s32 %s2732_s23, %s3518_s26  ;;  %195 = sbr.rel (%p2169_p6) target bundleno = 30 (0x1e), region = 24 }
   0xc   : > { %s33_s29 = sor.u32 %s32_s27, %s31_s28 }
   0xd   : > { %p34_p5 = scmp.eq.s32.totalorder %s33_s29, 0 }
   0xf   : > { %s2826_s6 = scalar_select %p34_p5, %s2716_s19, %s36_s30  }
  0x12   : > { %198 = sbr.rel (!%p45_p3) target bundleno = 30 (0x1e), region = 28  ;;  %s200_s7 = sand.u32 (%p45_p3), 1, %s2716_s19  }
  0x13   : > { %s2420_s8 = smul.u32 (%p45_p3), 24, %s2732_s23  ;;  %s2170_s9 = sshll.u32 (%p45_p3), %s200_s7, 5 }
  0x14   : > { %s202_s15 = scalar_lea.vmem (%p45_p3), [#allocation5], %s2170_s9 }
  0x15   : > { %s205_s10 = sadd.s32 (%p45_p3), %s2728_s22, %s2420_s8 }
  0x16   : > { %s2173_s11 = sshll.u32 (%p45_p3), %s205_s10, 2 }
  0x17   : > { %s207_s14 = scalar_lea.vmem (%p45_p3), %s3501_s0, %s2173_s11 }
  0x18   : > { %v223_v0 = vld [vmem:[%s207_s14] sm:$0xf] (%p45_p3)  ;;  %v225_v1 = vld [vmem:[%s207_s14 + $0xc] sm:$0xf] (%p45_p3)  ;;  %v227_v2 = vld [vmem:[%s207_s14 + $0x18] sm:$0xf] (%p45_p3) }
  0x19   : > { %224 = vst [vmem:[%s202_s15] sm:$0xf] %v223_v0  ;;  %226 = vst [vmem:[%s202_s15 + $0x4] sm:$0xf] %v225_v1  ;;  %v229_v3 = vld [vmem:[%s207_s14 + $0x24] sm:$0xf] }
  0x1a   : > { %228 = vst [vmem:[%s202_s15 + $0x8] sm:$0xf] %v227_v2  ;;  %v231_v4 = vld [vmem:[%s207_s14 + $0x30] sm:$0xf]  ;;  %v233_v5 = vld [vmem:[%s207_s14 + $0x3c] sm:$0xf] }
  0x1b   : > { %230 = vst [vmem:[%s202_s15 + $0xc] sm:$0xf] %v229_v3  ;;  %232 = vst [vmem:[%s202_s15 + $0x10] sm:$0xf] %v231_v4  ;;  %v235_v6 = vld [vmem:[%s207_s14 + $0x48] sm:$0xf] }
  0x1c   : > { %234 = vst [vmem:[%s202_s15 + $0x14] sm:$0xf] %v233_v5  ;;  %v237_v7 = vld [vmem:[%s207_s14 + $0x54] sm:$0xf]  ;;  %236 = vst [vmem:[%s202_s15 + $0x18] sm:$0xf] %v235_v6 }
  0x1d   : > { %238 = vst [vmem:[%s202_s15 + $0x1c] sm:$0xf] %v237_v7 }
  0x1e PF: > { %p2174_p7 = scmp.ge.s32.totalorder %s2736_s24, 1  ;;  %p294_p8 = scmp.lt.s32.totalorder %s2736_s24, 10 }
  0x20   : > { %p295_p9 = pnand %p2174_p7, %p294_p8 }
  0x21   : > { %s301_s16 = sand.u32 (!%p295_p9), 1, %s2712_s18   ;;  %s2176_s17 = sshll.u32 (!%p295_p9), %s2720_s20, 4 }
  0x22   : > { %298 = sbr.rel (%p295_p9) target bundleno = 1334 (0x536), region = 77  ;;  %s2175_s27 = sshll.u32 (!%p295_p9), %s301_s16, 5 }
  0x23   : > { %p340_p10 = scmp.lt.s32.totalorder (!%p295_p9), %s2176_s17, 47  ;;  %s2178_s28 = sshll.u32 (!%p295_p9), %s2724_s21, 3 }
  0x24   : > { %p346_p11 = scmp.lt.s32.totalorder (!%p295_p9), %s2178_s28, 47  ;;  %p352_p12 = scmp.lt.s32.totalorder (!%p295_p9), %s2178_s28, 23 }
  0x25   : > { %s2855_s16 = scalar_lea.vmem (!%p295_p9), [#allocation5], %s2175_s27  ;;  %p2182_p13 = scmp.ne.s32.totalorder (!%p295_p9), %s2720_s20, 0 }
  0x29   : > { %s3520_s17 = smov (!%p340_p10, %s2176_s17), 47  ;;  %361 = sbr.rel (%p2182_p13) target bundleno = 68 (0x44), region = 85 }
  0x2a   : > { %s2177_s29 = sshll.u32 %s3520_s17, 2  ;;  %vm362_vm0 = vcmask (!%p2182_p13), 7168   ;;  %vm395_vm1 = vcmask (!%p2182_p13), 64512   ;;  %v2738_v8 = vmov (!%p2182_p13), -inf   ;;  %v2739_v9 = vmov (!%p2182_p13), 0.0  }
  0x2b   : > { %s2843_s8 = scalar_lea.vmem %s3502_s1, %s2177_s29  ;;  %363 = vst.msk [vmem:[#allocation2] sm:$0xff] (!%p2182_p13), %vm362_vm0, %v2738_v8  ;;  %364 = vst.msk [vmem:[#allocation2 + $0x8] sm:$0xff] (!%p2182_p13), %vm362_vm0, %v2738_v8 }
  0x2c   : > { %s347_s9 = scalar_select %p346_p11, %s2178_s28, 47 }
  0x2d   : > { %s3522_s28 = smov (!%p352_p12, %s2178_s28), 23  ;;  %365 = vst.msk [vmem:[#allocation2 + $0x10] sm:$0xff] (!%p2182_p13), %vm362_vm0, %v2738_v8  ;;  %366 = vst.msk [vmem:[#allocation2 + $0x18] sm:$0xff] (!%p2182_p13), %vm362_vm0, %v2738_v8 }
  0x2e   : > { %s2179_s10 = sshll.u32 %s347_s9, 2  ;;  %s2181_s13 = sshll.u32 %s3522_s28, 2  ;;  %367 = vst.msk [vmem:[#allocation2 + $0x20] sm:$0xff] (!%p2182_p13), %vm362_vm0, %v2738_v8  ;;  %368 = vst.msk [vmem:[#allocation2 + $0x28] sm:$0xff] (!%p2182_p13), %vm362_vm0, %v2738_v8 }
  0x2f   : > { %s2848_s18 = scalar_lea.vmem %s3503_s2, %s2179_s10  ;;  %s2853_s15 = scalar_lea.vmem %s3506_s5, %s2181_s13  ;;  %369 = vst.msk [vmem:[#allocation2 + $0x30] sm:$0xff] (!%p2182_p13), %vm362_vm0, %v2738_v8  ;;  %370 = vst.msk [vmem:[#allocation2 + $0x38] sm:$0xff] (!%p2182_p13), %vm362_vm0, %v2738_v8 }
  0x30   : > { %371 = vst.msk [vmem:[#allocation2 + $0x40] sm:$0xff] %vm362_vm0, %v2738_v8  ;;  %372 = vst.msk [vmem:[#allocation2 + $0x48] sm:$0xff] %vm362_vm0, %v2738_v8 }
  0x31   : > { %373 = vst.msk [vmem:[#allocation2 + $0x50] sm:$0xff] %vm362_vm0, %v2738_v8  ;;  %374 = vst.msk [vmem:[#allocation2 + $0x58] sm:$0xff] %vm362_vm0, %v2738_v8 }
  0x32   : > { %375 = vst.msk [vmem:[#allocation2 + $0x60] sm:$0xff] %vm362_vm0, %v2738_v8  ;;  %376 = vst.msk [vmem:[#allocation2 + $0x68] sm:$0xff] %vm362_vm0, %v2738_v8 }
  0x33   : > { %377 = vst.msk [vmem:[#allocation2 + $0x70] sm:$0xff] %vm362_vm0, %v2738_v8  ;;  %378 = vst.msk [vmem:[#allocation2 + $0x78] sm:$0xff] %vm362_vm0, %v2738_v8 }
  0x34   : > { %379 = vst.msk [vmem:[#allocation3] sm:$0xff] %vm362_vm0, %v2739_v9  ;;  %380 = vst.msk [vmem:[#allocation3 + $0x8] sm:$0xff] %vm362_vm0, %v2739_v9 }
  0x35   : > { %381 = vst.msk [vmem:[#allocation3 + $0x10] sm:$0xff] %vm362_vm0, %v2739_v9  ;;  %382 = vst.msk [vmem:[#allocation3 + $0x18] sm:$0xff] %vm362_vm0, %v2739_v9 }
  0x36   : > { %383 = vst.msk [vmem:[#allocation3 + $0x20] sm:$0xff] %vm362_vm0, %v2739_v9  ;;  %384 = vst.msk [vmem:[#allocation3 + $0x28] sm:$0xff] %vm362_vm0, %v2739_v9 }
  0x37   : > { %385 = vst.msk [vmem:[#allocation3 + $0x30] sm:$0xff] %vm362_vm0, %v2739_v9  ;;  %386 = vst.msk [vmem:[#allocation3 + $0x38] sm:$0xff] %vm362_vm0, %v2739_v9 }
  0x38   : > { %387 = vst.msk [vmem:[#allocation3 + $0x40] sm:$0xff] %vm362_vm0, %v2739_v9  ;;  %388 = vst.msk [vmem:[#allocation3 + $0x48] sm:$0xff] %vm362_vm0, %v2739_v9 }
  0x39   : > { %389 = vst.msk [vmem:[#allocation3 + $0x50] sm:$0xff] %vm362_vm0, %v2739_v9  ;;  %390 = vst.msk [vmem:[#allocation3 + $0x58] sm:$0xff] %vm362_vm0, %v2739_v9 }
  0x3a   : > { %391 = vst.msk [vmem:[#allocation3 + $0x60] sm:$0xff] %vm362_vm0, %v2739_v9  ;;  %392 = vst.msk [vmem:[#allocation3 + $0x68] sm:$0xff] %vm362_vm0, %v2739_v9 }
  0x3b   : > { %393 = vst.msk [vmem:[#allocation3 + $0x70] sm:$0xff] %vm362_vm0, %v2739_v9  ;;  %394 = vst.msk [vmem:[#allocation3 + $0x78] sm:$0xff] %vm362_vm0, %v2739_v9 }
  0x3c   : > { %396 = vst.msk [vmem:[#allocation4] sm:$0xff] %vm395_vm1, %v2739_v9  ;;  %397 = vst.msk [vmem:[#allocation4 + $0x8] sm:$0xff] %vm395_vm1, %v2739_v9 }
  0x3d   : > { %398 = vst.msk [vmem:[#allocation4 + $0x10] sm:$0xff] %vm395_vm1, %v2739_v9  ;;  %399 = vst.msk [vmem:[#allocation4 + $0x18] sm:$0xff] %vm395_vm1, %v2739_v9 }
  0x3e   : > { %400 = vst.msk [vmem:[#allocation4 + $0x20] sm:$0xff] %vm395_vm1, %v2739_v9  ;;  %401 = vst.msk [vmem:[#allocation4 + $0x28] sm:$0xff] %vm395_vm1, %v2739_v9 }
  0x3f   : > { %402 = vst.msk [vmem:[#allocation4 + $0x30] sm:$0xff] %vm395_vm1, %v2739_v9  ;;  %403 = vst.msk [vmem:[#allocation4 + $0x38] sm:$0xff] %vm395_vm1, %v2739_v9 }
  0x40   : > { %404 = vst.msk [vmem:[#allocation4 + $0x40] sm:$0xff] %vm395_vm1, %v2739_v9  ;;  %405 = vst.msk [vmem:[#allocation4 + $0x48] sm:$0xff] %vm395_vm1, %v2739_v9 }
  0x41   : > { %406 = vst.msk [vmem:[#allocation4 + $0x50] sm:$0xff] %vm395_vm1, %v2739_v9  ;;  %407 = vst.msk [vmem:[#allocation4 + $0x58] sm:$0xff] %vm395_vm1, %v2739_v9 }
  0x42   : > { %408 = vst.msk [vmem:[#allocation4 + $0x60] sm:$0xff] %vm395_vm1, %v2739_v9  ;;  %409 = vst.msk [vmem:[#allocation4 + $0x68] sm:$0xff] %vm395_vm1, %v2739_v9 }
  0x43   : > { %410 = vst.msk [vmem:[#allocation4 + $0x70] sm:$0xff] %vm395_vm1, %v2739_v9  ;;  %411 = vst.msk [vmem:[#allocation4 + $0x78] sm:$0xff] %vm395_vm1, %v2739_v9 }
  0x44 PF: > { %v2488_v10 = vld [vmem:[%s3505_s4] sm:$0xff]   ;;  %v2489_v11 = vld [vmem:[%s3505_s4 + $0x8] sm:$0xff]   ;;  %v2740_v12 = vmov 0   ;;  %v2490_v13 = vld [vmem:[%s3505_s4 + $0x10] sm:$0xff]   ;;  %v2741_v60 = vmov 1   ;;  %vm1138_vm2 = vcmask 7168  }
  0x45   : > { %604 = vmatprep.mubr.bf16.mxu0 %v2740_v12  ;;  %2484 = vset.pattern.permute.xlu1 %v2740_v12  ;;  %v2491_v14 = vld [vmem:[%s3505_s4 + $0x18] sm:$0xff]   ;;  %v2496_v15 = vld [vmem:[%s2848_s18] sm:$0xff]   ;;  %v2493_v22 = vld [vmem:[%s3505_s4 + $0x28] sm:$0xff]   ;;  %vm1280_vm3 = vcmask 64512   ;;  %p2219_p0 = scmp.ne.s32.totalorder %s2720_s20, 2 }
  0x46   : > { %2332 = vmatprep.subr.bf16.mxu1 %v2488_v10  ;;  %2485 = vset.pattern.permute.xlu0 %v2740_v12  ;;  %v2498_v16 = vld [vmem:[%s3504_s3 + $0x4] ss:$8 sps:$4 sm:$0xff]   ;;  %v2501_v18 = vld [vmem:[%s3504_s3] ss:$8 sps:$4 sm:$0xff]   ;;  %v2503_v19 = vld [vmem:[%s3504_s3 + $0x14] ss:$8 sps:$4 sm:$0xff]  }
  0x47   : > { %2333 = vmatpush3.bf16.msra.mxu1 %v2488_v10  ;;  %2348 = vmatprep.mubr.bf16.mxu1 %v2496_v15  ;;  %v2492_v17 = vld [vmem:[%s3505_s4 + $0x20] sm:$0xff]   ;;  %v2505_v20 = vld [vmem:[%s3504_s3 + $0x10] ss:$8 sps:$4 sm:$0xff]   ;;  %v2509_v24 = vld [vmem:[%s3504_s3 + $0x34] ss:$8 sps:$4 sm:$0xff]   ;;  %s2744_s20 = smov (!%p2219_p0), 8  }
  0x48   : > { %2334 = vmatprep.subr.bf16.mxu1 %v2489_v11  ;;  %572 = vmatprep.subr.bf16.mxu0 %v2498_v16  ;;  %v2506_v21 = vld [vmem:[%s3504_s3 + $0x24] ss:$8 sps:$4 sm:$0xff]   ;;  %v2508_v23 = vld [vmem:[%s3504_s3 + $0x20] ss:$8 sps:$4 sm:$0xff]   ;;  %v2494_v25 = vld [vmem:[%s3505_s4 + $0x30] sm:$0xff]   ;;  %vm2017_vm12 = vcmask (!%p2219_p0), 130048  }
  0x49   : > { %573 = vmatpush1.bf16.msra.mxu0 %v2501_v18  ;;  %v2511_v26 = vld [vmem:[%s3504_s3 + $0x30] ss:$8 sps:$4 sm:$0xff]   ;;  %v2512_v27 = vld [vmem:[%s3504_s3 + $0x44] ss:$8 sps:$4 sm:$0xff]   ;;  %v2514_v29 = vld [vmem:[%s3504_s3 + $0x40] ss:$8 sps:$4 sm:$0xff]  }
  0x4a   : > { %574 = vmatprep.subr.bf16.mxu0 %v2503_v19  ;;  %v2495_v28 = vld [vmem:[%s3505_s4 + $0x38] sm:$0xff]   ;;  %v2497_v31 = vld [vmem:[%s2848_s18 + $0x8] sm:$0xff]   ;;  %v2500_v33 = vld [vmem:[%s2848_s18 + $0x10] sm:$0xff]  }
  0x4b   : > { %2335 = vmatpush3.bf16.msra.mxu1 %v2489_v11  ;;  %v2515_v30 = vld [vmem:[%s3504_s3 + $0x54] ss:$8 sps:$4 sm:$0xff]   ;;  %v2517_v32 = vld [vmem:[%s3504_s3 + $0x50] ss:$8 sps:$4 sm:$0xff]   ;;  %v2518_v34 = vld [vmem:[%s3504_s3 + $0x64] ss:$8 sps:$4 sm:$0xff]  }
  0x4c   : > { %2336 = vmatprep.subr.bf16.mxu1 %v2490_v13  ;;  %v2520_v35 = vld [vmem:[%s3504_s3 + $0x60] ss:$8 sps:$4 sm:$0xff]   ;;  %v2521_v36 = vld [vmem:[%s3504_s3 + $0x74] ss:$8 sps:$4 sm:$0xff]   ;;  %v2523_v38 = vld [vmem:[%s3504_s3 + $0x70] ss:$8 sps:$4 sm:$0xff]  }
  0x4d   : > { %575 = vmatpush1.bf16.msra.mxu0 %v2505_v20  ;;  %v2502_v37 = vld [vmem:[%s2848_s18 + $0x18] sm:$0xff]   ;;  %v2524_v39 = vld [vmem:[%s2843_s8] sm:$0xff]   ;;  %v2525_v40 = vld [vmem:[%s2843_s8 + $0x8] sm:$0xff]  }
  0x4e   : > { %576 = vmatprep.subr.bf16.mxu0 %v2506_v21  ;;  %v2526_v41 = vld [vmem:[%s2843_s8 + $0x10] sm:$0xff]   ;;  %v2527_v42 = vld [vmem:[%s2843_s8 + $0x18] sm:$0xff]   ;;  %v2528_v43 = vld [vmem:[%s2843_s8 + $0x20] sm:$0xff]  }
  0x4f   : > { %2337 = vmatpush3.bf16.msra.mxu1 %v2490_v13  ;;  %v2529_v44 = vld [vmem:[%s2843_s8 + $0x28] sm:$0xff]   ;;  %v2530_v45 = vld [vmem:[%s2843_s8 + $0x30] sm:$0xff]   ;;  %v2531_v46 = vld [vmem:[%s2843_s8 + $0x38] sm:$0xff]   ;;  %s2742_s8 = smov 120  }
  0x50   : > { %2338 = vmatprep.subr.bf16.mxu1 %v2491_v14 }
  0x51   : > { %577 = vmatpush1.bf16.msra.mxu0 %v2508_v23 }
  0x52   : > { %578 = vmatprep.subr.bf16.mxu0 %v2509_v24 }
  0x53   : > { %2339 = vmatpush3.bf16.msra.mxu1 %v2491_v14 }
  0x54   : > { %2340 = vmatprep.subr.bf16.mxu1 %v2492_v17 }
  0x55   : > { %579 = vmatpush1.bf16.msra.mxu0 %v2511_v26 }
  0x56   : > { %580 = vmatprep.subr.bf16.mxu0 %v2512_v27 }
  0x57   : > { %2341 = vmatpush3.bf16.msra.mxu1 %v2492_v17 }
  0x58   : > { %2342 = vmatprep.subr.bf16.mxu1 %v2493_v22 }
  0x59   : > { %581 = vmatpush1.bf16.msra.mxu0 %v2514_v29 }
  0x5a   : > { %582 = vmatprep.subr.bf16.mxu0 %v2515_v30 }
  0x5b   : > { %2343 = vmatpush3.bf16.msra.mxu1 %v2493_v22 }
  0x5c   : > { %2344 = vmatprep.subr.bf16.mxu1 %v2494_v25 }
  0x5d   : > { %583 = vmatpush1.bf16.msra.mxu0 %v2517_v32 }
  0x5e   : > { %584 = vmatprep.subr.bf16.mxu0 %v2518_v34 }
  0x5f   : > { %2345 = vmatpush3.bf16.msra.mxu1 %v2494_v25 }
  0x60   : > { %2346 = vmatprep.subr.bf16.mxu1 %v2495_v28 }
  0x61   : > { %585 = vmatpush1.bf16.msra.mxu0 %v2520_v35 }
  0x62   : > { %586 = vmatprep.subr.bf16.mxu0 %v2521_v36  ;;  %v942_v36 = vlaneseq }
  0x63   : > { %2347 = vmatpush3.bf16.msra.mxu1 %v2495_v28 }
  0x65   : > { %587 = vmatpush1.bf16.msra.mxu0 %v2523_v38 }
  0x66   : > { %2349 = vmatmul.mubr.bf16.vlgmr.msra.gmra.mrb[0].mxu1 %v2497_v31 }
  0x67   : > { %2352 = vmatprep.mubr.bf16.mxu1 %v2500_v33 }
  0x68   : > { %605 = vmatmul.mubr.bf16.vlgmr.msra.gmra.mrb[0].mxu0 %v2524_v39  ;;  %v943_v39 = vshrl.u32 %v942_v36, 7 }
  0x69   : > { %614 = vmatprep.mubr.bf16.mxu0 %v2740_v12 }
  0x6e   : > { %2353 = vmatmul.mubr.bf16.gmra.mrb[4].mxu1 %v2502_v37 }
  0x70   : > { %615 = vmatmul.mubr.bf16.gmra.mrb[4].mxu0 %v2525_v40 }
  0x71   : > { %624 = vmatprep.mubr.bf16.mxu0 %v2740_v12 }
  0x78   : > { %625 = vmatmul.mubr.bf16.gmra.mrb[8].mxu0 %v2526_v41  ;;  %v944_v41 = vsub.s32 0, %v943_v39 }
  0x79   : > { %634 = vmatprep.mubr.bf16.mxu0 %v2740_v12 }
  0x80   : > { %635 = vmatmul.mubr.bf16.gmra.mrb[12].mxu0 %v2527_v42 }
  0x81   : > { %644 = vmatprep.mubr.bf16.mxu0 %v2740_v12 }
  0x88   : > { %645 = vmatmul.mubr.bf16.gmra.mrb[16].mxu0 %v2528_v43 }
  0x89   : > { %654 = vmatprep.mubr.bf16.mxu0 %v2740_v12 }
  0x90   : > { %655 = vmatmul.mubr.bf16.gmra.mrb[20].mxu0 %v2529_v44 }
  0x91   : > { %664 = vmatprep.mubr.bf16.mxu0 %v2740_v12 }
  0x98   : > { %665 = vmatmul.mubr.bf16.gmra.mrb[24].mxu0 %v2530_v45  ;;  %v3038_v45 = vld [vmem:[%s2855_s16 + $0x18] sm:$0xff]  }
  0x99   : > { %674 = vmatprep.mubr.bf16.mxu0 %v2740_v12 }
  0xa0   : > { %675 = vmatmul.mubr.bf16.gmra.mrb[28].mxu0 %v2531_v46  ;;  %v3041_v46 = vld [vmem:[%s2855_s16] sm:$0xff]  }
 0x139   : > { %v2350_v47 = vpop.f32.mrb[0].mxu1 }
 0x13a   : > { %v855_v48 = vpop.f32.mrb[1].mxu1  ;;  %914 = vperm.xlu1 %2484, %v2350_v47  }
 0x13b   : > { %v2351_v49 = vpop.f32.mrb[2].mxu1  ;;  %904 = vperm.xlu0 %2485, %v855_v48   ;;  %v606_v55 = vpop.f32.mrb[0].mxu0 }
 0x13c   : > { %v858_v50 = vpop.f32.mrb[3].mxu1  ;;  %v608_v56 = vpop.f32.mrb[1].mxu0 }
 0x13d   : > { %v610_v57 = vpop.f32.mrb[2].mxu0 }
 0x13e   : > { %919 = vperm.xlu1 %2484, %v2351_v49   ;;  %v3000_v58 = vpack.c.bf16 %v610_v57, %v606_v55  ;;  %v612_v59 = vpop.f32.mrb[3].mxu0 }
 0x13f   : > { %909 = vperm.xlu0 %2485, %v858_v50  }
 0x140   : > { %2356 = vmatprep.subr.bf16.mxu1 %v3000_v58 }
 0x141   : > { %v2354_v51 = vpop.f32.mrb[4].mxu1  ;;  %2357 = vmatpush3.bf16.msra.mxu1 %v3000_v58 }
 0x142   : > { %v871_v52 = vpop.f32.mrb[5].mxu1 }
 0x143   : > { %v2355_v53 = vpop.f32.mrb[6].mxu1  ;;  %934 = vperm.xlu0 %2485, %v2354_v51   ;;  %v616_v61 = vpop.f32.mrb[4].mxu0 }
 0x144   : > { %v874_v54 = vpop.f32.mrb[7].mxu1  ;;  %939 = vperm.xlu1 %2484, %v2355_v53   ;;  %v618_v62 = vpop.f32.mrb[5].mxu0 }
 0x145   : > { %v620_v63 = vpop.f32.mrb[6].mxu0 }
 0x146   : > { %v3004_v0 = vpack.c.bf16 %v620_v63, %v616_v61  ;;  %v622_v1 = vpop.f32.mrb[7].mxu0 }
 0x147   : > { %924 = vperm.xlu0 %2485, %v871_v52  }
 0x148   : > { %929 = vperm.xlu1 %2484, %v874_v54   ;;  %2358 = vmatprep.subr.bf16.mxu1 %v3004_v0 }
 0x149   : > { %2359 = vmatpush3.bf16.msra.mxu1 %v3004_v0 }
 0x14b   : > { %v626_v2 = vpop.f32.mrb[8].mxu0 }
 0x14c   : > { %2486 = vset.pattern.permute.xlu1 %v2741_v60  ;;  %v628_v3 = vpop.f32.mrb[9].mxu0  ;;  %v2257_v60 = vunpack.c.h.bf16 %v3041_v46 }
 0x14d   : > { %1298 = vperm.xlu1 %2486, %v855_v48   ;;  %v630_v4 = vpop.f32.mrb[10].mxu0 }
 0x14e   : > { %v3008_v5 = vpack.c.bf16 %v630_v4, %v626_v2  ;;  %v632_v6 = vpop.f32.mrb[11].mxu0  ;;  %v3058_v2 = vld [vmem:[%s2855_s16 + $0x8] sm:$0xff]  }
 0x150   : > { %2360 = vmatprep.subr.bf16.mxu1 %v3008_v5 }
 0x151   : > { %1302 = vperm.xlu1 %2486, %v858_v50   ;;  %2361 = vmatpush3.bf16.msra.mxu1 %v3008_v5 }
 0x153   : > { %v636_v7 = vpop.f32.mrb[12].mxu0 }
 0x154   : > { %v638_v8 = vpop.f32.mrb[13].mxu0 }
 0x155   : > { %1314 = vperm.xlu1 %2486, %v871_v52   ;;  %v640_v9 = vpop.f32.mrb[14].mxu0  ;;  %v2256_v52 = vunpack.c.l.bf16 %v3041_v46 }
 0x156   : > { %v3012_v10 = vpack.c.bf16 %v640_v9, %v636_v7  ;;  %v642_v11 = vpop.f32.mrb[15].mxu0  ;;  %v2260_v7 = vunpack.c.l.bf16 %v3058_v2 }
 0x158   : > { %2362 = vmatprep.subr.bf16.mxu1 %v3012_v10 }
 0x159   : > { %1318 = vperm.xlu1 %2486, %v874_v54   ;;  %2363 = vmatpush3.bf16.msra.mxu1 %v3012_v10 }
 0x15b   : > { %v646_v13 = vpop.f32.mrb[16].mxu0 }
 0x15c   : > { %v648_v14 = vpop.f32.mrb[17].mxu0 }
 0x15d   : > { %1306 = vperm.xlu1 %2486, %v2350_v47   ;;  %v650_v15 = vpop.f32.mrb[18].mxu0 }
 0x15e   : > { %v3016_v16 = vpack.c.bf16 %v650_v15, %v646_v13  ;;  %v652_v17 = vpop.f32.mrb[19].mxu0 }
 0x160   : > { %2364 = vmatprep.subr.bf16.mxu1 %v3016_v16 }
 0x161   : > { %1310 = vperm.xlu1 %2486, %v2351_v49   ;;  %2365 = vmatpush3.bf16.msra.mxu1 %v3016_v16 }
 0x163   : > { %v656_v18 = vpop.f32.mrb[20].mxu0 }
 0x164   : > { %v658_v19 = vpop.f32.mrb[21].mxu0 }
 0x165   : > { %1322 = vperm.xlu1 %2486, %v2354_v51   ;;  %693 = vxpose.xlu0.b32.start [1/16] (narrow) %v608_v56, 8  ;;  %v660_v20 = vpop.f32.mrb[22].mxu0  ;;  %v2269_v51 = vunpack.c.h.bf16 %v3038_v45 }
 0x166   : > { %v3021_v21 = vpack.c.bf16 %v660_v20, %v656_v18  ;;  %v662_v22 = vpop.f32.mrb[23].mxu0 }
 0x168   : > { %2366 = vmatprep.subr.bf16.mxu1 %v3021_v21 }
 0x169   : > { %1326 = vperm.xlu1 %2486, %v2355_v53   ;;  %694 = vxpose.xlu0.b32.cont [2/16] (narrow) %v612_v59, 8 }
 0x16a   : > { %2367 = vmatpush3.bf16.msra.mxu1 %v3021_v21 }
 0x16b   : > { %v666_v23 = vpop.f32.mrb[24].mxu0 }
 0x16c   : > { %v668_v24 = vpop.f32.mrb[25].mxu0 }
 0x16d   : > { %695 = vxpose.xlu0.b32.cont [3/16] (narrow) %v618_v62, 8  ;;  %2487 = vset.pattern.permute.xlu1 %v2740_v12  ;;  %v670_v25 = vpop.f32.mrb[26].mxu0 }
 0x16e   : > { %v3025_v26 = vpack.c.bf16 %v670_v25, %v666_v23  ;;  %v672_v27 = vpop.f32.mrb[27].mxu0  ;;  %v2268_v23 = vunpack.c.l.bf16 %v3038_v45 }
 0x170   : > { %2368 = vmatprep.subr.bf16.mxu1 %v3025_v26 }
 0x171   : > { %696 = vxpose.xlu0.b32.cont [4/16] (narrow) %v622_v1, 8  ;;  %2369 = vmatpush3.bf16.msra.mxu1 %v3025_v26 }
 0x173   : > { %v676_v12 = vpop.f32.mrb[28].mxu0 }
 0x174   : > { %v678_v28 = vpop.f32.mrb[29].mxu0 }
 0x175   : > { %697 = vxpose.xlu0.b32.cont [5/16] (narrow) %v628_v3, 8  ;;  %v680_v29 = vpop.f32.mrb[30].mxu0 }
 0x176   : > { %v3029_v30 = vpack.c.bf16 %v680_v29, %v676_v12  ;;  %v682_v31 = vpop.f32.mrb[31].mxu0 }
 0x178   : > { %2370 = vmatprep.subr.bf16.mxu1 %v3029_v30 }
 0x179   : > { %698 = vxpose.xlu0.b32.cont [6/16] (narrow) %v632_v6, 8  ;;  %2371 = vmatpush3.bf16.msra.mxu1 %v3029_v30  ;;  %v1331_v6 = vsub.s32 1, %v943_v39 }
 0x17d   : > { %699 = vxpose.xlu0.b32.cont [7/16] (narrow) %v638_v8, 8 }
 0x181   : > { %700 = vxpose.xlu0.b32.cont [8/16] (narrow) %v642_v11, 8 }
 0x185   : > { %701 = vxpose.xlu0.b32.cont [9/16] (narrow) %v648_v14, 8 }
 0x189   : > { %702 = vxpose.xlu0.b32.cont [10/16] (narrow) %v652_v17, 8  ;;  %v2261_v17 = vunpack.c.h.bf16 %v3058_v2 }
 0x18d   : > { %703 = vxpose.xlu0.b32.cont [11/16] (narrow) %v658_v19, 8 }
 0x191   : > { %704 = vxpose.xlu0.b32.cont [12/16] (narrow) %v662_v22, 8 }
 0x195   : > { %705 = vxpose.xlu0.b32.cont [13/16] (narrow) %v668_v24, 8 }
 0x199   : > { %706 = vxpose.xlu0.b32.cont [14/16] (narrow) %v672_v27, 8  ;;  %v2291_v27 = vld [vmem:[%s2855_s16 + $0x10] sm:$0xff]  }
 0x19d   : > { %707 = vxpose.xlu0.b32.cont [15/16] (narrow) %v678_v28, 8 }
 0x1a1   : > { %708 = vxpose.xlu0.b32.end [16/16] (narrow) %v682_v31, 8  ;;  %v2264_v31 = vunpack.c.l.bf16 %v2291_v27 }
 0x1b9   : > { %v915_v33 = vpop.permute.xlu1 %914 }
 0x1ba   : > { %v905_v32 = vpop.permute.xlu0 %904 }
 0x1bd   : > { %v920_v35 = vpop.permute.xlu1 %919 }
 0x1be   : > { %v910_v34 = vpop.permute.xlu0 %909 }
 0x1c2   : > { %v935_v37 = vpop.permute.xlu0 %934 }
 0x1c3   : > { %v940_v38 = vpop.permute.xlu1 %939 }
 0x1c6   : > { %v925_v40 = vpop.permute.xlu0 %924 }
 0x1c7   : > { %v3033_v42 = vpop.permute.xlu1 %929 }
 0x1cc   : > { %v1299_v50 = vpop.permute.xlu1 %1298 }
 0x1d0   : > { %v1303_v4 = vpop.permute.xlu1 %1302 }
 0x1d4   : > { %v1315_v14 = vpop.permute.xlu1 %1314 }
 0x1d8   : > { %v1319_v29 = vpop.permute.xlu1 %1318 }
 0x1dc   : > { %v1307_v36 = vpop.permute.xlu1 %1306 }
 0x1e5   : > { %v709_v43 = vpop.trf.xlu0 }
 0x1e6   : > { %v3035_v44 = vrot.slane %v709_v43, %v944_v41  ;;  %v1332_v15 = vrot.slane %v709_v43, %v1331_v6 }
 0x1e8   : > { %v953_v47 = vadd.f32 %v3035_v44, %v940_v38  ;;  %v946_v48 = vadd.f32 %v3035_v44, %v905_v32  ;;  %v947_v49 = vadd.f32 %v3035_v44, %v910_v34  ;;  %v948_v56 = vadd.f32 %v3035_v44, %v915_v33 }
 0x1e9   : > { %v949_v61 = vadd.f32 %v3035_v44, %v920_v35  ;;  %v952_v13 = vadd.f32 %v3035_v44, %v935_v37  ;;  %v950_v22 = vadd.f32 %v3035_v44, %v925_v40  ;;  %v1333_v28 = vadd.f32 %v1332_v15, %v1299_v50 }
 0x1ea   : > { %v961_v53 = vmul.f32 0.2, %v953_v47  ;;  %v954_v54 = vmul.f32 0.2, %v946_v48  ;;  %v955_v55 = vmul.f32 0.2, %v947_v49  ;;  %v1334_v35 = vadd.f32 %v1332_v15, %v1303_v4 }
 0x1eb   : > { %v956_v3 = vmul.f32 0.2, %v948_v56  ;;  %v957_v11 = vmul.f32 0.2, %v949_v61  ;;  %v960_v20 = vmul.f32 0.2, %v952_v13  ;;  %v1337_v40 = vadd.f32 %v1332_v15, %v1315_v14 }
 0x1ec   : > { %v969_v57 = vmax.f32 %v953_v47, %v961_v53  ;;  %v962_v59 = vmax.f32 %v946_v48, %v954_v54  ;;  %v963_v1 = vmax.f32 %v947_v49, %v955_v55  ;;  %v958_v12 = vmul.f32 0.2, %v950_v22  ;;  %v1311_v48 = vpop.permute.xlu1 %1310 }
 0x1ed   : > { %v964_v9 = vmax.f32 %v948_v56, %v956_v3  ;;  %v965_v19 = vmax.f32 %v949_v61, %v957_v11  ;;  %v968_v25 = vmax.f32 %v952_v13, %v960_v20  ;;  %v1341_v34 = vmul.f32 0.2, %v1333_v28 }
 0x1ee   : > { %v3053_v62 = vadd.f32 %v2269_v51, %v969_v57  ;;  %v3055_v63 = vadd.f32 %v2256_v52, %v962_v59  ;;  %v3063_v8 = vadd.f32 %v2257_v60, %v963_v1  ;;  %v966_v33 = vmax.f32 %v950_v22, %v958_v12 }
 0x1ef   : > { %v3068_v18 = vadd.f32 %v2260_v7, %v964_v9  ;;  %v3073_v24 = vadd.f32 %v2261_v17, %v965_v19  ;;  %v3077_v32 = vadd.f32 %v2268_v23, %v968_v25  ;;  %v1349_v38 = vmax.f32 %v1333_v28, %v1341_v34 }
 0x1f0   : > { %1000 = vmax.xlane.f32.xlu0 %v3053_v62  ;;  %986 = vmax.xlane.f32.xlu1 %v3055_v63  ;;  %v3080_v37 = vadd.f32 %v2264_v31, %v966_v33  ;;  %v1342_v39 = vmul.f32 0.2, %v1334_v35  ;;  %v1345_v46 = vmul.f32 0.2, %v1337_v40  ;;  %v1335_v47 = vadd.f32 %v1332_v15, %v1307_v36  ;;  %v1323_v55 = vpop.permute.xlu1 %1322 }
 0x1f1   : > { %v3083_v41 = vadd.f32 %v2256_v52, %v1349_v38  ;;  %v1336_v54 = vadd.f32 %v1332_v15, %v1311_v48  ;;  %v1339_v52 = vadd.f32 %v1332_v15, %v1323_v55  ;;  %v2265_v13 = vunpack.c.h.bf16 %v2291_v27 }
 0x1f2   : > { %v1350_v43 = vmax.f32 %v1334_v35, %v1342_v39  ;;  %v1353_v50 = vmax.f32 %v1337_v40, %v1345_v46  ;;  %v1343_v53 = vmul.f32 0.2, %v1335_v47  ;;  %v1338_v20 = vadd.f32 %v1332_v15, %v1319_v29  ;;  %v3136_v35 = vld [vmem:[#allocation2 + $0x10] sm:$0xff]  ;;  %v3144_v39 = vld [vmem:[#allocation2 + $0x18] sm:$0xff] }
 0x1f3   : > { %v1344_v59 = vmul.f32 0.2, %v1336_v54  ;;  %v1347_v2 = vmul.f32 0.2, %v1339_v52  ;;  %v3154_v46 = vld [vmem:[#allocation2 + $0x30] sm:$0xff] }
 0x1f4   : > { %988 = vmax.xlane.f32.xlu1 %v3063_v8  ;;  %v3086_v49 = vadd.f32 %v2257_v60, %v1350_v43  ;;  %v3089_v56 = vadd.f32 %v2264_v31, %v1353_v50  ;;  %v1351_v57 = vmax.f32 %v1335_v47, %v1343_v53  ;;  %v951_v60 = vadd.f32 %v3035_v44, %v3033_v42  ;;  %v1327_v3 = vpop.permute.xlu1 %1326  ;;  %v3162_v50 = vld [vmem:[#allocation2 + $0x20] sm:$0xff] }
 0x1f5   : > { %v1352_v1 = vmax.f32 %v1336_v54, %v1344_v59  ;;  %v1340_v4 = vadd.f32 %v1332_v15, %v1327_v3  ;;  %v1355_v9 = vmax.f32 %v1339_v52, %v1347_v2  ;;  %v1346_v44 = vmul.f32 0.2, %v1338_v20  ;;  %v3114_v15 = vld [vmem:[#allocation2 + $0x38] sm:$0xff]  ;;  %v3171_v54 = vld [vmem:[#allocation2 + $0x40] sm:$0xff]  ;;  %v1367_v59 = vld [vmem:[#allocation2 + $0x48] sm:$0xff] }
 0x1f6   : > { %v3092_v61 = vadd.f32 %v2260_v7, %v1351_v57  ;;  %v959_v11 = vmul.f32 0.2, %v951_v60  ;;  %v3187_v3 = vld [vmem:[#allocation2 + $0x50] sm:$0xff] }
 0x1f7   : > { %v3097_v6 = vadd.f32 %v2261_v17, %v1352_v1  ;;  %v1348_v14 = vmul.f32 0.2, %v1340_v4  ;;  %v3100_v19 = vadd.f32 %v2268_v23, %v1355_v9  ;;  %v1354_v25 = vmax.f32 %v1338_v20, %v1346_v44  ;;  %v3116_v23 = vld [vmem:[#allocation2] sm:$0xff]  ;;  %v3212_v44 = vld [vmem:[#allocation2 + $0x28] sm:$0xff] }
 0x1f8   : > { %990 = vmax.xlane.f32.xlu1 %v3068_v18  ;;  %v967_v7 = vmax.f32 %v951_v60, %v959_v11  ;;  %v3181_v1 = vld [vmem:[#allocation2 + $0x60] sm:$0xff]  ;;  %v3195_v11 = vld [vmem:[#allocation2 + $0x58] sm:$0xff] }
 0x1f9   : > { %v1356_v22 = vmax.f32 %v1340_v4, %v1348_v14  ;;  %v3111_v27 = vadd.f32 %v2265_v13, %v1354_v25 }
 0x1fa   : > { %v3103_v42 = vadd.f32 %v2265_v13, %v967_v7  ;;  %v3204_v7 = vld [vmem:[#allocation2 + $0x70] sm:$0xff] }
 0x1fb   : > { %v3108_v17 = vadd.f32 %v2269_v51, %v1356_v22  ;;  %v3124_v51 = vld [vmem:[#allocation2 + $0x8] sm:$0xff] }
 0x1fc   : > { %992 = vmax.xlane.f32.xlu1 %v3073_v24 }
 0x200   : > { %998 = vmax.xlane.f32.xlu1 %v3077_v32 }
 0x204   : > { %994 = vmax.xlane.f32.xlu1 %v3080_v37 }
 0x208   : > { %1374 = vmax.xlane.f32.xlu1 %v3083_v41 }
 0x20c   : > { %1376 = vmax.xlane.f32.xlu1 %v3086_v49 }
 0x210   : > { %1382 = vmax.xlane.f32.xlu1 %v3089_v56 }
 0x214   : > { %1378 = vmax.xlane.f32.xlu1 %v3092_v61 }
 0x218   : > { %1380 = vmax.xlane.f32.xlu1 %v3097_v6 }
 0x21c   : > { %1386 = vmax.xlane.f32.xlu1 %v3100_v19 }
 0x220   : > { %996 = vmax.xlane.f32.xlu1 %v3103_v42 }
 0x224   : > { %1388 = vmax.xlane.f32.xlu1 %v3108_v17 }
 0x228   : > { %1384 = vmax.xlane.f32.xlu1 %v3111_v27 }
 0x27d   : > { %v1001_v12 = vpop.xlane.xlu0 %1000  ;;  %v987_v28 = vpop.xlane.xlu1 %986 }
 0x27e   : > { %v3119_v29 = vmax.f32 %v3114_v15, %v1001_v12  ;;  %v3122_v45 = vmax.f32 %v3116_v23, %v987_v28 }
 0x280   : > { %v1017_v31 = vsub.f32 %v3114_v15, %v3119_v29  ;;  %1296 = vst.msk [vmem:[#allocation2 + $0x38] sm:$0xff] %vm1138_vm2, %v3119_v29  ;;  %1289 = vst.msk [vmem:[#allocation2] sm:$0xff] %vm1138_vm2, %v3122_v45  ;;  %1036 = vperm.xlu1 %2487, %v3122_v45  }
 0x281   : > { %v989_v33 = vpop.xlane.xlu1 %988 }
 0x282   : > { %v3134_v34 = vmax.f32 %v3124_v51, %v989_v33 }
 0x284   : > { %1290 = vst.msk [vmem:[#allocation2 + $0x8] sm:$0xff] %vm1138_vm2, %v3134_v34  ;;  %1041 = vperm.xlu0 %2485, %v3134_v34   ;;  %v1011_v12 = vsub.f32 %v3124_v51, %v3134_v34  ;;  %v3233_v51 = vld [vmem:[#allocation2 + $0x68] sm:$0xff] }
 0x285   : > { %v991_v36 = vpop.xlane.xlu1 %990 }
 0x286   : > { %v3142_v38 = vmax.f32 %v3136_v35, %v991_v36  ;;  %v3224_v36 = vld [vmem:[#allocation2 + $0x78] sm:$0xff] }
 0x288   : > { %1291 = vst.msk [vmem:[#allocation2 + $0x10] sm:$0xff] %vm1138_vm2, %v3142_v38  ;;  %1604 = vrot.lane.b32.xlu0 %v3000_v58, %s2742_s8  ;;  %1046 = vperm.xlu1 %2487, %v3142_v38  }
 0x289   : > { %v993_v40 = vpop.xlane.xlu1 %992 }
 0x28a   : > { %v3152_v43 = vmax.f32 %v3144_v39, %v993_v40  ;;  %v1020_v40 = vmul.f32 1.442695, %v1011_v12  ;;  %v1032_v12 = vmul.f32 1.442695, %v1017_v31 }
 0x28c   : > { %1292 = vst.msk [vmem:[#allocation2 + $0x18] sm:$0xff] %vm1138_vm2, %v3152_v43  ;;  %1051 = vperm.xlu1 %2487, %v3152_v43   ;;  %2532 = vpow2.f32 %v1020_v40 }
 0x28d   : > { %v999_v47 = vpop.xlane.xlu1 %998 }
 0x28e   : > { %v3160_v48 = vmax.f32 %v3154_v46, %v999_v47 }
 0x290   : > { %1295 = vst.msk [vmem:[#allocation2 + $0x30] sm:$0xff] %vm1138_vm2, %v3160_v48  ;;  %1606 = vrot.lane.b32.xlu1 %v3004_v0, %s2742_s8 }
 0x291   : > { %v995_v58 = vpop.xlane.xlu1 %994 }
 0x292   : > { %v3169_v53 = vmax.f32 %v3162_v50, %v995_v58 }
 0x294   : > { %1293 = vst.msk [vmem:[#allocation2 + $0x20] sm:$0xff] %vm1138_vm2, %v3169_v53 }
 0x295   : > { %v1375_v55 = vpop.xlane.xlu1 %1374 }
 0x296   : > { %v3176_v57 = vmax.f32 %v3171_v54, %v1375_v55 }
 0x298   : > { %1709 = vst.msk [vmem:[#allocation2 + $0x40] sm:$0xff] %vm1138_vm2, %v3176_v57  ;;  %1424 = vperm.xlu0 %2485, %v3176_v57  }
 0x299   : > { %v1377_v0 = vpop.xlane.xlu1 %1376 }
 0x29a   : > { %v1391_v52 = vmax.f32 %v1367_v59, %v1377_v0 }
 0x29c   : > { %1710 = vst.msk [vmem:[#allocation2 + $0x48] sm:$0xff] %vm1138_vm2, %v1391_v52  ;;  %1429 = vperm.xlu1 %2487, %v1391_v52   ;;  %v1399_v47 = vsub.f32 %v1367_v59, %v1391_v52  ;;  %v1016_v59 = vsub.f32 %v3154_v46, %v3160_v48  ;;  %v1012_v46 = vsub.f32 %v3136_v35, %v3142_v38 }
 0x29d   : > { %v1383_v2 = vpop.xlane.xlu1 %1382  ;;  %v1013_v35 = vsub.f32 %v3144_v39, %v3152_v43 }
 0x29e   : > { %v3185_v60 = vmax.f32 %v3181_v1, %v1383_v2  ;;  %v1408_v0 = vmul.f32 1.442695, %v1399_v47 }
 0x2a0   : > { %1713 = vst.msk [vmem:[#allocation2 + $0x60] sm:$0xff] %vm1138_vm2, %v3185_v60  ;;  %1056 = vperm.xlu1 %2487, %v3169_v53   ;;  %2534 = vpow2.f32 %v1408_v0 }
 0x2a1   : > { %v1379_v4 = vpop.xlane.xlu1 %1378 }
 0x2a2   : > { %v3193_v9 = vmax.f32 %v3187_v3, %v1379_v4  ;;  %v1010_v4 = vsub.f32 %v3116_v23, %v3122_v45  ;;  %v3259_v45 = vpop.eup %2532 }
 0x2a4   : > { %1711 = vst.msk [vmem:[#allocation2 + $0x50] sm:$0xff] %vm1138_vm2, %v3193_v9  ;;  %1071 = vperm.xlu1 %2487, %v3119_v29   ;;  %1434 = vperm.xlu0 %2485, %v3193_v9   ;;  %v1400_v39 = vsub.f32 %v3187_v3, %v3193_v9 }
 0x2a5   : > { %v1381_v13 = vpop.xlane.xlu1 %1380 }
 0x2a6   : > { %v3202_v14 = vmax.f32 %v3195_v11, %v1381_v13  ;;  %v1014_v13 = vsub.f32 %v3162_v50, %v3169_v53  ;;  %v1024_v50 = vmul.f32 1.442695, %v1013_v35  ;;  %v1398_v53 = vsub.f32 %v3171_v54, %v3176_v57 }
 0x2a7   : > { %v1410_v54 = vmul.f32 1.442695, %v1400_v39 }
 0x2a8   : > { %1712 = vst.msk [vmem:[#allocation2 + $0x58] sm:$0xff] %vm1138_vm2, %v3202_v14  ;;  %1066 = vperm.xlu0 %2485, %v3160_v48   ;;  %v1026_v23 = vmul.f32 1.442695, %v1014_v13  ;;  %v1022_v48 = vmul.f32 1.442695, %v1012_v46  ;;  %v1401_v57 = vsub.f32 %v3195_v11, %v3202_v14 }
 0x2a9   : > { %v1387_v20 = vpop.xlane.xlu1 %1386 }
 0x2aa   : > { %v3210_v22 = vmax.f32 %v3204_v7, %v1387_v20  ;;  %v1018_v20 = vmul.f32 1.442695, %v1010_v4  ;;  %v3266_v38 = vpop.eup %2534  ;;  %v1412_v3 = vmul.f32 1.442695, %v1401_v57 }
 0x2ac   : > { %v1404_v25 = vsub.f32 %v3204_v7, %v3210_v22  ;;  %1715 = vst.msk [vmem:[#allocation2 + $0x70] sm:$0xff] %vm1138_vm2, %v3210_v22  ;;  %1444 = vperm.xlu0 %2485, %v3185_v60  }
 0x2ad   : > { %v997_v28 = vpop.xlane.xlu1 %996 }
 0x2ae   : > { %v3222_v33 = vmax.f32 %v3212_v44, %v997_v28 }
 0x2b0   : > { %1294 = vst.msk [vmem:[#allocation2 + $0x28] sm:$0xff] %vm1138_vm2, %v3222_v33  ;;  %1454 = vperm.xlu0 %2485, %v3210_v22   ;;  %1061 = vperm.xlu1 %2487, %v3222_v33   ;;  %v1015_v11 = vsub.f32 %v3212_v44, %v3222_v33 }
 0x2b1   : > { %v1389_v58 = vpop.xlane.xlu1 %1388 }
 0x2b2   : > { %v3231_v55 = vmax.f32 %v3224_v36, %v1389_v58  ;;  %v1028_v28 = vmul.f32 1.442695, %v1015_v11 }
 0x2b4   : > { %v1405_v34 = vsub.f32 %v3224_v36, %v3231_v55  ;;  %1716 = vst.msk [vmem:[#allocation2 + $0x78] sm:$0xff] %vm1138_vm2, %v3231_v55  ;;  %1608 = vrot.lane.b32.xlu0 %v3008_v5, %s2742_s8  ;;  %1439 = vperm.xlu1 %2487, %v3202_v14   ;;  %v1030_v5 = vmul.f32 1.442695, %v1016_v59 }
 0x2b5   : > { %v1385_v52 = vpop.xlane.xlu1 %1384 }
 0x2b6   : > { %v1395_v2 = vmax.f32 %v3233_v51, %v1385_v52  ;;  %2536 = vpow2.f32 %v1030_v5 }
 0x2b7   : > { %2538 = vpow2.f32 %v1018_v20 }
 0x2b8   : > { %1714 = vst.msk [vmem:[#allocation2 + $0x68] sm:$0xff] %vm1138_vm2, %v1395_v2  ;;  %1612 = vrot.lane.b32.xlu0 %v3016_v16, %s2742_s8  ;;  %1449 = vperm.xlu1 %2487, %v1395_v2   ;;  %v1402_v16 = vsub.f32 %v3181_v1, %v3185_v60  ;;  %2540 = vpow2.f32 %v1026_v23  ;;  %v1403_v40 = vsub.f32 %v3233_v51, %v1395_v2 }
 0x2b9   : > { %2542 = vpow2.f32 %v1022_v48 }
 0x2ba   : > { %v1416_v58 = vmul.f32 1.442695, %v1403_v40 }
 0x2bc   : > { %1616 = vrot.lane.b32.xlu0 %v3025_v26, %s2742_s8  ;;  %1459 = vperm.xlu1 %2487, %v3231_v55   ;;  %v1414_v26 = vmul.f32 1.442695, %v1402_v16  ;;  %v1418_v55 = vmul.f32 1.442695, %v1404_v25 }
 0x2be   : > { %2544 = vpow2.f32 %v1414_v26 }
 0x2bf   : > { %2546 = vpow2.f32 %v1024_v50 }
 0x2c0   : > { %1162 = vperm.xlu0 %2485, %v3259_v45   ;;  %1610 = vrot.lane.b32.xlu1 %v3012_v10, %s2742_s8  ;;  %v3273_v1 = vpop.eup %2536  ;;  %v1406_v10 = vmul.f32 1.442695, %v1398_v53 }
 0x2c1   : > { %v3280_v43 = vpop.eup %2538 }
 0x2c2   : > { %2548 = vpow2.f32 %v1406_v10 }
 0x2c3   : > { %2550 = vpow2.f32 %v1410_v54 }
 0x2c4   : > { %1551 = vperm.xlu0 %2485, %v3266_v38   ;;  %1614 = vrot.lane.b32.xlu1 %v3021_v21, %s2742_s8  ;;  %v3282_v21 = vpop.eup %2540  ;;  %2552 = vpow2.f32 %v1412_v3 }
 0x2c5   : > { %v3288_v60 = vpop.eup %2542  ;;  %2554 = vpow2.f32 %v1032_v12 }
 0x2c6   : > { %2556 = vpow2.f32 %v1028_v28 }
 0x2c7   : > { %2558 = vpow2.f32 %v1416_v58 }
 0x2c8   : > { %1187 = vperm.xlu0 %2485, %v3273_v1   ;;  %1618 = vrot.lane.b32.xlu1 %v3029_v30, %s2742_s8  ;;  %v3290_v30 = vpop.eup %2544 }
 0x2c9   : > { %v3294_v9 = vpop.eup %2546 }
 0x2cc   : > { %1177 = vperm.xlu0 %2485, %v3282_v21   ;;  %1157 = vperm.xlu1 %2487, %v3280_v43   ;;  %v3302_v14 = vpop.eup %2548 }
 0x2cd   : > { %v3306_v47 = vpop.eup %2550 }
 0x2ce   : > { %v3309_v15 = vpop.eup %2552 }
 0x2cf   : > { %v3312_v29 = vpop.eup %2554 }
 0x2d0   : > { %1566 = vperm.xlu0 %2485, %v3290_v30   ;;  %1167 = vperm.xlu1 %2487, %v3288_v60   ;;  %v3315_v31 = vpop.eup %2556 }
 0x2d1   : > { %v3318_v44 = vpop.eup %2558 }
 0x2d4   : > { %1172 = vperm.xlu1 %2487, %v3294_v9  }
 0x2d8   : > { %1546 = vperm.xlu1 %2487, %v3302_v14  }
 0x2dc   : > { %1556 = vperm.xlu1 %2487, %v3306_v47  }
 0x2e0   : > { %1561 = vperm.xlu1 %2487, %v3309_v15  }
 0x2e4   : > { %1192 = vperm.xlu1 %2487, %v3312_v29  }
 0x2e8   : > { %1182 = vperm.xlu1 %2487, %v3315_v31  }
 0x2ec   : > { %1571 = vperm.xlu1 %2487, %v3318_v44  }
 0x2ff   : > { %v1037_v33 = vpop.permute.xlu1 %1036 }
 0x300   : > { %v1074_v51 = vsub.f32 %v3055_v63, %v1037_v33 }
 0x302   : > { %v1082_v59 = vmul.f32 1.442695, %v1074_v51 }
 0x303   : > { %v1042_v0 = vpop.permute.xlu0 %1041 }
 0x304   : > { %2560 = vpow2.f32 %v1082_v59  ;;  %v1075_v52 = vsub.f32 %v3063_v8, %v1042_v0 }
 0x306   : > { %v1084_v2 = vmul.f32 1.442695, %v1075_v52 }
 0x307   : > { %v1605_v4 = vpop.permute.xlu0 %1604  ;;  %v1047_v5 = vpop.permute.xlu1 %1046 }
 0x308   : > { %2562 = vpow2.f32 %v1084_v2  ;;  %v1076_v13 = vsub.f32 %v3068_v18, %v1047_v5  ;;  %2380 = vmatprep.subr.bf16.mxu0 %v1605_v4  ;;  %2404 = vmatprep.subr.bf16.mxu1 %v1605_v4 }
 0x309   : > { %2381 = vmatpush3.bf16.msra.mxu0 %v1605_v4 }
 0x30a   : > { %v1086_v20 = vmul.f32 1.442695, %v1076_v13 }
 0x30b   : > { %v1052_v46 = vpop.permute.xlu1 %1051 }
 0x30c   : > { %2564 = vpow2.f32 %v1086_v20  ;;  %v1077_v23 = vsub.f32 %v3073_v24, %v1052_v46 }
 0x30e   : > { %v2561_v63 = vpop.eup %2560  ;;  %v1088_v16 = vmul.f32 1.442695, %v1077_v23 }
 0x30f   : > { %1114 = vadd.xlane.f32.xlu0 %v2561_v63  ;;  %v1607_v48 = vpop.permute.xlu1 %1606 }
 0x310   : > { %2566 = vpow2.f32 %v1088_v16  ;;  %2382 = vmatprep.subr.bf16.mxu0 %v1607_v48 }
 0x311   : > { %2383 = vmatpush3.bf16.msra.mxu0 %v1607_v48 }
 0x312   : > { %v2563_v8 = vpop.eup %2562 }
 0x313   : > { %1116 = vadd.xlane.f32.xlu1 %v2563_v8  ;;  %v1203_v35 = vpack.c.bf16 %v2563_v8, %v2561_v63 }
 0x315   : > { %2372 = vmatprep.mubr.bf16.mxu1 %v1203_v35 }
 0x316   : > { %v2565_v18 = vpop.eup %2564 }
 0x317   : > { %v1425_v26 = vpop.permute.xlu0 %1424  ;;  %1118 = vadd.xlane.f32.xlu0 %v2565_v18 }
 0x318   : > { %v1462_v50 = vsub.f32 %v3083_v41, %v1425_v26 }
 0x31a   : > { %v2567_v53 = vpop.eup %2566  ;;  %v1470_v10 = vmul.f32 1.442695, %v1462_v50 }
 0x31b   : > { %1120 = vadd.xlane.f32.xlu0 %v2567_v53  ;;  %v1430_v24 = vpop.permute.xlu1 %1429  ;;  %v1204_v39 = vpack.c.bf16 %v2567_v53, %v2565_v18 }
 0x31c   : > { %2568 = vpow2.f32 %v1470_v10  ;;  %v1463_v54 = vsub.f32 %v3086_v49, %v1430_v24 }
 0x31d   : > { %2373 = vmatmul.mubr.bf16.vlgmr.msra.gmra.mrb[8].mxu1 %v1204_v39 }
 0x31e   : > { %v1472_v57 = vmul.f32 1.442695, %v1463_v54  ;;  %2412 = vmatpush3.bf16.msra.mxu1 %v1605_v4 }
 0x31f   : > { %2405 = vmatprep.subr.bf16.mxu1 %v1607_v48  ;;  %v1057_v11 = vpop.permute.xlu1 %1056 }
 0x320   : > { %2570 = vpow2.f32 %v1472_v57  ;;  %v1078_v49 = vsub.f32 %v3080_v37, %v1057_v11 }
 0x322   : > { %2413 = vmatpush3.bf16.msra.mxu1 %v1607_v48  ;;  %v1090_v2 = vmul.f32 1.442695, %v1078_v49 }
 0x323   : > { %v1435_v3 = vpop.permute.xlu0 %1434  ;;  %v1072_v59 = vpop.permute.xlu1 %1071 }
 0x324   : > { %v1464_v12 = vsub.f32 %v3092_v61, %v1435_v3  ;;  %v1081_v61 = vsub.f32 %v3053_v62, %v1072_v59 }
 0x326   : > { %v2569_v28 = vpop.eup %2568  ;;  %v1474_v41 = vmul.f32 1.442695, %v1464_v12  ;;  %v1096_v46 = vmul.f32 1.442695, %v1081_v61 }
 0x327   : > { %v1067_v40 = vpop.permute.xlu0 %1066  ;;  %1503 = vadd.xlane.f32.xlu0 %v2569_v28 }
 0x328   : > { %2572 = vpow2.f32 %v1474_v41  ;;  %v1080_v58 = vsub.f32 %v3077_v32, %v1067_v40 }
 0x32a   : > { %v2571_v33 = vpop.eup %2570  ;;  %v1094_v51 = vmul.f32 1.442695, %v1080_v58 }
 0x32b   : > { %v1445_v0 = vpop.permute.xlu0 %1444  ;;  %1505 = vadd.xlane.f32.xlu1 %v2571_v33  ;;  %v1592_v52 = vpack.c.bf16 %v2571_v33, %v2569_v28  ;;  %v1420_v33 = vmul.f32 1.442695, %v1405_v34 }
 0x32c   : > { %2574 = vpow2.f32 %v1094_v51  ;;  %v1466_v63 = vsub.f32 %v3089_v56, %v1445_v0 }
 0x32d   : > { %2396 = vmatprep.mubr.bf16.mxu0 %v1592_v52  ;;  %2576 = vpow2.f32 %v1090_v2 }
 0x32e   : > { %v1478_v8 = vmul.f32 1.442695, %v1466_v63 }
 0x32f   : > { %v1455_v4 = vpop.permute.xlu0 %1454  ;;  %v1062_v5 = vpop.permute.xlu1 %1061 }
 0x330   : > { %v1468_v13 = vsub.f32 %v3100_v19, %v1455_v4  ;;  %v1079_v20 = vsub.f32 %v3103_v42, %v1062_v5 }
 0x332   : > { %v3333_v32 = vpop.eup %2572  ;;  %v1482_v23 = vmul.f32 1.442695, %v1468_v13  ;;  %v1092_v37 = vmul.f32 1.442695, %v1079_v20 }
 0x333   : > { %v1609_v16 = vpop.permute.xlu0 %1608  ;;  %1507 = vadd.xlane.f32.xlu0 %v3333_v32  ;;  %v1440_v48 = vpop.permute.xlu1 %1439 }
 0x334   : > { %2578 = vpow2.f32 %v1482_v23  ;;  %v1465_v62 = vsub.f32 %v3097_v6, %v1440_v48  ;;  %2384 = vmatprep.subr.bf16.mxu0 %v1609_v16  ;;  %2406 = vmatprep.subr.bf16.mxu1 %v1609_v16  ;;  %v1098_v23 = vld [vmem:[#allocation3] sm:$0xff]  ;;  %v1099_v48 = vld [vmem:[#allocation3 + $0x8] sm:$0xff] }
 0x335   : > { %2580 = vpow2.f32 %v1092_v37  ;;  %2385 = vmatpush3.bf16.msra.mxu0 %v1609_v16  ;;  %2414 = vmatpush3.bf16.msra.mxu1 %v1609_v16  ;;  %v1106_v37 = vmul.f32 %v3280_v43, %v1098_v23 }
 0x336   : > { %v2575_v19 = vpop.eup %2574  ;;  %2582 = vpow2.f32 %v1096_v46  ;;  %v1476_v42 = vmul.f32 1.442695, %v1465_v62 }
 0x337   : > { %1126 = vadd.xlane.f32.xlu1 %v2575_v19  ;;  %v1450_v35 = vpop.permute.xlu1 %1449  ;;  %v2577_v50 = vpop.eup %2576 }
 0x338   : > { %2584 = vpow2.f32 %v1476_v42  ;;  %v1467_v56 = vsub.f32 %v3111_v27, %v1450_v35  ;;  %v1613_v3 = vpop.permute.xlu0 %1612 }
 0x339   : > { %2586 = vpow2.f32 %v1478_v8  ;;  %v1100_v8 = vld [vmem:[#allocation3 + $0x10] sm:$0xff] }
 0x33a   : > { %v1480_v18 = vmul.f32 1.442695, %v1467_v56  ;;  %v1108_v56 = vmul.f32 %v3288_v60, %v1100_v8  ;;  %v1494_v8 = vld [vmem:[#allocation3 + $0x78] sm:$0xff] }
 0x33b   : > { %v1460_v26 = vpop.permute.xlu1 %1459 }
 0x33c   : > { %2588 = vpow2.f32 %v1480_v18  ;;  %v1469_v6 = vsub.f32 %v3108_v17, %v1460_v26  ;;  %v1617_v40 = vpop.permute.xlu0 %1616  ;;  %v1101_v26 = vld [vmem:[#allocation3 + $0x18] sm:$0xff] }
 0x33d   : > { %v1109_v43 = vmul.f32 %v3294_v9, %v1101_v26 }
 0x33e   : > { %v2579_v53 = vpop.eup %2578  ;;  %v1484_v10 = vmul.f32 1.442695, %v1469_v6 }
 0x33f   : > { %v2581_v24 = vpop.eup %2580  ;;  %1515 = vadd.xlane.f32.xlu1 %v2579_v53  ;;  %v1611_v39 = vpop.permute.xlu1 %1610 }
 0x340   : > { %v2583_v54 = vpop.eup %2582  ;;  %2590 = vpow2.f32 %v1484_v10  ;;  %2386 = vmatprep.subr.bf16.mxu0 %v1611_v39  ;;  %2407 = vmatprep.subr.bf16.mxu1 %v1611_v39  ;;  %v1205_v57 = vpack.c.bf16 %v2581_v24, %v2577_v50  ;;  %v3358_v4 = vpop.permute.xlu0 %1162  ;;  %v1487_v10 = vld [vmem:[#allocation3 + $0x40] sm:$0xff] }
 0x341   : > { %2387 = vmatpush3.bf16.msra.mxu0 %v1611_v39  ;;  %2415 = vmatpush3.bf16.msra.mxu1 %v1611_v39  ;;  %v1206_v27 = vpack.c.bf16 %v2583_v54, %v2575_v19  ;;  %2592 = vpow2.f32 %v1420_v33  ;;  %v1107_v19 = vmul.f32 %v3259_v45, %v1099_v48  ;;  %v1495_v45 = vmul.f32 %v3302_v14, %v1487_v10  ;;  %v1488_v39 = vld [vmem:[#allocation3 + $0x48] sm:$0xff] }
 0x342   : > { %v2585_v12 = vpop.eup %2584  ;;  %2376 = vmatprep.mubr.bf16.mxu1 %v1205_v57  ;;  %2388 = vmatprep.subr.bf16.mxu0 %v1613_v3  ;;  %2594 = vpow2.f32 %v1418_v55  ;;  %v1496_v60 = vmul.f32 %v3266_v38, %v1488_v39  ;;  %v1148_v39 = vld [vmem:[#allocation4 + $0x8] sm:$0xff] }
 0x343   : > { %2377 = vmatmul.mubr.bf16.gmra.mrb[12].mxu1 %v1206_v27  ;;  %2408 = vmatprep.subr.bf16.mxu1 %v1613_v3  ;;  %v2587_v17 = vpop.eup %2586  ;;  %v1615_v11 = vpop.permute.xlu1 %1614  ;;  %v1593_v49 = vpack.c.bf16 %v2585_v12, %v3333_v32  ;;  %v1489_v27 = vld [vmem:[#allocation3 + $0x50] sm:$0xff] }
 0x344   : > { %1122 = vadd.xlane.f32.xlu1 %v2577_v50  ;;  %1509 = vadd.xlane.f32.xlu0 %v2585_v12  ;;  %v3362_v13 = vpop.permute.xlu0 %1551  ;;  %v1497_v9 = vmul.f32 %v3306_v47, %v1489_v27 }
 0x345   : > { %2389 = vmatpush3.bf16.msra.mxu0 %v1613_v3  ;;  %2416 = vmatpush3.bf16.msra.mxu1 %v1613_v3 }
 0x346   : > { %v2589_v28 = vpop.eup %2588  ;;  %2390 = vmatprep.subr.bf16.mxu0 %v1615_v11  ;;  %2409 = vmatprep.subr.bf16.mxu1 %v1615_v11 }
 0x347   : > { %v1594_v41 = vpack.c.bf16 %v2589_v28, %v2587_v17  ;;  %v1619_v51 = vpop.permute.xlu1 %1618 }
 0x348   : > { %1511 = vadd.xlane.f32.xlu1 %v2587_v17  ;;  %1128 = vadd.xlane.f32.xlu0 %v2583_v54  ;;  %v3366_v7 = vpop.permute.xlu0 %1187  ;;  %v1104_v17 = vld [vmem:[#allocation3 + $0x30] sm:$0xff] }
 0x349   : > { %2391 = vmatpush3.bf16.msra.mxu0 %v1615_v11  ;;  %2417 = vmatpush3.bf16.msra.mxu1 %v1615_v11  ;;  %v1112_v14 = vmul.f32 %v3273_v1, %v1104_v17  ;;  %v1491_v1 = vld [vmem:[#allocation3 + $0x60] sm:$0xff] }
 0x34a   : > { %v2591_v58 = vpop.eup %2590  ;;  %2400 = vmatprep.mubr.bf16.mxu1 %v1594_v41  ;;  %2392 = vmatprep.subr.bf16.mxu0 %v1617_v40 }
 0x34b   : > { %2410 = vmatprep.subr.bf16.mxu1 %v1617_v40  ;;  %v1595_v59 = vpack.c.bf16 %v2591_v58, %v2579_v53  ;;  %v3344_v36 = vpop.eup %2592  ;;  %v3350_v0 = vpop.permute.xlu1 %1157 }
 0x34c   : > { %1517 = vadd.xlane.f32.xlu0 %v2591_v58  ;;  %v2595_v34 = vpop.eup %2594  ;;  %v3370_v25 = vpop.permute.xlu0 %1177 }
 0x34d   : > { %2393 = vmatpush3.bf16.msra.mxu0 %v1617_v40  ;;  %2418 = vmatpush3.bf16.msra.mxu1 %v1617_v40  ;;  %v1493_v40 = vld [vmem:[#allocation3 + $0x70] sm:$0xff] }
 0x34e   : > { %2394 = vmatprep.subr.bf16.mxu0 %v1619_v51  ;;  %2411 = vmatprep.subr.bf16.mxu1 %v1619_v51  ;;  %v1501_v38 = vmul.f32 %v2595_v34, %v1493_v40 }
 0x34f   : > { %v3352_v52 = vpop.permute.xlu1 %1167 }
 0x350   : > { %1124 = vadd.xlane.f32.xlu0 %v2581_v24  ;;  %v3374_v46 = vpop.permute.xlu0 %1566 }
 0x351   : > { %2395 = vmatpush3.bf16.msra.mxu0 %v1619_v51  ;;  %2419 = vmatpush3.bf16.msra.mxu1 %v1619_v51  ;;  %v1490_v51 = vld [vmem:[#allocation3 + $0x58] sm:$0xff] }
 0x352   : > { %v1498_v47 = vmul.f32 %v3309_v15, %v1490_v51 }
 0x353   : > { %v3354_v61 = vpop.permute.xlu1 %1172 }
 0x354   : > { %1513 = vadd.xlane.f32.xlu0 %v2589_v28  ;;  %2397 = vmatmul.mubr.bf16.vlgmr.msra.gmra.mrb[32].mxu0 %v1593_v49  ;;  %v1102_v49 = vld [vmem:[#allocation3 + $0x20] sm:$0xff] }
 0x355   : > { %2401 = vmatmul.mubr.bf16.vlgmr.msra.gmra.mrb[16].mxu1 %v1595_v59  ;;  %v1110_v59 = vmul.f32 %v3282_v21, %v1102_v49  ;;  %v1502_v21 = vmul.f32 %v3344_v36, %v1494_v8 }
 0x357   : > { %v3356_v2 = vpop.permute.xlu1 %1546 }
 0x359   : > { %1581 = vperm.xlu1 %2487, %v3344_v36   ;;  %v1147_v36 = vld [vmem:[#allocation4] sm:$0xff] }
 0x35b   : > { %v3360_v5 = vpop.permute.xlu1 %1556 }
 0x35f   : > { %v3364_v20 = vpop.permute.xlu1 %1561 }
 0x363   : > { %v3368_v22 = vpop.permute.xlu1 %1192 }
 0x367   : > { %v3372_v32 = vpop.permute.xlu1 %1182 }
 0x36a   : > { %1576 = vperm.xlu0 %2485, %v2595_v34  }
 0x36b   : > { %v3377_v63 = vpop.permute.xlu1 %1571 }
 0x39c   : > { %v1115_v16 = vpop.xlane.xlu0 %1114 }
 0x39d   : > { %v1130_v62 = vadd.f32 %v1115_v16, %v1106_v37  ;;  %v1105_v37 = vld [vmem:[#allocation3 + $0x38] sm:$0xff] }
 0x39e   : > { %v1113_v34 = vmul.f32 %v3312_v29, %v1105_v37 }
 0x39f   : > { %1139 = vst.msk [vmem:[#allocation3] sm:$0xff] %vm1138_vm2, %v1130_v62  ;;  %v1499_v62 = vmul.f32 %v3290_v30, %v1491_v1  ;;  %v1492_v30 = vld [vmem:[#allocation3 + $0x68] sm:$0xff]  ;;  %v1540_v1 = vld [vmem:[#allocation4 + $0x60] sm:$0xff] }
 0x3a0   : > { %v1117_v42 = vpop.xlane.xlu1 %1116 }
 0x3a1   : > { %v1131_v35 = vadd.f32 %v1117_v42, %v1107_v19 }
 0x3a3   : > { %1140 = vst.msk [vmem:[#allocation3 + $0x8] sm:$0xff] %vm1138_vm2, %v1131_v35 }
 0x3a4   : > { %v1119_v18 = vpop.xlane.xlu0 %1118 }
 0x3a5   : > { %v1132_v6 = vadd.f32 %v1119_v18, %v1108_v56  ;;  %v1103_v18 = vld [vmem:[#allocation3 + $0x28] sm:$0xff] }
 0x3a6   : > { %v1111_v29 = vmul.f32 %v3315_v31, %v1103_v18 }
 0x3a7   : > { %1141 = vst.msk [vmem:[#allocation3 + $0x10] sm:$0xff] %vm1138_vm2, %v1132_v6 }
 0x3a8   : > { %v1121_v50 = vpop.xlane.xlu0 %1120 }
 0x3a9   : > { %v1133_v53 = vadd.f32 %v1121_v50, %v1109_v43  ;;  %v1500_v50 = vmul.f32 %v3318_v44, %v1492_v30  ;;  %v1196_v44 = vmul.f32 %v3358_v4, %v1148_v39 }
 0x3ab   : > { %1142 = vst.msk [vmem:[#allocation3 + $0x18] sm:$0xff] %vm1138_vm2, %v1133_v53 }
 0x3b4   : > { %v1504_v24 = vpop.xlane.xlu0 %1503 }
 0x3b5   : > { %v1519_v54 = vadd.f32 %v1504_v24, %v1495_v45  ;;  %v1149_v45 = vld [vmem:[#allocation4 + $0x10] sm:$0xff]  ;;  %v1150_v24 = vld [vmem:[#allocation4 + $0x18] sm:$0xff] }
 0x3b7   : > { %1527 = vst.msk [vmem:[#allocation3 + $0x40] sm:$0xff] %vm1138_vm2, %v1519_v54  ;;  %v1197_v54 = vmul.f32 %v3352_v52, %v1149_v45  ;;  %v1151_v52 = vld [vmem:[#allocation4 + $0x20] sm:$0xff] }
 0x3b8   : > { %v1506_v57 = vpop.xlane.xlu1 %1505  ;;  %v1199_v4 = vmul.f32 %v3370_v25, %v1151_v52  ;;  %v1536_v25 = vld [vmem:[#allocation4 + $0x40] sm:$0xff] }
 0x3b9   : > { %v1520_v3 = vadd.f32 %v1506_v57, %v1496_v60  ;;  %v1195_v60 = vmul.f32 %v3350_v0, %v1147_v36  ;;  %v1198_v57 = vmul.f32 %v3354_v61, %v1150_v24  ;;  %v1153_v0 = vld [vmem:[#allocation4 + $0x30] sm:$0xff]  ;;  %v1154_v61 = vld [vmem:[#allocation4 + $0x38] sm:$0xff] }
 0x3bb   : > { %1528 = vst.msk [vmem:[#allocation3 + $0x48] sm:$0xff] %vm1138_vm2, %v1520_v3 }
 0x3be   : > { %v1849_v39 = vld [vmem:[#allocation3 + $0x40] sm:$0xff] (!%p2219_p0) }
 0x3c0   : > { %v1508_v12 = vpop.xlane.xlu0 %1507 }
 0x3c1   : > { %v1521_v11 = vadd.f32 %v1508_v12, %v1497_v9 }
 0x3c3   : > { %1529 = vst.msk [vmem:[#allocation3 + $0x50] sm:$0xff] %vm1138_vm2, %v1521_v11 }
 0x3c4   : > { %v1127_v28 = vpop.xlane.xlu1 %1126 }
 0x3c5   : > { %v1136_v41 = vadd.f32 %v1127_v28, %v1112_v14  ;;  %v1201_v28 = vmul.f32 %v3366_v7, %v1153_v0  ;;  %v1538_v7 = vld [vmem:[#allocation4 + $0x50] sm:$0xff] }
 0x3c7   : > { %1145 = vst.msk [vmem:[#allocation3 + $0x30] sm:$0xff] %vm1138_vm2, %v1136_v41  ;;  %v1152_v41 = vld [vmem:[#allocation4 + $0x28] sm:$0xff] }
 0x3c8   : > { %v1200_v51 = vmul.f32 %v3372_v32, %v1152_v41  ;;  %v1537_v32 = vld [vmem:[#allocation4 + $0x48] sm:$0xff]  ;;  %v1721_v41 = vld [vmem:[#allocation3] sm:$0xff] (!%p2219_p0) }
 0x3cc   : > { %v1516_v58 = vpop.xlane.xlu1 %1515 }
 0x3cd   : > { %v1525_v33 = vadd.f32 %v1516_v58, %v1501_v38  ;;  %v1202_v38 = vmul.f32 %v3368_v22, %v1154_v61  ;;  %v1542_v22 = vld [vmem:[#allocation4 + $0x70] sm:$0xff] }
 0x3cf   : > { %1533 = vst.msk [vmem:[#allocation3 + $0x70] sm:$0xff] %vm1138_vm2, %v1525_v33 }
 0x3d1   : > { %v1510_v55 = vpop.xlane.xlu0 %1509  ;;  %v1123_v23 = vpop.xlane.xlu1 %1122 }
 0x3d2   : > { %v1522_v16 = vadd.f32 %v1510_v55, %v1498_v47  ;;  %v1134_v48 = vadd.f32 %v1123_v23, %v1110_v59 }
 0x3d4   : > { %1530 = vst.msk [vmem:[#allocation3 + $0x58] sm:$0xff] %vm1138_vm2, %v1522_v16  ;;  %1143 = vst.msk [vmem:[#allocation3 + $0x20] sm:$0xff] %vm1138_vm2, %v1134_v48  ;;  %v1539_v16 = vld [vmem:[#allocation4 + $0x58] sm:$0xff]  ;;  %v1586_v48 = vmul.f32 %v3360_v5, %v1538_v7 }
 0x3d5   : > { %v1129_v19 = vpop.xlane.xlu0 %1128  ;;  %v1512_v42 = vpop.xlane.xlu1 %1511 }
 0x3d6   : > { %v1137_v15 = vadd.f32 %v1129_v19, %v1113_v34  ;;  %v1523_v35 = vadd.f32 %v1512_v42, %v1499_v62  ;;  %v1543_v34 = vld [vmem:[#allocation4 + $0x78] sm:$0xff]  ;;  %v1584_v19 = vmul.f32 %v3356_v2, %v1536_v25  ;;  %v1541_v42 = vld [vmem:[#allocation4 + $0x68] sm:$0xff]  ;;  %v1855_v0 = vld [vmem:[#allocation3 + $0x70] sm:$0xff] (!%p2219_p0) }
 0x3d7   : > { %v1863_v61 = vmax.f32 (!%p2219_p0), %v1855_v0, 1e-30 }
 0x3d8   : > { %1146 = vst.msk [vmem:[#allocation3 + $0x38] sm:$0xff] %vm1138_vm2, %v1137_v15  ;;  %1531 = vst.msk [vmem:[#allocation3 + $0x60] sm:$0xff] %vm1138_vm2, %v1523_v35  ;;  %v1588_v35 = vmul.f32 %v3374_v46, %v1540_v1 }
 0x3d9   : > { %v1518_v56 = vpop.xlane.xlu0 %1517  ;;  %v1582_v62 = vpop.permute.xlu1 %1581 }
 0x3da   : > { %v1526_v26 = vadd.f32 %v1518_v56, %v1502_v21  ;;  %v1587_v21 = vmul.f32 %v3364_v20, %v1539_v16 }
 0x3db   : > { %v1725_v25 = vld [vmem:[#allocation3 + $0x20] sm:$0xff] (!%p2219_p0) }
 0x3dc   : > { %1534 = vst.msk [vmem:[#allocation3 + $0x78] sm:$0xff] %vm1138_vm2, %v1526_v26  ;;  %v1733_v1 = vmax.f32 (!%p2219_p0), %v1725_v25, 1e-30 }
 0x3dd   : > { %v1125_v6 = vpop.xlane.xlu0 %1124 }
 0x3de   : > { %v1135_v43 = vadd.f32 %v1125_v6, %v1111_v29  ;;  %v1585_v29 = vmul.f32 %v3362_v13, %v1537_v32  ;;  %v1591_v6 = vmul.f32 %v1582_v62, %v1543_v34 }
 0x3df   : > { %v1728_v16 = vld [vmem:[#allocation3 + $0x38] sm:$0xff] (!%p2219_p0) }
 0x3e0   : > { %1144 = vst.msk [vmem:[#allocation3 + $0x28] sm:$0xff] %vm1138_vm2, %v1135_v43  ;;  %v1736_v62 = vmax.f32 (!%p2219_p0), %v1728_v16, 1e-30 }
 0x3e1   : > { %v1514_v53 = vpop.xlane.xlu0 %1513 }
 0x3e2   : > { %v1524_v10 = vadd.f32 %v1514_v53, %v1500_v50  ;;  %v1589_v53 = vmul.f32 %v3377_v63, %v1541_v42  ;;  %v1851_v63 = vld [vmem:[#allocation3 + $0x50] sm:$0xff] (!%p2219_p0) }
 0x3e4   : > { %1532 = vst.msk [vmem:[#allocation3 + $0x68] sm:$0xff] %vm1138_vm2, %v1524_v10 }
 0x3e9   : > { %v1577_v37 = vpop.permute.xlu0 %1576 }
 0x3ea   : > { %v1590_v8 = vmul.f32 %v1577_v37, %v1542_v22 }
 0x3f0   : > { %v2374_v31 = vpop.f32.mrb[8].mxu1 }
 0x3f1   : > { %v1274_v3 = vadd.f32 %v2374_v31, %v1197_v54  ;;  %v1241_v27 = vpop.f32.mrb[9].mxu1  ;;  %v1852_v54 = vld [vmem:[#allocation3 + $0x58] sm:$0xff] (!%p2219_p0)  ;;  %v1859_v31 = vmax.f32 (!%p2219_p0), %v1851_v63, 1e-30 }
 0x3f2   : > { %v1272_v9 = vadd.f32 %v1241_v27, %v1195_v60  ;;  %v2375_v12 = vpop.f32.mrb[10].mxu1  ;;  %v2743_v60 = vmov (!%p2219_p0), 0   ;;  %v1850_v27 = vld [vmem:[#allocation3 + $0x48] sm:$0xff] (!%p2219_p0) }
 0x3f3   : > { %1283 = vst.msk [vmem:[#allocation4 + $0x10] sm:$0xff] %vm1280_vm3, %v1274_v3  ;;  %v1275_v17 = vadd.f32 %v2375_v12, %v1198_v57  ;;  %v1244_v11 = vpop.f32.mrb[11].mxu1  ;;  %2597 = vset.pattern.permute.xlu1 (!%p2219_p0), %v2743_v60  ;;  %2596 = vset.pattern.permute.xlu0 (!%p2219_p0), %v2743_v60  ;;  %v1857_v57 = vmax.f32 (!%p2219_p0), %v1849_v39, 1e-30  ;;  %v1860_v3 = vmax.f32 (!%p2219_p0), %v1852_v54, 1e-30  ;;  %2618 = vrcp.f32 (!%p2219_p0), %v1859_v31 }
 0x3f4   : > { %1281 = vst.msk [vmem:[#allocation4] sm:$0xff] %vm1280_vm3, %v1272_v9  ;;  %v1273_v14 = vadd.f32 %v1244_v11, %v1196_v44  ;;  %v1854_v44 = vld [vmem:[#allocation3 + $0x68] sm:$0xff] (!%p2219_p0)  ;;  %v1858_v9 = vmax.f32 (!%p2219_p0), %v1850_v27, 1e-30  ;;  %v1853_v12 = vld [vmem:[#allocation3 + $0x60] sm:$0xff] (!%p2219_p0) }
 0x3f5   : > { %1284 = vst.msk [vmem:[#allocation4 + $0x18] sm:$0xff] %vm1280_vm3, %v1275_v17  ;;  %2620 = vrcp.f32 (!%p2219_p0), %v1857_v57  ;;  %v1862_v17 = vmax.f32 (!%p2219_p0), %v1854_v44, 1e-30  ;;  %v1861_v11 = vmax.f32 (!%p2219_p0), %v1853_v12, 1e-30 }
 0x3f6   : > { %1282 = vst.msk [vmem:[#allocation4 + $0x8] sm:$0xff] %vm1280_vm3, %v1273_v14  ;;  %2622 = vrcp.f32 (!%p2219_p0), %v1860_v3  ;;  %v1856_v14 = vld [vmem:[#allocation3 + $0x78] sm:$0xff] (!%p2219_p0) }
 0x3f7   : > { %2624 = vrcp.f32 (!%p2219_p0), %v1858_v9  ;;  %v1864_v52 = vmax.f32 (!%p2219_p0), %v1856_v14, 1e-30 }
 0x3f8   : > { %2626 = vrcp.f32 (!%p2219_p0), %v1862_v17 }
 0x3f9   : > { %2628 = vrcp.f32 (!%p2219_p0), %v1861_v11 }
 0x3fa   : > { %2630 = vrcp.f32 (!%p2219_p0), %v1864_v52 }
 0x3fb   : > { %2632 = vrcp.f32 (!%p2219_p0), %v1863_v61 }
 0x416   : > { %v2378_v40 = vpop.f32.mrb[12].mxu1 }
 0x417   : > { %v1278_v58 = vadd.f32 %v2378_v40, %v1201_v28  ;;  %v1257_v33 = vpop.f32.mrb[13].mxu1  ;;  %v1722_v28 = vld [vmem:[#allocation3 + $0x8] sm:$0xff] (!%p2219_p0) }
 0x418   : > { %v1276_v49 = vadd.f32 %v1257_v33, %v1199_v4  ;;  %v2379_v47 = vpop.f32.mrb[14].mxu1  ;;  %v2619_v4 = vpop.eup (!%p2219_p0), %2618  ;;  %v1730_v40 = vmax.f32 (!%p2219_p0), %v1722_v28, 1e-30  ;;  %v1724_v33 = vld [vmem:[#allocation3 + $0x18] sm:$0xff] (!%p2219_p0) }
 0x419   : > { %1287 = vst.msk [vmem:[#allocation4 + $0x30] sm:$0xff] %vm1280_vm3, %v1278_v58  ;;  %v1279_v59 = vadd.f32 %v2379_v47, %v1202_v38  ;;  %v1260_v55 = vpop.f32.mrb[15].mxu1  ;;  %v2621_v38 = vpop.eup (!%p2219_p0), %2620  ;;  %1893 = vperm.xlu1 (!%p2219_p0), %2597, %v2619_v4   ;;  %v1729_v58 = vmax.f32 (!%p2219_p0), %v1721_v41, 1e-30 }
 0x41a   : > { %1285 = vst.msk [vmem:[#allocation4 + $0x20] sm:$0xff] %vm1280_vm3, %v1276_v49  ;;  %v1277_v23 = vadd.f32 %v1260_v55, %v1200_v51  ;;  %v2623_v51 = vpop.eup (!%p2219_p0), %2622  ;;  %1883 = vperm.xlu0 (!%p2219_p0), %2596, %v2621_v38   ;;  %v1723_v49 = vld [vmem:[#allocation3 + $0x10] sm:$0xff] (!%p2219_p0)  ;;  %2634 = vrcp.f32 (!%p2219_p0), %v1730_v40 }
 0x41b   : > { %1288 = vst.msk [vmem:[#allocation4 + $0x38] sm:$0xff] %vm1280_vm3, %v1279_v59  ;;  %v2625_v47 = vpop.eup (!%p2219_p0), %2624  ;;  %v1732_v59 = vmax.f32 (!%p2219_p0), %v1724_v33, 1e-30  ;;  %2636 = vrcp.f32 (!%p2219_p0), %v1729_v58  ;;  %v1731_v55 = vmax.f32 (!%p2219_p0), %v1723_v49, 1e-30 }
 0x41c   : > { %1286 = vst.msk [vmem:[#allocation4 + $0x28] sm:$0xff] %vm1280_vm3, %v1277_v23  ;;  %v1726_v23 = vld [vmem:[#allocation3 + $0x28] sm:$0xff] (!%p2219_p0)  ;;  %v2627_v7 = vpop.eup (!%p2219_p0), %2626 }
 0x41d   : > { %1898 = vperm.xlu1 (!%p2219_p0), %2597, %v2623_v51   ;;  %v2629_v22 = vpop.eup (!%p2219_p0), %2628  ;;  %2638 = vrcp.f32 (!%p2219_p0), %v1732_v59  ;;  %v1734_v37 = vmax.f32 (!%p2219_p0), %v1726_v23, 1e-30 }
 0x41e   : > { %1888 = vperm.xlu0 (!%p2219_p0), %2596, %v2625_v47   ;;  %2640 = vrcp.f32 (!%p2219_p0), %v1731_v55  ;;  %v2631_v32 = vpop.eup (!%p2219_p0), %2630 }
 0x41f   : > { %v2633_v34 = vpop.eup (!%p2219_p0), %2632  ;;  %2642 = vrcp.f32 (!%p2219_p0), %v1734_v37 }
 0x420   : > { %2644 = vrcp.f32 (!%p2219_p0), %v1733_v1 }
 0x421   : > { %1908 = vperm.xlu1 (!%p2219_p0), %2597, %v2627_v7   ;;  %2646 = vrcp.f32 (!%p2219_p0), %v1736_v62 }
 0x422   : > { %1903 = vperm.xlu0 (!%p2219_p0), %2596, %v2629_v22  }
 0x424   : > { %v2635_v42 = vpop.eup (!%p2219_p0), %2634 }
 0x425   : > { %1918 = vperm.xlu1 (!%p2219_p0), %2597, %v2631_v32  }
 0x426   : > { %1913 = vperm.xlu0 (!%p2219_p0), %2596, %v2633_v34  }
 0x427   : > { %v2398_v15 = vpop.f32.mrb[32].mxu0 }
 0x428   : > { %v1695_v56 = vadd.f32 %v2398_v15, %v1586_v48  ;;  %v2402_v18 = vpop.f32.mrb[16].mxu1  ;;  %v1662_v26 = vpop.f32.mrb[33].mxu0  ;;  %1720 = sbr.rel (%p2219_p0) target bundleno = 1334 (0x536), region = 89  ;;  %v1727_v48 = vld [vmem:[#allocation3 + $0x30] sm:$0xff] (!%p2219_p0) }
 0x429   : > { %v1699_v30 = vadd.f32 %v2402_v18, %v1590_v8  ;;  %v1693_v43 = vadd.f32 %v1662_v26, %v1584_v19  ;;  %v1678_v5 = vpop.f32.mrb[17].mxu1  ;;  %v2399_v50 = vpop.f32.mrb[34].mxu0  ;;  %v1735_v19 = vmax.f32 (!%p2219_p0), %v1727_v48, 1e-30  ;;  %1760 = vperm.xlu1 (!%p2219_p0), %2597, %v2635_v42  }
 0x42a   : > { %1703 = vst.msk [vmem:[#allocation4 + $0x50] sm:$0xff] %vm1280_vm3, %v1695_v56  ;;  %v1697_v2 = vadd.f32 %v1678_v5, %v1588_v35  ;;  %v1696_v10 = vadd.f32 %v2399_v50, %v1587_v21  ;;  %v2403_v45 = vpop.f32.mrb[18].mxu1  ;;  %v1665_v46 = vpop.f32.mrb[35].mxu0 }
 0x42b   : > { %1707 = vst.msk [vmem:[#allocation4 + $0x70] sm:$0xff] %vm1280_vm3, %v1699_v30  ;;  %1701 = vst.msk [vmem:[#allocation4 + $0x40] sm:$0xff] %vm1280_vm3, %v1693_v43  ;;  %v1700_v20 = vadd.f32 %v2403_v45, %v1591_v6  ;;  %v1694_v36 = vadd.f32 %v1665_v46, %v1585_v29  ;;  %v1681_v13 = vpop.f32.mrb[19].mxu1  ;;  %v2637_v8 = vpop.eup (!%p2219_p0), %2636  ;;  %2648 = vrcp.f32 (!%p2219_p0), %v1735_v19 }
 0x42c   : > { %1705 = vst.msk [vmem:[#allocation4 + $0x60] sm:$0xff] %vm1280_vm3, %v1697_v2  ;;  %1704 = vst.msk [vmem:[#allocation4 + $0x58] sm:$0xff] %vm1280_vm3, %v1696_v10  ;;  %v1698_v24 = vadd.f32 %v1681_v13, %v1589_v53  ;;  %v2639_v15 = vpop.eup (!%p2219_p0), %2638  ;;  %1755 = vperm.xlu0 (!%p2219_p0), %2596, %v2637_v8  }
 0x42d   : > { %1708 = vst.msk [vmem:[#allocation4 + $0x78] sm:$0xff] %vm1280_vm3, %v1700_v20  ;;  %1702 = vst.msk [vmem:[#allocation4 + $0x48] sm:$0xff] %vm1280_vm3, %v1694_v36  ;;  %v2641_v35 = vpop.eup (!%p2219_p0), %2640  ;;  %1770 = vperm.xlu1 (!%p2219_p0), %2597, %v2639_v15  }
 0x42e   : > { %1706 = vst.msk [vmem:[#allocation4 + $0x68] sm:$0xff] %vm1280_vm3, %v1698_v24  ;;  %v2643_v21 = vpop.eup (!%p2219_p0), %2642 }
 0x42f   : > { %v2645_v56 = vpop.eup %2644 }
 0x430   : > { %1765 = vperm.xlu0 %2596, %v2641_v35   ;;  %v2647_v18 = vpop.eup %2646 }
 0x431   : > { %1780 = vperm.xlu1 %2597, %v2643_v21   ;;  %v1875_v29 = vld [vmem:[#allocation4 + $0x50] sm:$0xff] }
 0x432   : > { %v1873_v6 = vld [vmem:[#allocation4 + $0x40] sm:$0xff]  ;;  %v1879_v14 = vld [vmem:[#allocation4 + $0x70] sm:$0xff] }
 0x433   : > { %v1876_v53 = vld [vmem:[#allocation4 + $0x58] sm:$0xff]  ;;  %v1877_v60 = vld [vmem:[#allocation4 + $0x60] sm:$0xff] }
 0x434   : > { %1775 = vperm.xlu0 %2596, %v2645_v56   ;;  %v1874_v10 = vld [vmem:[#allocation4 + $0x48] sm:$0xff]  ;;  %v1880_v17 = vld [vmem:[#allocation4 + $0x78] sm:$0xff] }
 0x435   : > { %v2649_v26 = vpop.eup %2648  ;;  %1790 = vperm.xlu1 %2597, %v2647_v18   ;;  %v1878_v39 = vld [vmem:[#allocation4 + $0x68] sm:$0xff] }
 0x438   : > { %1785 = vperm.xlu0 %2596, %v2649_v26  }
 0x498   : > { %v1894_v30 = vpop.permute.xlu1 %1893 }
 0x499   : > { %v1923_v43 = vmul.f32 %v1894_v30, %v1875_v29  ;;  %v1884_v5 = vpop.permute.xlu0 %1883 }
 0x49a   : > { %v1921_v50 = vmul.f32 %v1884_v5, %v1873_v6 }
 0x49b   : > { %v1939_v2 = vmin.f32 %v1923_v43, 0.0  ;;  %vm1931_vm4 = vcmp.gt.f32.partialorder %v1923_v43, 0.0 }
 0x49c   : > { %v1937_v45 = vmin.f32 %v1921_v50, 0.0  ;;  %v1899_v46 = vpop.permute.xlu1 %1898  ;;  %vm1929_vm6 = vcmp.gt.f32.partialorder %v1921_v50, 0.0 }
 0x49d   : > { %v1949_v20 = vmul.f32 1.442695, %v1939_v2  ;;  %v1924_v36 = vmul.f32 %v1899_v46, %v1876_v53  ;;  %v1889_v13 = vpop.permute.xlu0 %1888  ;;  %v1746_v2 = vld [vmem:[#allocation4 + $0x8] sm:$0xff]  ;;  %v1748_v46 = vld [vmem:[#allocation4 + $0x18] sm:$0xff] }
 0x49e   : > { %v1945_v24 = vmul.f32 1.442695, %v1937_v45  ;;  %v1922_v63 = vmul.f32 %v1889_v13, %v1874_v10  ;;  %v1745_v45 = vld [vmem:[#allocation4] sm:$0xff] }
 0x49f   : > { %2650 = vpow2.f32 %v1949_v20  ;;  %v1940_v54 = vmin.f32 %v1924_v36, 0.0  ;;  %vm1932_vm5 = vcmp.gt.f32.partialorder %v1924_v36, 0.0 }
 0x4a0   : > { %2652 = vpow2.f32 %v1945_v24  ;;  %v1938_v31 = vmin.f32 %v1922_v63, 0.0  ;;  %v1909_v57 = vpop.permute.xlu1 %1908  ;;  %vm1930_vm7 = vcmp.gt.f32.partialorder %v1922_v63, 0.0 }
 0x4a1   : > { %v1951_v3 = vmul.f32 1.442695, %v1940_v54  ;;  %v1926_v27 = vmul.f32 %v1909_v57, %v1878_v39  ;;  %v1904_v44 = vpop.permute.xlu0 %1903 }
 0x4a2   : > { %v1947_v9 = vmul.f32 1.442695, %v1938_v31  ;;  %v1925_v12 = vmul.f32 %v1904_v44, %v1877_v60  ;;  %v1750_v31 = vld [vmem:[#allocation4 + $0x28] sm:$0xff] }
 0x4a3   : > { %2654 = vpow2.f32 %v1951_v3  ;;  %v1942_v11 = vmin.f32 %v1926_v27, 0.0  ;;  %vm1934_vm8 = vcmp.gt.f32.partialorder %v1926_v27, 0.0  ;;  %v1749_v3 = vld [vmem:[#allocation4 + $0x20] sm:$0xff] }
 0x4a4   : > { %2656 = vpow2.f32 %v1947_v9  ;;  %v1941_v0 = vmin.f32 %v1925_v12, 0.0  ;;  %v1919_v52 = vpop.permute.xlu1 %1918  ;;  %vm1933_vm9 = vcmp.gt.f32.partialorder %v1925_v12, 0.0 }
 0x4a5   : > { %v1955_v61 = vmul.f32 1.442695, %v1942_v11  ;;  %v1928_v28 = vmul.f32 %v1919_v52, %v1880_v17  ;;  %v1914_v41 = vpop.permute.xlu0 %1913  ;;  %v1752_v11 = vld [vmem:[#allocation4 + $0x38] sm:$0xff]  ;;  %v1751_v52 = vld [vmem:[#allocation4 + $0x30] sm:$0xff] }
 0x4a6   : > { %v1953_v4 = vmul.f32 1.442695, %v1941_v0  ;;  %v1927_v40 = vmul.f32 %v1914_v41, %v1879_v14 }
 0x4a7   : > { %2658 = vpow2.f32 %v1955_v61  ;;  %v1944_v38 = vmin.f32 %v1928_v28, 0.0  ;;  %vm1936_vm10 = vcmp.gt.f32.partialorder %v1928_v28, 0.0 }
 0x4a8   : > { %2660 = vpow2.f32 %v1953_v4  ;;  %v1943_v58 = vmin.f32 %v1927_v40, 0.0  ;;  %vm1935_vm11 = vcmp.gt.f32.partialorder %v1927_v40, 0.0  ;;  %v1761_v5 = vpop.permute.xlu1 %1760 }
 0x4a9   : > { %v2651_v33 = vpop.eup %2650  ;;  %v1959_v51 = vmul.f32 1.442695, %v1944_v38  ;;  %v1794_v20 = vmul.f32 %v1761_v5, %v1746_v2 }
 0x4aa   : > { %v2653_v49 = vpop.eup %2652  ;;  %v1957_v47 = vmul.f32 1.442695, %v1943_v58  ;;  %v2230_v59 = vadd.f32 -1.0, %v2651_v33 }
 0x4ab   : > { %2662 = vpow2.f32 %v1959_v51  ;;  %v2228_v23 = vadd.f32 -1.0, %v2653_v49  ;;  %v1810_v60 = vmin.f32 %v1794_v20, 0.0  ;;  %vm1802_vm13 = vcmp.gt.f32.partialorder %v1794_v20, 0.0 }
 0x4ac   : > { %2664 = vpow2.f32 %v1957_v47  ;;  %v1971_v37 = vsel %vm1931_vm4, %v1923_v43, %v2230_v59  ;;  %v1771_v53 = vpop.permute.xlu1 %1770 }
 0x4ad   : > { %v2655_v55 = vpop.eup %2654  ;;  %v1969_v48 = vsel %vm1929_vm6, %v1921_v50, %v2228_v23  ;;  %v1756_v50 = vpop.permute.xlu0 %1755  ;;  %v1796_v24 = vmul.f32 %v1771_v53, %v1748_v46 }
 0x4ae   : > { %v2657_v7 = vpop.eup %2656  ;;  %v2231_v25 = vadd.f32 -1.0, %v2655_v55  ;;  %v1793_v13 = vmul.f32 %v1756_v50, %v1745_v45 }
 0x4af   : > { %v2229_v22 = vadd.f32 -1.0, %v2657_v7  ;;  %vm1804_vm15 = vcmp.gt.f32.partialorder %v1796_v24, 0.0 }
 0x4b0   : > { %v1972_v1 = vsel %vm1932_vm5, %v1924_v36, %v2231_v25  ;;  %v1747_v36 = vld [vmem:[#allocation4 + $0x10] sm:$0xff]  ;;  %v1809_v57 = vmin.f32 %v1793_v13, 0.0  ;;  %vm1801_vm14 = vcmp.gt.f32.partialorder %v1793_v13, 0.0 }
 0x4b1   : > { %v2659_v16 = vpop.eup %2658  ;;  %v2603_v32 = vpack.i.bf16 %v1972_v1, %v1971_v37  ;;  %v1970_v34 = vsel %vm1930_vm7, %v1922_v63, %v2229_v22  ;;  %v1766_v10 = vpop.permute.xlu0 %1765 }
 0x4b2   : > { %v2661_v62 = vpop.eup %2660  ;;  %v2233_v19 = vadd.f32 -1.0, %v2659_v16  ;;  %v2598_v42 = vpack.i.bf16 %v1970_v34, %v1969_v48  ;;  %v1781_v63 = vpop.permute.xlu1 %1780  ;;  %v1795_v39 = vmul.f32 %v1766_v10, %v1747_v36  ;;  %v1817_v0 = vmul.f32 1.442695, %v1809_v57 }
 0x4b3   : > { %v2232_v8 = vadd.f32 -1.0, %v2661_v62  ;;  %2604 = vrot.lane.b32.xlu1 %v2603_v32, %s2744_s20  ;;  %v3440_v9 = vmul.f32 %v1781_v63, %v1750_v31 }
 0x4b4   : > { %2599 = vrot.lane.b32.xlu0 %v2598_v42, %s2744_s20  ;;  %v1974_v15 = vsel %vm1934_vm8, %v1926_v27, %v2233_v19  ;;  %v1812_v27 = vmin.f32 %v1796_v24, 0.0  ;;  %v1811_v44 = vmin.f32 %v1795_v39, 0.0  ;;  %vm1803_vm0 = vcmp.gt.f32.partialorder %v1795_v39, 0.0 }
 0x4b5   : > { %v2663_v35 = vpop.eup %2662  ;;  %v1973_v21 = vsel %vm1933_vm9, %v1925_v12, %v2232_v8  ;;  %v1776_v54 = vpop.permute.xlu0 %1775  ;;  %v1819_v12 = vmul.f32 1.442695, %v1810_v60  ;;  %v1814_v4 = vmin.f32 %v3440_v9, 0.0  ;;  %vm1806_vm1 = vcmp.gt.f32.partialorder %v3440_v9, 0.0 }
 0x4b6   : > { %v2665_v56 = vpop.eup %2664  ;;  %v2235_v18 = vadd.f32 -1.0, %v2663_v35  ;;  %v2608_v26 = vpack.i.bf16 %v1974_v15, %v1973_v21  ;;  %v3442_v17 = vmul.f32 %v1776_v54, %v1749_v3  ;;  %v1791_v14 = vpop.permute.xlu1 %1790  ;;  %v1821_v41 = vmul.f32 1.442695, %v1811_v44 }
 0x4b7   : > { %v2234_v29 = vadd.f32 -1.0, %v2665_v56  ;;  %2666 = vpow2.f32 %v1819_v12  ;;  %v1827_v33 = vmul.f32 1.442695, %v1814_v4 }
 0x4b8   : > { %2609 = vrot.lane.b32.xlu0 %v2608_v26, %s2744_s20  ;;  %v1976_v6 = vsel %vm1936_vm10, %v1928_v28, %v2235_v18  ;;  %v1823_v28 = vmul.f32 1.442695, %v1812_v27  ;;  %v1813_v38 = vmin.f32 %v3442_v17, 0.0  ;;  %2668 = vpow2.f32 %v1817_v0 }
 0x4b9   : > { %v1975_v30 = vsel %vm1935_vm11, %v1927_v40, %v2234_v29  ;;  %v1786_v61 = vpop.permute.xlu0 %1785  ;;  %v3445_v40 = vmul.f32 %v1791_v14, %v1752_v11  ;;  %vm1805_vm2 = vcmp.gt.f32.partialorder %v3442_v17, 0.0 }
 0x4ba   : > { %v2613_v43 = vpack.i.bf16 %v1976_v6, %v1975_v30  ;;  %v3448_v58 = vmul.f32 %v1786_v61, %v1751_v52  ;;  %2670 = vpow2.f32 %v1823_v28  ;;  %v1825_v49 = vmul.f32 1.442695, %v1813_v38 }
 0x4bb   : > { %2672 = vpow2.f32 %v1821_v41  ;;  %v1816_v51 = vmin.f32 %v3445_v40, 0.0  ;;  %vm1808_vm4 = vcmp.gt.f32.partialorder %v3445_v40, 0.0 }
 0x4bc   : > { %2614 = vrot.lane.b32.xlu1 %v2613_v43, %s2744_s20  ;;  %v1815_v47 = vmin.f32 %v3448_v58, 0.0  ;;  %2674 = vpow2.f32 %v1827_v33  ;;  %vm1807_vm5 = vcmp.gt.f32.partialorder %v3448_v58, 0.0 }
 0x4bd   : > { %v1831_v59 = vmul.f32 1.442695, %v1816_v51  ;;  %2676 = vpow2.f32 %v1825_v49 }
 0x4be   : > { %v1829_v55 = vmul.f32 1.442695, %v1815_v47 }
 0x4bf   : > { %2678 = vpow2.f32 %v1831_v59 }
 0x4c0   : > { %2680 = vpow2.f32 %v1829_v55 }
 0x4c1   : > { %v2667_v23 = vpop.eup %2666 }
 0x4c2   : > { %v2669_v7 = vpop.eup %2668  ;;  %v2221_v37 = vadd.f32 -1.0, %v2667_v23 }
 0x4c3   : > { %v2220_v1 = vadd.f32 -1.0, %v2669_v7 }
 0x4c4   : > { %v2671_v25 = vpop.eup %2670  ;;  %v1842_v15 = vsel %vm1802_vm13, %v1794_v20, %v2221_v37 }
 0x4c5   : > { %v2673_v22 = vpop.eup %2672  ;;  %v2223_v16 = vadd.f32 -1.0, %v2671_v25  ;;  %v1841_v8 = vsel %vm1801_vm14, %v1793_v13, %v2220_v1 }
 0x4c6   : > { %v2222_v32 = vadd.f32 -1.0, %v2673_v22  ;;  %v2675_v48 = vpop.eup %2674 }
 0x4c7   : > { %v2677_v34 = vpop.eup %2676  ;;  %v1844_v21 = vsel %vm1804_vm15, %v1796_v24, %v2223_v16  ;;  %v2225_v5 = vadd.f32 -1.0, %v2675_v48 }
 0x4c8   : > { %v1843_v56 = vsel %vm1803_vm0, %v1795_v39, %v2222_v32  ;;  %v2224_v43 = vadd.f32 -1.0, %v2677_v34 }
 0x4c9   : > { %v2679_v29 = vpop.eup %2678  ;;  %v1846_v60 = vsel %vm1806_vm1, %v3440_v9, %v2225_v5 }
 0x4ca   : > { %v2681_v50 = vpop.eup %2680  ;;  %v1845_v54 = vsel %vm1805_vm2, %v3442_v17, %v2224_v43  ;;  %v2227_v31 = vadd.f32 -1.0, %v2679_v29 }
 0x4cb   : > { %v2226_v57 = vadd.f32 -1.0, %v2681_v50 }
 0x4cc   : > { %v1848_v0 = vsel %vm1808_vm4, %v3445_v40, %v2227_v31 }
 0x4cd   : > { %v1847_v52 = vsel %vm1807_vm5, %v3448_v58, %v2226_v57 }
 0x525   : > { %v2605_v62 = vpop.permute.xlu1 %2604 }
 0x526   : > { %v2607_v19 = vunpack.i.h.bf16 %v2605_v62  ;;  %v2606_v42 = vunpack.i.l.bf16 %v2605_v62  ;;  %v2600_v35 = vpop.permute.xlu0 %2599 }
 0x527   : > { %v2602_v18 = vunpack.i.h.bf16 %v2600_v35  ;;  %v2601_v26 = vunpack.i.l.bf16 %v2600_v35 }
 0x528   : > { %v2012_v6 = vsel %vm1280_vm3, %v1844_v21, %v2607_v19  ;;  %v2011_v30 = vsel %vm1280_vm3, %v1843_v56, %v2606_v42 }
 0x529   : > { %v2021_v53 = vsel %vm2017_vm12, %v2012_v6, 0.0  ;;  %v2020_v2 = vsel %vm2017_vm12, %v2011_v30, 0.0  ;;  %v2010_v10 = vsel %vm1280_vm3, %v1842_v15, %v2602_v18  ;;  %v2009_v45 = vsel %vm1280_vm3, %v1841_v8, %v2601_v26 }
 0x52a   : > { %v2278_v46 = vpack.c.bf16 %v2021_v53, %v2020_v2  ;;  %v2019_v20 = vsel %vm2017_vm12, %v2010_v10, 0.0  ;;  %v2018_v36 = vsel %vm2017_vm12, %v2009_v45, 0.0  ;;  %v2610_v13 = vpop.permute.xlu0 %2609 }
 0x52b   : > { %v2273_v24 = vpack.c.bf16 %v2019_v20, %v2018_v36  ;;  %v2612_v63 = vunpack.i.h.bf16 %v2610_v13  ;;  %v2611_v39 = vunpack.i.l.bf16 %v2610_v13 }
 0x52c   : > { %2293 = vst [vmem:[%s2853_s15 + $0x8] sm:$0xff] %v2278_v46  }
 0x52d   : > { %2274 = vst [vmem:[%s2853_s15] sm:$0xff] %v2273_v24   ;;  %v2014_v3 = vsel %vm1280_vm3, %v1846_v60, %v2612_v63  ;;  %v2013_v27 = vsel %vm1280_vm3, %v1845_v54, %v2611_v39 }
 0x52e   : > { %v2023_v44 = vsel %vm2017_vm12, %v2014_v3, 0.0  ;;  %v2022_v12 = vsel %vm2017_vm12, %v2013_v27, 0.0  ;;  %v2615_v11 = vpop.permute.xlu1 %2614 }
 0x52f   : > { %v2283_v17 = vpack.c.bf16 %v2023_v44, %v2022_v12  ;;  %v2617_v9 = vunpack.i.h.bf16 %v2615_v11  ;;  %v2616_v14 = vunpack.i.l.bf16 %v2615_v11 }
 0x531   : > { %2294 = vst [vmem:[%s2853_s15 + $0x10] sm:$0xff] %v2283_v17   ;;  %v2016_v61 = vsel %vm1280_vm3, %v1848_v0, %v2617_v9  ;;  %v2015_v28 = vsel %vm1280_vm3, %v1847_v52, %v2616_v14 }
 0x532   : > { %v2025_v41 = vsel %vm2017_vm12, %v2016_v61, 0.0  ;;  %v2024_v4 = vsel %vm2017_vm12, %v2015_v28, 0.0 }
 0x533   : > { %v2288_v38 = vpack.c.bf16 %v2025_v41, %v2024_v4 }
 0x535   : > { %2295 = vst [vmem:[%s2853_s15 + $0x18] sm:$0xff] %v2288_v38  }
 0x536 PF: > { %s15_s24 = sadd.s32 1, %s2736_s24   ;;  %s3507_s18 = smov %s2716_s19 }
 0x537   : > { %p12_p1 = scmp.ge.s32.totalorder %s15_s24, 11   ;;  %s3508_s19 = smov %s2826_s6 }
 0x538   : > { %s3509_s20 = smov %s2728_s22  ;;  %s3510_s21 = smov %s2732_s23 }
 0x539   : > { %s3511_s22 = smov %s3514_s25  ;;  %s3512_s23 = smov %s3518_s26 }
 0x53a   :  { %14 = sbr.rel (!%p12_p1) target bundleno = 4 (0x4), region = 133 }

</bundles_post_ra>
